<compile_context>
chip_gen: v7x
topology: tpu7x:2x2x1
jax: 0.10.0
libtpu: 0.0.40
codegen_flags: <defaults>
</compile_context>

<pallas_src>
import jax
import jax.numpy as jnp
from jax.experimental import pallas as pl
from jax.experimental.pallas import tpu as pltpu

MXU_DTYPE = jnp.float32  # jnp.bfloat16 on v6e/v7x (halve operand traffic)


def _round_up(x, m):
    return (x + m - 1) // m * m


# ----------------------------------------------------------------------------
# Wrapper-side weight / layout preparation (tiny tensors, done once under jit)
# ----------------------------------------------------------------------------
def fold_bn(gamma, beta, mean, var, eps=1e-5):
    scale = gamma / jnp.sqrt(var + eps)
    return scale, beta - mean * scale


def fuse_conv3x3(w_oihw, scale=None):
    """(O,I,3,3) -> (O, 9*I) fused matmul layout; column = (kh*3+kw)*I + i."""
    w = w_oihw if scale is None else w_oihw * scale[:, None, None, None]
    o, i, _, _ = w.shape
    return jnp.transpose(w, (0, 2, 3, 1)).reshape(o, 9 * i)


def fuse_taps(w3):
    """(3,3,O,I) tap tensor -> (O, 9*I) fused matmul layout."""
    _, _, o, i = w3.shape
    return jnp.transpose(w3, (2, 0, 1, 3)).reshape(o, 9 * i)


def convtranspose_taps(w_iohw):
    """ConvTranspose2d(k=4, s=2, p=1) -> equivalent 3x3 conv taps
    (3, 3, 4*Cout, Cin) on the UNDILATED input; packed output channel
    (i*2+j)*Cout + c is the sub-pixel phase (i, j).

    1-D derivation: out[2h]   = x[h]*W[1] + x[h-1]*W[3]
                    out[2h+1] = x[h]*W[2] + x[h+1]*W[0]
    """
    cin, cout, k, _ = w_iohw.shape
    assert k == 4
    kmap = {(0, 0): 3, (1, 0): 1, (1, 1): 2, (2, 1): 0}  # (tap offset, phase) -> kh
    w3 = jnp.zeros((3, 3, 4 * cout, cin), w_iohw.dtype)
    for (dh, i), kh in kmap.items():
        for (dw, j), kw in kmap.items():
            blk = jnp.transpose(w_iohw[:, :, kh, kw], (1, 0))   # (Cout, Cin)
            q = (i * 2 + j) * cout
            w3 = w3.at[dh, dw, q:q + cout, :].set(blk)
    return w3


def compose_with_d2s(w3):
    """Fold a 2x depth-to-space of the INPUT into a 3x3/pad-1 conv.

    w3: (3,3,O,I) taps of a conv on the fine (2H,2W) grid whose input is
    d2s(z) of a sub-pixel packed z on the (H,W) grid.  Returns (3,3,4O,4I)
    taps of the equivalent conv on the (H,W) grid: input channel
    (i*2+j)*I + c, output channel (am*2+bm)*O + o (am,bm = fine-grid phase of
    the anchor).  Exact (verified against the dilated-conv reference below).
    """
    _, _, o, i = w3.shape
    out = jnp.zeros((3, 3, 4 * o, 4 * i), w3.dtype)
    for am in (0, 1):
        for dh in range(3):
            u = am + dh - 1
            eh, ip = u // 2, u % 2            # floor-div: -1 -> (-1, 1)
            for bm in (0, 1):
                for dw in range(3):
                    v = bm + dw - 1
                    ew, jp = v // 2, v % 2
                    out = out.at[eh + 1, ew + 1,
                                 (am * 2 + bm) * o:(am * 2 + bm + 1) * o,
                                 (ip * 2 + jp) * i:(ip * 2 + jp + 1) * i
                                 ].add(w3[dh, dw])
    return out


# ----------------------------------------------------------------------------
# Fused ResDecoder forward: one pallas_call, NCHW in -> NCHW out
# ----------------------------------------------------------------------------
def res_decoder_forward(x_nchw, params):
    x = x_nchw.astype(jnp.float32)
    N, Cin, H, W = x.shape
    NH = params["conv1_w"].shape[0]
    NH2 = params["ct1_w"].shape[1]
    Cout = params["ct2_w"].shape[1]
    nres = len(params["res"])
    assert nres >= 1, "TODO(synk): num_res_layers == 0 path not wired"
    RH = params["res"][0]["w1"].shape[0]
    C1 = 4 * NH2          # conv_trans_1 packed channels (= 2*NH)
    C2 = 16 * Cout        # conv_trans_2 ∘ depth-to-space packed channels

    # ---- padded-flat layout constants -------------------------------------
    Wp = W + 2                         # padded row stride
    L = H * Wp                         # valid anchor count (incl. masked cols)
    LPAD = _round_up(L, 128)           # lane-dense anchor count
    LEAD = _round_up(Wp + 1, 128)      # 128-aligned interior start in buffer
    SHIFT = LEAD - (Wp + 1)
    RBUF = LEAD + LPAD + 2 * Wp + 2    # resident buffer flat length
    offsets = [SHIFT + kh * Wp + kw for kh in range(3) for kw in range(3)]

    # ---- fold BN, fuse taps, sub-pixel compose (all wrapper side) ----------
    w1 = fuse_conv3x3(params["conv1_w"]).astype(MXU_DTYPE)
    b1 = params["conv1_b"].reshape(NH, 1).astype(jnp.float32)

    wr1l, br1l, wr2l, br2l = [], [], [], []
    for lyr in params["res"]:
        s1, sh1 = fold_bn(lyr["bn1_gamma"], lyr["bn1_beta"],
                          lyr["bn1_mean"], lyr["bn1_var"])
        s2, sh2 = fold_bn(lyr["bn2_gamma"], lyr["bn2_beta"],
                          lyr["bn2_mean"], lyr["bn2_var"])
        wr1l.append(fuse_conv3x3(lyr["w1"], scale=s1))        # (RH, 9*NH)
        br1l.append(sh1.reshape(RH, 1))
        wr2l.append(lyr["w2"][:, :, 0, 0] * s2[:, None])       # (NH, RH)
        br2l.append(sh2.reshape(NH, 1))
    wr1 = jnp.stack(wr1l).astype(MXU_DTYPE)                    # (nres, RH, 9*NH)
    br1 = jnp.stack(br1l).astype(jnp.float32)                  # (nres, RH, 1)
    wr2 = jnp.stack(wr2l).astype(MXU_DTYPE)                    # (nres, NH, RH)
    br2 = jnp.stack(br2l).astype(jnp.float32)                  # (nres, NH, 1)

    wct1 = fuse_taps(convtranspose_taps(params["ct1_w"])).astype(MXU_DTYPE)
    bct1 = jnp.tile(params["ct1_b"], 4).reshape(C1, 1).astype(jnp.float32)
    wct2 = fuse_taps(
        compose_with_d2s(convtranspose_taps(params["ct2_w"]))).astype(MXU_DTYPE)
    bct2 = jnp.tile(params["ct2_b"], 16).reshape(C2, 1).astype(jnp.float32)

    # ---- input in padded-flat buffer layout: (N, Cin, RBUF) ----------------
    xp = jnp.pad(x, ((0, 0), (0, 0), (1, 1), (1, 1))).reshape(N, Cin, (H + 2) * Wp)
    xf = jnp.pad(xp, ((0, 0), (0, 0), (SHIFT, RBUF - SHIFT - (H + 2) * Wp)))

    # anchor validity mask: zero right-pad columns and rows >= H so every
    # layer's masked output doubles as the next layer's zero padding.
    ll = jnp.arange(LPAD)
    mask = ((ll < L) & (ll % Wp < W)).astype(jnp.float32).reshape(1, LPAD)

    # ---- the fused kernel ---------------------------------------------------
    def kernel(x_ref, w1_ref, b1_ref, wr1_ref, br1_ref, wr2_ref, br2_ref,
               wct1_ref, bct1_ref, wct2_ref, bct2_ref, m_ref,
               o_ref, act_ref, patch_ref):
        msk = m_ref[...]                                       # (1, LPAD)

        # Zero once per sample: establishes the zero-halo contract.
        act_ref[...] = jnp.zeros_like(act_ref)

        def conv(read, cin, w, b):
            # implicit im2col: 9 shifted slices -> (9*cin, LPAD), one MXU dot.
            for t, off in enumerate(offsets):
                patch_ref[t * cin:(t + 1) * cin, :] = read(off)
            return jnp.dot(w, patch_ref[:9 * cin, :],
                           preferred_element_type=jnp.float32) + b

        def store(cchan, val):
            # tile-aligned VMEM store (LEAD, LPAD are multiples of 128)
            act_ref[:cchan, LEAD:LEAD + LPAD] = val * msk

        # conv_1 + ReLU
        y = conv(lambda off: x_ref[0, :, off:off + LPAD].astype(MXU_DTYPE),
                 Cin, w1_ref[...], b1_ref[...])
        store(NH, jnp.maximum(y, 0.0))

        # ResStack: each ResBlock fully in VMEM, residual from resident buffer
        for l in range(nres):
            h = conv(lambda off: act_ref[:NH, off:off + LPAD].astype(MXU_DTYPE),
                     NH, wr1_ref[l], br1_ref[l])
            h = jnp.maximum(h, 0.0).astype(MXU_DTYPE)          # (RH, LPAD)
            res = act_ref[:NH, LEAD:LEAD + LPAD]               # residual, f32
            y = jnp.dot(wr2_ref[l], h, preferred_element_type=jnp.float32)
            store(NH, jnp.maximum(y + br2_ref[l] + res, 0.0))

        # conv_trans_1 as sub-pixel packed 3x3 + ReLU -> C1 packed channels
        y = conv(lambda off: act_ref[:NH, off:off + LPAD].astype(MXU_DTYPE),
                 NH, wct1_ref[...], bct1_ref[...])
        store(C1, jnp.maximum(y, 0.0))

        # conv_trans_2 ∘ depth-to-space as packed 3x3 + sigmoid -> C2 channels
        y = conv(lambda off: act_ref[:C1, off:off + LPAD].astype(MXU_DTYPE),
                 C1, wct2_ref[...], bct2_ref[...])
        o_ref[0] = jax.nn.sigmoid(y).astype(o_ref.dtype)

    # VMEM budget from actual block/scratch bytes (double-buffer + headroom),
    # capped for v7x's 64 MiB per-core VMEM.
    wsz = jnp.dtype(MXU_DTYPE).itemsize
    block_bytes = (4 * (Cin * RBUF + C2 * LPAD + LPAD)
                   + wsz * (w1.size + wr1.size + wr2.size + wct1.size + wct2.size)
                   + 4 * (b1.size + br1.size + br2.size + bct1.size + bct2.size))
    scratch_bytes = 4 * C1 * RBUF + wsz * 9 * max(Cin, C1) * LPAD
    vmem_limit = int(min(max(2 * block_bytes + scratch_bytes + (8 << 20),
                             16 << 20), 40 << 20))

    out = pl.pallas_call(
        kernel,
        out_shape=jax.ShapeDtypeStruct((N, C2, LPAD), jnp.float32),
        grid_spec=pltpu.PrefetchScalarGridSpec(
            num_scalar_prefetch=0,
            grid=(N,),
            in_specs=[
                pl.BlockSpec((1, Cin, RBUF), lambda n: (n, 0, 0)),
                pl.BlockSpec((NH, 9 * Cin), lambda n: (0, 0)),
                pl.BlockSpec((NH, 1), lambda n: (0, 0)),
                pl.BlockSpec((nres, RH, 9 * NH), lambda n: (0, 0, 0)),
                pl.BlockSpec((nres, RH, 1), lambda n: (0, 0, 0)),
                pl.BlockSpec((nres, NH, RH), lambda n: (0, 0, 0)),
                pl.BlockSpec((nres, NH, 1), lambda n: (0, 0, 0)),
                pl.BlockSpec((C1, 9 * NH), lambda n: (0, 0)),
                pl.BlockSpec((C1, 1), lambda n: (0, 0)),
                pl.BlockSpec((C2, 9 * C1), lambda n: (0, 0)),
                pl.BlockSpec((C2, 1), lambda n: (0, 0)),
                pl.BlockSpec((1, LPAD), lambda n: (0, 0)),
            ],
            out_specs=pl.BlockSpec((1, C2, LPAD), lambda n: (n, 0, 0)),
            scratch_shapes=[
                pltpu.VMEM((C1, RBUF), jnp.float32),            # resident act
                pltpu.VMEM((9 * max(Cin, C1), LPAD), MXU_DTYPE),  # patch matrix
            ],
        ),
        compiler_params=pltpu.CompilerParams(
            dimension_semantics=("parallel",),
            vmem_limit_bytes=vmem_limit,
        ),
    )(xf, w1, b1, wr1, br1, wr2, br2, wct1, bct1, wct2, bct2, mask)

    # Final 4x sub-pixel unpack (the only XLA-side layout op on activations).
    y = out[:, :, :L].reshape(N, 2, 2, 2, 2, Cout, H, Wp)[..., :W]
    y = jnp.transpose(y, (0, 5, 6, 1, 3, 7, 2, 4))   # (N,co,H,am,a2,W,bm,b2)
    return y.reshape(N, Cout, 4 * H, 4 * W)


# ----------------------------------------------------------------------------
# Pure-JAX (XLA conv) reference for correctness checking
# ----------------------------------------------------------------------------
def _conv_ref(x, w_oihw, bias, pad, lhs_dil=1, scale=None):
    y = jax.lax.conv_general_dilated(
        x, w_oihw, (1, 1), [(pad, pad), (pad, pad)],
        lhs_dilation=(lhs_dil, lhs_dil),
        dimension_numbers=("NCHW", "OIHW", "NCHW"),
        precision=jax.lax.Precision.HIGHEST)
    if scale is not None:
        y = y * scale.reshape(1, -1, 1, 1)
    return y + bias.reshape(1, -1, 1, 1)


def res_decoder_ref(x, params):
    y = jax.nn.relu(_conv_ref(x, params["conv1_w"], params["conv1_b"], 1))
    for lyr in params["res"]:
        s1, b1 = fold_bn(lyr["bn1_gamma"], lyr["bn1_beta"],
                         lyr["bn1_mean"], lyr["bn1_var"])
        h = jax.nn.relu(_conv_ref(y, lyr["w1"], b1, 1, scale=s1))
        s2, b2 = fold_bn(lyr["bn2_gamma"], lyr["bn2_beta"],
                         lyr["bn2_mean"], lyr["bn2_var"])
        y = jax.nn.relu(_conv_ref(h, lyr["w2"], b2, 0, scale=s2) + y)
    w = jnp.flip(params["ct1_w"], axis=(2, 3)).transpose(1, 0, 2, 3)
    y = jax.nn.relu(_conv_ref(y, w, params["ct1_b"], 2, lhs_dil=2))
    w = jnp.flip(params["ct2_w"], axis=(2, 3)).transpose(1, 0, 2, 3)
    return jax.nn.sigmoid(_conv_ref(y, w, params["ct2_b"], 2, lhs_dil=2))


# ----------------------------------------------------------------------------
# Deterministic parameter init (shapes follow the PyTorch __init__)
# ----------------------------------------------------------------------------
def init_params(key, in_channels, num_hiddens, num_res_hiddens,
                num_res_layers, out_channels):
    def nxt():
        nonlocal key
        key, sub = jax.random.split(key)
        return sub

    def nrm(shape, s=0.1):
        return (s * jax.random.normal(nxt(), shape)).astype(jnp.float32)

    p = {
        "conv1_w": nrm((num_hiddens, in_channels, 3, 3)),
        "conv1_b": nrm((num_hiddens,)),
        "res": [],
        "ct1_w": nrm((num_hiddens, num_hiddens // 2, 4, 4)),
        "ct1_b": nrm((num_hiddens // 2,)),
        "ct2_w": nrm((num_hiddens // 2, out_channels, 4, 4)),
        "ct2_b": nrm((out_channels,)),
    }
    for _ in range(num_res_layers):
        p["res"].append({
            "w1": nrm((num_res_hiddens, num_hiddens, 3, 3)),
            "bn1_gamma": 1.0 + nrm((num_res_hiddens,)),
            "bn1_beta": nrm((num_res_hiddens,)),
            "bn1_mean": nrm((num_res_hiddens,)),
            "bn1_var": 0.5 + jax.random.uniform(nxt(), (num_res_hiddens,)),
            "w2": nrm((num_hiddens, num_res_hiddens, 1, 1)),
            "bn2_gamma": 1.0 + nrm((num_hiddens,)),
            "bn2_beta": nrm((num_hiddens,)),
            "bn2_mean": nrm((num_hiddens,)),
            "bn2_var": 0.5 + jax.random.uniform(nxt(), (num_hiddens,)),
        })
    return p


if __name__ == "__main__":
    in_channels, num_hiddens = 8, 32
    num_res_hiddens, num_res_layers, out_channels = 16, 2, 3
    batch, spatial = 2, 8

    key = jax.random.PRNGKey(0)
    kp, kx = jax.random.split(key)
    params = init_params(kp, in_channels, num_hiddens, num_res_hiddens,
                         num_res_layers, out_channels)
    x = jax.random.normal(kx, (batch, in_channels, spatial, spatial),
                          jnp.float32)

    fwd = jax.jit(res_decoder_forward)
    out = jax.block_until_ready(fwd(x, params))
    assert out.shape == (batch, out_channels, 4 * spatial, 4 * spatial), out.shape

    ref = jax.block_until_ready(res_decoder_ref(x, params))
    max_err = float(jnp.max(jnp.abs(out - ref)))
    assert jnp.allclose(out, ref, atol=3e-3, rtol=3e-3), max_err

    print("KERNEL_OK")
</pallas_src>

<mosaic_0001>
module attributes {stable_mosaic.version = 11 : i64} {
  func.func @kernel(%arg0: i32, %arg1: memref<1x8x278xf32, #tpu.memory_space<vmem>>, %arg2: memref<32x72xf32, #tpu.memory_space<vmem>>, %arg3: memref<32x1xf32, #tpu.memory_space<vmem>>, %arg4: memref<2x16x288xf32, #tpu.memory_space<vmem>>, %arg5: memref<2x16x1xf32, #tpu.memory_space<vmem>>, %arg6: memref<2x32x16xf32, #tpu.memory_space<vmem>>, %arg7: memref<2x32x1xf32, #tpu.memory_space<vmem>>, %arg8: memref<64x288xf32, #tpu.memory_space<vmem>>, %arg9: memref<64x1xf32, #tpu.memory_space<vmem>>, %arg10: memref<48x576xf32, #tpu.memory_space<vmem>>, %arg11: memref<48x1xf32, #tpu.memory_space<vmem>>, %arg12: memref<1x128xf32, #tpu.memory_space<vmem>>, %arg13: memref<1x48x128xf32, #tpu.memory_space<vmem>>, %arg14: memref<64x278xf32, #tpu.memory_space<vmem>>, %arg15: memref<576x128xf32, #tpu.memory_space<vmem>>) attributes {dimension_semantics = [#tpu.dimension_semantics<parallel>], iteration_bounds = array<i64: 2>, scalar_prefetch = 0 : i64, scratch_operands = 2 : i64, tpu.core_type = #tpu.core_type<tc>, window_params = [{transform_indices = @transform_0, window_bounds = array<i64: 1, 8, 278>}, {pipeline_mode = #tpu.pipeline_mode<synchronous>, transform_indices = @transform_1, window_bounds = array<i64: 32, 72>}, {pipeline_mode = #tpu.pipeline_mode<synchronous>, transform_indices = @transform_2, window_bounds = array<i64: 32, 1>}, {pipeline_mode = #tpu.pipeline_mode<synchronous>, transform_indices = @transform_3, window_bounds = array<i64: 2, 16, 288>}, {pipeline_mode = #tpu.pipeline_mode<synchronous>, transform_indices = @transform_4, window_bounds = array<i64: 2, 16, 1>}, {pipeline_mode = #tpu.pipeline_mode<synchronous>, transform_indices = @transform_5, window_bounds = array<i64: 2, 32, 16>}, {pipeline_mode = #tpu.pipeline_mode<synchronous>, transform_indices = @transform_6, window_bounds = array<i64: 2, 32, 1>}, {pipeline_mode = #tpu.pipeline_mode<synchronous>, transform_indices = @transform_7, window_bounds = array<i64: 64, 288>}, {pipeline_mode = #tpu.pipeline_mode<synchronous>, transform_indices = @transform_8, window_bounds = array<i64: 64, 1>}, {pipeline_mode = #tpu.pipeline_mode<synchronous>, transform_indices = @transform_9, window_bounds = array<i64: 48, 576>}, {pipeline_mode = #tpu.pipeline_mode<synchronous>, transform_indices = @transform_10, window_bounds = array<i64: 48, 1>}, {pipeline_mode = #tpu.pipeline_mode<synchronous>, transform_indices = @transform_11, window_bounds = array<i64: 1, 128>}, {transform_indices = @transform_12, window_bounds = array<i64: 1, 48, 128>}]} {
    %c0 = arith.constant 0 : index
    %c0_0 = arith.constant 0 : index
    %0 = vector.load %arg12[%c0, %c0_0] : memref<1x128xf32, #tpu.memory_space<vmem>>, vector<1x128xf32>
    %cst = arith.constant 0.000000e+00 : f32
    %1 = vector.broadcast %cst : f32 to vector<64x278xf32>
    %c0_1 = arith.constant 0 : index
    %c0_2 = arith.constant 0 : index
    %2 = vector.load %arg14[%c0_1, %c0_2] : memref<64x278xf32, #tpu.memory_space<vmem>>, vector<64x278xf32>
    tpu.vector_store %arg14[%c0_1, %c0_2], %1 {strides = array<i32>} : memref<64x278xf32, #tpu.memory_space<vmem>>, vector<64x278xf32>,
    %c0_3 = arith.constant 0 : index
    %c0_4 = arith.constant 0 : index
    %3 = vector.load %arg2[%c0_3, %c0_4] : memref<32x72xf32, #tpu.memory_space<vmem>>, vector<32x72xf32>
    %c0_5 = arith.constant 0 : index
    %c0_6 = arith.constant 0 : index
    %4 = vector.load %arg3[%c0_5, %c0_6] : memref<32x1xf32, #tpu.memory_space<vmem>>, vector<32x1xf32>
    %c0_7 = arith.constant 0 : index
    %c0_8 = arith.constant 0 : index
    %c117 = arith.constant 117 : index
    %5 = vector.load %arg1[%c0_7, %c0_8, %c117] : memref<1x8x278xf32, #tpu.memory_space<vmem>>, vector<1x8x128xf32>
    %6 = vector.shape_cast %5 : vector<1x8x128xf32> to vector<8x128xf32>
    %c0_9 = arith.constant 0 : index
    %c0_10 = arith.constant 0 : index
    %7 = vector.load %arg15[%c0_9, %c0_10] : memref<576x128xf32, #tpu.memory_space<vmem>>, vector<8x128xf32>
    tpu.vector_store %arg15[%c0_9, %c0_10], %6 {strides = array<i32>} : memref<576x128xf32, #tpu.memory_space<vmem>>, vector<8x128xf32>,
    %c0_11 = arith.constant 0 : index
    %c0_12 = arith.constant 0 : index
    %c118 = arith.constant 118 : index
    %8 = vector.load %arg1[%c0_11, %c0_12, %c118] : memref<1x8x278xf32, #tpu.memory_space<vmem>>, vector<1x8x128xf32>
    %9 = vector.shape_cast %8 : vector<1x8x128xf32> to vector<8x128xf32>
    %c8 = arith.constant 8 : index
    %c0_13 = arith.constant 0 : index
    %10 = vector.load %arg15[%c8, %c0_13] : memref<576x128xf32, #tpu.memory_space<vmem>>, vector<8x128xf32>
    tpu.vector_store %arg15[%c8, %c0_13], %9 {strides = array<i32>} : memref<576x128xf32, #tpu.memory_space<vmem>>, vector<8x128xf32>,
    %c0_14 = arith.constant 0 : index
    %c0_15 = arith.constant 0 : index
    %c119 = arith.constant 119 : index
    %11 = vector.load %arg1[%c0_14, %c0_15, %c119] : memref<1x8x278xf32, #tpu.memory_space<vmem>>, vector<1x8x128xf32>
    %12 = vector.shape_cast %11 : vector<1x8x128xf32> to vector<8x128xf32>
    %c16 = arith.constant 16 : index
    %c0_16 = arith.constant 0 : index
    %13 = vector.load %arg15[%c16, %c0_16] : memref<576x128xf32, #tpu.memory_space<vmem>>, vector<8x128xf32>
    tpu.vector_store %arg15[%c16, %c0_16], %12 {strides = array<i32>} : memref<576x128xf32, #tpu.memory_space<vmem>>, vector<8x128xf32>,
    %c0_17 = arith.constant 0 : index
    %c0_18 = arith.constant 0 : index
    %c127 = arith.constant 127 : index
    %14 = vector.load %arg1[%c0_17, %c0_18, %c127] : memref<1x8x278xf32, #tpu.memory_space<vmem>>, vector<1x8x128xf32>
    %15 = vector.shape_cast %14 : vector<1x8x128xf32> to vector<8x128xf32>
    %c24 = arith.constant 24 : index
    %c0_19 = arith.constant 0 : index
    %16 = vector.load %arg15[%c24, %c0_19] : memref<576x128xf32, #tpu.memory_space<vmem>>, vector<8x128xf32>
    tpu.vector_store %arg15[%c24, %c0_19], %15 {strides = array<i32>} : memref<576x128xf32, #tpu.memory_space<vmem>>, vector<8x128xf32>,
    %c0_20 = arith.constant 0 : index
    %c0_21 = arith.constant 0 : index
    %c128 = arith.constant 128 : index
    %17 = vector.load %arg1[%c0_20, %c0_21, %c128] : memref<1x8x278xf32, #tpu.memory_space<vmem>>, vector<1x8x128xf32>
    %18 = vector.shape_cast %17 : vector<1x8x128xf32> to vector<8x128xf32>
    %c32 = arith.constant 32 : index
    %c0_22 = arith.constant 0 : index
    %19 = vector.load %arg15[%c32, %c0_22] : memref<576x128xf32, #tpu.memory_space<vmem>>, vector<8x128xf32>
    tpu.vector_store %arg15[%c32, %c0_22], %18 {strides = array<i32>} : memref<576x128xf32, #tpu.memory_space<vmem>>, vector<8x128xf32>,
    %c0_23 = arith.constant 0 : index
    %c0_24 = arith.constant 0 : index
    %c129 = arith.constant 129 : index
    %20 = vector.load %arg1[%c0_23, %c0_24, %c129] : memref<1x8x278xf32, #tpu.memory_space<vmem>>, vector<1x8x128xf32>
    %21 = vector.shape_cast %20 : vector<1x8x128xf32> to vector<8x128xf32>
    %c40 = arith.constant 40 : index
    %c0_25 = arith.constant 0 : index
    %22 = vector.load %arg15[%c40, %c0_25] : memref<576x128xf32, #tpu.memory_space<vmem>>, vector<8x128xf32>
    tpu.vector_store %arg15[%c40, %c0_25], %21 {strides = array<i32>} : memref<576x128xf32, #tpu.memory_space<vmem>>, vector<8x128xf32>,
    %c0_26 = arith.constant 0 : index
    %c0_27 = arith.constant 0 : index
    %c137 = arith.constant 137 : index
    %23 = vector.load %arg1[%c0_26, %c0_27, %c137] : memref<1x8x278xf32, #tpu.memory_space<vmem>>, vector<1x8x128xf32>
    %24 = vector.shape_cast %23 : vector<1x8x128xf32> to vector<8x128xf32>
    %c48 = arith.constant 48 : index
    %c0_28 = arith.constant 0 : index
    %25 = vector.load %arg15[%c48, %c0_28] : memref<576x128xf32, #tpu.memory_space<vmem>>, vector<8x128xf32>
    tpu.vector_store %arg15[%c48, %c0_28], %24 {strides = array<i32>} : memref<576x128xf32, #tpu.memory_space<vmem>>, vector<8x128xf32>,
    %c0_29 = arith.constant 0 : index
    %c0_30 = arith.constant 0 : index
    %c138 = arith.constant 138 : index
    %26 = vector.load %arg1[%c0_29, %c0_30, %c138] : memref<1x8x278xf32, #tpu.memory_space<vmem>>, vector<1x8x128xf32>
    %27 = vector.shape_cast %26 : vector<1x8x128xf32> to vector<8x128xf32>
    %c56 = arith.constant 56 : index
    %c0_31 = arith.constant 0 : index
    %28 = vector.load %arg15[%c56, %c0_31] : memref<576x128xf32, #tpu.memory_space<vmem>>, vector<8x128xf32>
    tpu.vector_store %arg15[%c56, %c0_31], %27 {strides = array<i32>} : memref<576x128xf32, #tpu.memory_space<vmem>>, vector<8x128xf32>,
    %c0_32 = arith.constant 0 : index
    %c0_33 = arith.constant 0 : index
    %c139 = arith.constant 139 : index
    %29 = vector.load %arg1[%c0_32, %c0_33, %c139] : memref<1x8x278xf32, #tpu.memory_space<vmem>>, vector<1x8x128xf32>
    %30 = vector.shape_cast %29 : vector<1x8x128xf32> to vector<8x128xf32>
    %c64 = arith.constant 64 : index
    %c0_34 = arith.constant 0 : index
    %31 = vector.load %arg15[%c64, %c0_34] : memref<576x128xf32, #tpu.memory_space<vmem>>, vector<8x128xf32>
    tpu.vector_store %arg15[%c64, %c0_34], %30 {strides = array<i32>} : memref<576x128xf32, #tpu.memory_space<vmem>>, vector<8x128xf32>,
    %c0_35 = arith.constant 0 : index
    %c0_36 = arith.constant 0 : index
    %32 = vector.load %arg15[%c0_35, %c0_36] : memref<576x128xf32, #tpu.memory_space<vmem>>, vector<72x128xf32>
    %cst_37 = arith.constant dense<0.000000e+00> : vector<32x128xf32>
    %33 = tpu.matmul %3, %32, %cst_37 {dimension_numbers = #tpu.dot_dimension_numbers<[1], [0], [0], [1], [0, 0, 1, 1], [], []>} : vector<32x72xf32>, vector<72x128xf32>, vector<32x128xf32> -> vector<32x128xf32>
    %34 = vector.broadcast %4 : vector<32x1xf32> to vector<32x128xf32>
    %35 = arith.addf %33, %34 : vector<32x128xf32>
    %cst_38 = arith.constant 0.000000e+00 : f32
    %36 = vector.broadcast %cst_38 : f32 to vector<32x128xf32>
    %37 = arith.maximumf %35, %36 : vector<32x128xf32>
    %38 = vector.broadcast %0 : vector<1x128xf32> to vector<32x128xf32>
    %39 = arith.mulf %37, %38 : vector<32x128xf32>
    %c0_39 = arith.constant 0 : index
    %c128_40 = arith.constant 128 : index
    %40 = vector.load %arg14[%c0_39, %c128_40] : memref<64x278xf32, #tpu.memory_space<vmem>>, vector<32x128xf32>
    tpu.vector_store %arg14[%c0_39, %c128_40], %39 {strides = array<i32>} : memref<64x278xf32, #tpu.memory_space<vmem>>, vector<32x128xf32>,
    %c0_41 = arith.constant 0 : index
    %c0_42 = arith.constant 0 : index
    %c0_43 = arith.constant 0 : index
    %41 = vector.load %arg4[%c0_41, %c0_42, %c0_43] : memref<2x16x288xf32, #tpu.memory_space<vmem>>, vector<1x16x288xf32>
    %42 = vector.shape_cast %41 : vector<1x16x288xf32> to vector<16x288xf32>
    %c0_44 = arith.constant 0 : index
    %c0_45 = arith.constant 0 : index
    %c0_46 = arith.constant 0 : index
    %43 = vector.load %arg5[%c0_44, %c0_45, %c0_46] : memref<2x16x1xf32, #tpu.memory_space<vmem>>, vector<1x16x1xf32>
    %44 = vector.shape_cast %43 : vector<1x16x1xf32> to vector<16x1xf32>
    %c0_47 = arith.constant 0 : index
    %c117_48 = arith.constant 117 : index
    %45 = vector.load %arg14[%c0_47, %c117_48] : memref<64x278xf32, #tpu.memory_space<vmem>>, vector<32x128xf32>
    %c0_49 = arith.constant 0 : index
    %c0_50 = arith.constant 0 : index
    %46 = vector.load %arg15[%c0_49, %c0_50] : memref<576x128xf32, #tpu.memory_space<vmem>>, vector<32x128xf32>
    tpu.vector_store %arg15[%c0_49, %c0_50], %45 {strides = array<i32>} : memref<576x128xf32, #tpu.memory_space<vmem>>, vector<32x128xf32>,
    %c0_51 = arith.constant 0 : index
    %c118_52 = arith.constant 118 : index
    %47 = vector.load %arg14[%c0_51, %c118_52] : memref<64x278xf32, #tpu.memory_space<vmem>>, vector<32x128xf32>
    %c32_53 = arith.constant 32 : index
    %c0_54 = arith.constant 0 : index
    %48 = vector.load %arg15[%c32_53, %c0_54] : memref<576x128xf32, #tpu.memory_space<vmem>>, vector<32x128xf32>
    tpu.vector_store %arg15[%c32_53, %c0_54], %47 {strides = array<i32>} : memref<576x128xf32, #tpu.memory_space<vmem>>, vector<32x128xf32>,
    %c0_55 = arith.constant 0 : index
    %c119_56 = arith.constant 119 : index
    %49 = vector.load %arg14[%c0_55, %c119_56] : memref<64x278xf32, #tpu.memory_space<vmem>>, vector<32x128xf32>
    %c64_57 = arith.constant 64 : index
    %c0_58 = arith.constant 0 : index
    %50 = vector.load %arg15[%c64_57, %c0_58] : memref<576x128xf32, #tpu.memory_space<vmem>>, vector<32x128xf32>
    tpu.vector_store %arg15[%c64_57, %c0_58], %49 {strides = array<i32>} : memref<576x128xf32, #tpu.memory_space<vmem>>, vector<32x128xf32>,
    %c0_59 = arith.constant 0 : index
    %c127_60 = arith.constant 127 : index
    %51 = vector.load %arg14[%c0_59, %c127_60] : memref<64x278xf32, #tpu.memory_space<vmem>>, vector<32x128xf32>
    %c96 = arith.constant 96 : index
    %c0_61 = arith.constant 0 : index
    %52 = vector.load %arg15[%c96, %c0_61] : memref<576x128xf32, #tpu.memory_space<vmem>>, vector<32x128xf32>
    tpu.vector_store %arg15[%c96, %c0_61], %51 {strides = array<i32>} : memref<576x128xf32, #tpu.memory_space<vmem>>, vector<32x128xf32>,
    %c0_62 = arith.constant 0 : index
    %c128_63 = arith.constant 128 : index
    %53 = vector.load %arg14[%c0_62, %c128_63] : memref<64x278xf32, #tpu.memory_space<vmem>>, vector<32x128xf32>
    %c128_64 = arith.constant 128 : index
    %c0_65 = arith.constant 0 : index
    %54 = vector.load %arg15[%c128_64, %c0_65] : memref<576x128xf32, #tpu.memory_space<vmem>>, vector<32x128xf32>
    tpu.vector_store %arg15[%c128_64, %c0_65], %53 {strides = array<i32>} : memref<576x128xf32, #tpu.memory_space<vmem>>, vector<32x128xf32>,
    %c0_66 = arith.constant 0 : index
    %c129_67 = arith.constant 129 : index
    %55 = vector.load %arg14[%c0_66, %c129_67] : memref<64x278xf32, #tpu.memory_space<vmem>>, vector<32x128xf32>
    %c160 = arith.constant 160 : index
    %c0_68 = arith.constant 0 : index
    %56 = vector.load %arg15[%c160, %c0_68] : memref<576x128xf32, #tpu.memory_space<vmem>>, vector<32x128xf32>
    tpu.vector_store %arg15[%c160, %c0_68], %55 {strides = array<i32>} : memref<576x128xf32, #tpu.memory_space<vmem>>, vector<32x128xf32>,
    %c0_69 = arith.constant 0 : index
    %c137_70 = arith.constant 137 : index
    %57 = vector.load %arg14[%c0_69, %c137_70] : memref<64x278xf32, #tpu.memory_space<vmem>>, vector<32x128xf32>
    %c192 = arith.constant 192 : index
    %c0_71 = arith.constant 0 : index
    %58 = vector.load %arg15[%c192, %c0_71] : memref<576x128xf32, #tpu.memory_space<vmem>>, vector<32x128xf32>
    tpu.vector_store %arg15[%c192, %c0_71], %57 {strides = array<i32>} : memref<576x128xf32, #tpu.memory_space<vmem>>, vector<32x128xf32>,
    %c0_72 = arith.constant 0 : index
    %c138_73 = arith.constant 138 : index
    %59 = vector.load %arg14[%c0_72, %c138_73] : memref<64x278xf32, #tpu.memory_space<vmem>>, vector<32x128xf32>
    %c224 = arith.constant 224 : index
    %c0_74 = arith.constant 0 : index
    %60 = vector.load %arg15[%c224, %c0_74] : memref<576x128xf32, #tpu.memory_space<vmem>>, vector<32x128xf32>
    tpu.vector_store %arg15[%c224, %c0_74], %59 {strides = array<i32>} : memref<576x128xf32, #tpu.memory_space<vmem>>, vector<32x128xf32>,
    %c0_75 = arith.constant 0 : index
    %c139_76 = arith.constant 139 : index
    %61 = vector.load %arg14[%c0_75, %c139_76] : memref<64x278xf32, #tpu.memory_space<vmem>>, vector<32x128xf32>
    %c256 = arith.constant 256 : index
    %c0_77 = arith.constant 0 : index
    %62 = vector.load %arg15[%c256, %c0_77] : memref<576x128xf32, #tpu.memory_space<vmem>>, vector<32x128xf32>
    tpu.vector_store %arg15[%c256, %c0_77], %61 {strides = array<i32>} : memref<576x128xf32, #tpu.memory_space<vmem>>, vector<32x128xf32>,
    %c0_78 = arith.constant 0 : index
    %c0_79 = arith.constant 0 : index
    %63 = vector.load %arg15[%c0_78, %c0_79] : memref<576x128xf32, #tpu.memory_space<vmem>>, vector<288x128xf32>
    %cst_80 = arith.constant dense<0.000000e+00> : vector<16x128xf32>
    %64 = tpu.matmul %42, %63, %cst_80 {dimension_numbers = #tpu.dot_dimension_numbers<[1], [0], [0], [1], [0, 0, 1, 1], [], []>} : vector<16x288xf32>, vector<288x128xf32>, vector<16x128xf32> -> vector<16x128xf32>
    %65 = vector.broadcast %44 : vector<16x1xf32> to vector<16x128xf32>
    %66 = arith.addf %64, %65 : vector<16x128xf32>
    %cst_81 = arith.constant 0.000000e+00 : f32
    %67 = vector.broadcast %cst_81 : f32 to vector<16x128xf32>
    %68 = arith.maximumf %66, %67 : vector<16x128xf32>
    %c0_82 = arith.constant 0 : index
    %c128_83 = arith.constant 128 : index
    %69 = vector.load %arg14[%c0_82, %c128_83] : memref<64x278xf32, #tpu.memory_space<vmem>>, vector<32x128xf32>
    %c0_84 = arith.constant 0 : index
    %c0_85 = arith.constant 0 : index
    %c0_86 = arith.constant 0 : index
    %70 = vector.load %arg6[%c0_84, %c0_85, %c0_86] : memref<2x32x16xf32, #tpu.memory_space<vmem>>, vector<1x32x16xf32>
    %71 = vector.shape_cast %70 : vector<1x32x16xf32> to vector<32x16xf32>
    %cst_87 = arith.constant dense<0.000000e+00> : vector<32x128xf32>
    %72 = tpu.matmul %71, %68, %cst_87 {dimension_numbers = #tpu.dot_dimension_numbers<[1], [0], [0], [1], [0, 0, 1, 1], [], []>} : vector<32x16xf32>, vector<16x128xf32>, vector<32x128xf32> -> vector<32x128xf32>
    %c0_88 = arith.constant 0 : index
    %c0_89 = arith.constant 0 : index
    %c0_90 = arith.constant 0 : index
    %73 = vector.load %arg7[%c0_88, %c0_89, %c0_90] : memref<2x32x1xf32, #tpu.memory_space<vmem>>, vector<1x32x1xf32>
    %74 = vector.shape_cast %73 : vector<1x32x1xf32> to vector<32x1xf32>
    %75 = vector.broadcast %74 : vector<32x1xf32> to vector<32x128xf32>
    %76 = arith.addf %72, %75 : vector<32x128xf32>
    %77 = arith.addf %76, %69 : vector<32x128xf32>
    %cst_91 = arith.constant 0.000000e+00 : f32
    %78 = vector.broadcast %cst_91 : f32 to vector<32x128xf32>
    %79 = arith.maximumf %77, %78 : vector<32x128xf32>
    %80 = vector.broadcast %0 : vector<1x128xf32> to vector<32x128xf32>
    %81 = arith.mulf %79, %80 : vector<32x128xf32>
    %c0_92 = arith.constant 0 : index
    %c128_93 = arith.constant 128 : index
    %82 = vector.load %arg14[%c0_92, %c128_93] : memref<64x278xf32, #tpu.memory_space<vmem>>, vector<32x128xf32>
    tpu.vector_store %arg14[%c0_92, %c128_93], %81 {strides = array<i32>} : memref<64x278xf32, #tpu.memory_space<vmem>>, vector<32x128xf32>,
    %c1 = arith.constant 1 : index
    %c0_94 = arith.constant 0 : index
    %c0_95 = arith.constant 0 : index
    %83 = vector.load %arg4[%c1, %c0_94, %c0_95] : memref<2x16x288xf32, #tpu.memory_space<vmem>>, vector<1x16x288xf32>
    %84 = vector.shape_cast %83 : vector<1x16x288xf32> to vector<16x288xf32>
    %c1_96 = arith.constant 1 : index
    %c0_97 = arith.constant 0 : index
    %c0_98 = arith.constant 0 : index
    %85 = vector.load %arg5[%c1_96, %c0_97, %c0_98] : memref<2x16x1xf32, #tpu.memory_space<vmem>>, vector<1x16x1xf32>
    %86 = vector.shape_cast %85 : vector<1x16x1xf32> to vector<16x1xf32>
    %c0_99 = arith.constant 0 : index
    %c117_100 = arith.constant 117 : index
    %87 = vector.load %arg14[%c0_99, %c117_100] : memref<64x278xf32, #tpu.memory_space<vmem>>, vector<32x128xf32>
    %c0_101 = arith.constant 0 : index
    %c0_102 = arith.constant 0 : index
    %88 = vector.load %arg15[%c0_101, %c0_102] : memref<576x128xf32, #tpu.memory_space<vmem>>, vector<32x128xf32>
    tpu.vector_store %arg15[%c0_101, %c0_102], %87 {strides = array<i32>} : memref<576x128xf32, #tpu.memory_space<vmem>>, vector<32x128xf32>,
    %c0_103 = arith.constant 0 : index
    %c118_104 = arith.constant 118 : index
    %89 = vector.load %arg14[%c0_103, %c118_104] : memref<64x278xf32, #tpu.memory_space<vmem>>, vector<32x128xf32>
    %c32_105 = arith.constant 32 : index
    %c0_106 = arith.constant 0 : index
    %90 = vector.load %arg15[%c32_105, %c0_106] : memref<576x128xf32, #tpu.memory_space<vmem>>, vector<32x128xf32>
    tpu.vector_store %arg15[%c32_105, %c0_106], %89 {strides = array<i32>} : memref<576x128xf32, #tpu.memory_space<vmem>>, vector<32x128xf32>,
    %c0_107 = arith.constant 0 : index
    %c119_108 = arith.constant 119 : index
    %91 = vector.load %arg14[%c0_107, %c119_108] : memref<64x278xf32, #tpu.memory_space<vmem>>, vector<32x128xf32>
    %c64_109 = arith.constant 64 : index
    %c0_110 = arith.constant 0 : index
    %92 = vector.load %arg15[%c64_109, %c0_110] : memref<576x128xf32, #tpu.memory_space<vmem>>, vector<32x128xf32>
    tpu.vector_store %arg15[%c64_109, %c0_110], %91 {strides = array<i32>} : memref<576x128xf32, #tpu.memory_space<vmem>>, vector<32x128xf32>,
    %c0_111 = arith.constant 0 : index
    %c127_112 = arith.constant 127 : index
    %93 = vector.load %arg14[%c0_111, %c127_112] : memref<64x278xf32, #tpu.memory_space<vmem>>, vector<32x128xf32>
    %c96_113 = arith.constant 96 : index
    %c0_114 = arith.constant 0 : index
    %94 = vector.load %arg15[%c96_113, %c0_114] : memref<576x128xf32, #tpu.memory_space<vmem>>, vector<32x128xf32>
    tpu.vector_store %arg15[%c96_113, %c0_114], %93 {strides = array<i32>} : memref<576x128xf32, #tpu.memory_space<vmem>>, vector<32x128xf32>,
    %c0_115 = arith.constant 0 : index
    %c128_116 = arith.constant 128 : index
    %95 = vector.load %arg14[%c0_115, %c128_116] : memref<64x278xf32, #tpu.memory_space<vmem>>, vector<32x128xf32>
    %c128_117 = arith.constant 128 : index
    %c0_118 = arith.constant 0 : index
    %96 = vector.load %arg15[%c128_117, %c0_118] : memref<576x128xf32, #tpu.memory_space<vmem>>, vector<32x128xf32>
    tpu.vector_store %arg15[%c128_117, %c0_118], %95 {strides = array<i32>} : memref<576x128xf32, #tpu.memory_space<vmem>>, vector<32x128xf32>,
    %c0_119 = arith.constant 0 : index
    %c129_120 = arith.constant 129 : index
    %97 = vector.load %arg14[%c0_119, %c129_120] : memref<64x278xf32, #tpu.memory_space<vmem>>, vector<32x128xf32>
    %c160_121 = arith.constant 160 : index
    %c0_122 = arith.constant 0 : index
    %98 = vector.load %arg15[%c160_121, %c0_122] : memref<576x128xf32, #tpu.memory_space<vmem>>, vector<32x128xf32>
    tpu.vector_store %arg15[%c160_121, %c0_122], %97 {strides = array<i32>} : memref<576x128xf32, #tpu.memory_space<vmem>>, vector<32x128xf32>,
    %c0_123 = arith.constant 0 : index
    %c137_124 = arith.constant 137 : index
    %99 = vector.load %arg14[%c0_123, %c137_124] : memref<64x278xf32, #tpu.memory_space<vmem>>, vector<32x128xf32>
    %c192_125 = arith.constant 192 : index
    %c0_126 = arith.constant 0 : index
    %100 = vector.load %arg15[%c192_125, %c0_126] : memref<576x128xf32, #tpu.memory_space<vmem>>, vector<32x128xf32>
    tpu.vector_store %arg15[%c192_125, %c0_126], %99 {strides = array<i32>} : memref<576x128xf32, #tpu.memory_space<vmem>>, vector<32x128xf32>,
    %c0_127 = arith.constant 0 : index
    %c138_128 = arith.constant 138 : index
    %101 = vector.load %arg14[%c0_127, %c138_128] : memref<64x278xf32, #tpu.memory_space<vmem>>, vector<32x128xf32>
    %c224_129 = arith.constant 224 : index
    %c0_130 = arith.constant 0 : index
    %102 = vector.load %arg15[%c224_129, %c0_130] : memref<576x128xf32, #tpu.memory_space<vmem>>, vector<32x128xf32>
    tpu.vector_store %arg15[%c224_129, %c0_130], %101 {strides = array<i32>} : memref<576x128xf32, #tpu.memory_space<vmem>>, vector<32x128xf32>,
    %c0_131 = arith.constant 0 : index
    %c139_132 = arith.constant 139 : index
    %103 = vector.load %arg14[%c0_131, %c139_132] : memref<64x278xf32, #tpu.memory_space<vmem>>, vector<32x128xf32>
    %c256_133 = arith.constant 256 : index
    %c0_134 = arith.constant 0 : index
    %104 = vector.load %arg15[%c256_133, %c0_134] : memref<576x128xf32, #tpu.memory_space<vmem>>, vector<32x128xf32>
    tpu.vector_store %arg15[%c256_133, %c0_134], %103 {strides = array<i32>} : memref<576x128xf32, #tpu.memory_space<vmem>>, vector<32x128xf32>,
    %c0_135 = arith.constant 0 : index
    %c0_136 = arith.constant 0 : index
    %105 = vector.load %arg15[%c0_135, %c0_136] : memref<576x128xf32, #tpu.memory_space<vmem>>, vector<288x128xf32>
    %cst_137 = arith.constant dense<0.000000e+00> : vector<16x128xf32>
    %106 = tpu.matmul %84, %105, %cst_137 {dimension_numbers = #tpu.dot_dimension_numbers<[1], [0], [0], [1], [0, 0, 1, 1], [], []>} : vector<16x288xf32>, vector<288x128xf32>, vector<16x128xf32> -> vector<16x128xf32>
    %107 = vector.broadcast %86 : vector<16x1xf32> to vector<16x128xf32>
    %108 = arith.addf %106, %107 : vector<16x128xf32>
    %cst_138 = arith.constant 0.000000e+00 : f32
    %109 = vector.broadcast %cst_138 : f32 to vector<16x128xf32>
    %110 = arith.maximumf %108, %109 : vector<16x128xf32>
    %c0_139 = arith.constant 0 : index
    %c128_140 = arith.constant 128 : index
    %111 = vector.load %arg14[%c0_139, %c128_140] : memref<64x278xf32, #tpu.memory_space<vmem>>, vector<32x128xf32>
    %c1_141 = arith.constant 1 : index
    %c0_142 = arith.constant 0 : index
    %c0_143 = arith.constant 0 : index
    %112 = vector.load %arg6[%c1_141, %c0_142, %c0_143] : memref<2x32x16xf32, #tpu.memory_space<vmem>>, vector<1x32x16xf32>
    %113 = vector.shape_cast %112 : vector<1x32x16xf32> to vector<32x16xf32>
    %cst_144 = arith.constant dense<0.000000e+00> : vector<32x128xf32>
    %114 = tpu.matmul %113, %110, %cst_144 {dimension_numbers = #tpu.dot_dimension_numbers<[1], [0], [0], [1], [0, 0, 1, 1], [], []>} : vector<32x16xf32>, vector<16x128xf32>, vector<32x128xf32> -> vector<32x128xf32>
    %c1_145 = arith.constant 1 : index
    %c0_146 = arith.constant 0 : index
    %c0_147 = arith.constant 0 : index
    %115 = vector.load %arg7[%c1_145, %c0_146, %c0_147] : memref<2x32x1xf32, #tpu.memory_space<vmem>>, vector<1x32x1xf32>
    %116 = vector.shape_cast %115 : vector<1x32x1xf32> to vector<32x1xf32>
    %117 = vector.broadcast %116 : vector<32x1xf32> to vector<32x128xf32>
    %118 = arith.addf %114, %117 : vector<32x128xf32>
    %119 = arith.addf %118, %111 : vector<32x128xf32>
    %cst_148 = arith.constant 0.000000e+00 : f32
    %120 = vector.broadcast %cst_148 : f32 to vector<32x128xf32>
    %121 = arith.maximumf %119, %120 : vector<32x128xf32>
    %122 = vector.broadcast %0 : vector<1x128xf32> to vector<32x128xf32>
    %123 = arith.mulf %121, %122 : vector<32x128xf32>
    %c0_149 = arith.constant 0 : index
    %c128_150 = arith.constant 128 : index
    %124 = vector.load %arg14[%c0_149, %c128_150] : memref<64x278xf32, #tpu.memory_space<vmem>>, vector<32x128xf32>
    tpu.vector_store %arg14[%c0_149, %c128_150], %123 {strides = array<i32>} : memref<64x278xf32, #tpu.memory_space<vmem>>, vector<32x128xf32>,
    %c0_151 = arith.constant 0 : index
    %c0_152 = arith.constant 0 : index
    %125 = vector.load %arg8[%c0_151, %c0_152] : memref<64x288xf32, #tpu.memory_space<vmem>>, vector<64x288xf32>
    %c0_153 = arith.constant 0 : index
    %c0_154 = arith.constant 0 : index
    %126 = vector.load %arg9[%c0_153, %c0_154] : memref<64x1xf32, #tpu.memory_space<vmem>>, vector<64x1xf32>
    %c0_155 = arith.constant 0 : index
    %c117_156 = arith.constant 117 : index
    %127 = vector.load %arg14[%c0_155, %c117_156] : memref<64x278xf32, #tpu.memory_space<vmem>>, vector<32x128xf32>
    %c0_157 = arith.constant 0 : index
    %c0_158 = arith.constant 0 : index
    %128 = vector.load %arg15[%c0_157, %c0_158] : memref<576x128xf32, #tpu.memory_space<vmem>>, vector<32x128xf32>
    tpu.vector_store %arg15[%c0_157, %c0_158], %127 {strides = array<i32>} : memref<576x128xf32, #tpu.memory_space<vmem>>, vector<32x128xf32>,
    %c0_159 = arith.constant 0 : index
    %c118_160 = arith.constant 118 : index
    %129 = vector.load %arg14[%c0_159, %c118_160] : memref<64x278xf32, #tpu.memory_space<vmem>>, vector<32x128xf32>
    %c32_161 = arith.constant 32 : index
    %c0_162 = arith.constant 0 : index
    %130 = vector.load %arg15[%c32_161, %c0_162] : memref<576x128xf32, #tpu.memory_space<vmem>>, vector<32x128xf32>
    tpu.vector_store %arg15[%c32_161, %c0_162], %129 {strides = array<i32>} : memref<576x128xf32, #tpu.memory_space<vmem>>, vector<32x128xf32>,
    %c0_163 = arith.constant 0 : index
    %c119_164 = arith.constant 119 : index
    %131 = vector.load %arg14[%c0_163, %c119_164] : memref<64x278xf32, #tpu.memory_space<vmem>>, vector<32x128xf32>
    %c64_165 = arith.constant 64 : index
    %c0_166 = arith.constant 0 : index
    %132 = vector.load %arg15[%c64_165, %c0_166] : memref<576x128xf32, #tpu.memory_space<vmem>>, vector<32x128xf32>
    tpu.vector_store %arg15[%c64_165, %c0_166], %131 {strides = array<i32>} : memref<576x128xf32, #tpu.memory_space<vmem>>, vector<32x128xf32>,
    %c0_167 = arith.constant 0 : index
    %c127_168 = arith.constant 127 : index
    %133 = vector.load %arg14[%c0_167, %c127_168] : memref<64x278xf32, #tpu.memory_space<vmem>>, vector<32x128xf32>
    %c96_169 = arith.constant 96 : index
    %c0_170 = arith.constant 0 : index
    %134 = vector.load %arg15[%c96_169, %c0_170] : memref<576x128xf32, #tpu.memory_space<vmem>>, vector<32x128xf32>
    tpu.vector_store %arg15[%c96_169, %c0_170], %133 {strides = array<i32>} : memref<576x128xf32, #tpu.memory_space<vmem>>, vector<32x128xf32>,
    %c0_171 = arith.constant 0 : index
    %c128_172 = arith.constant 128 : index
    %135 = vector.load %arg14[%c0_171, %c128_172] : memref<64x278xf32, #tpu.memory_space<vmem>>, vector<32x128xf32>
    %c128_173 = arith.constant 128 : index
    %c0_174 = arith.constant 0 : index
    %136 = vector.load %arg15[%c128_173, %c0_174] : memref<576x128xf32, #tpu.memory_space<vmem>>, vector<32x128xf32>
    tpu.vector_store %arg15[%c128_173, %c0_174], %135 {strides = array<i32>} : memref<576x128xf32, #tpu.memory_space<vmem>>, vector<32x128xf32>,
    %c0_175 = arith.constant 0 : index
    %c129_176 = arith.constant 129 : index
    %137 = vector.load %arg14[%c0_175, %c129_176] : memref<64x278xf32, #tpu.memory_space<vmem>>, vector<32x128xf32>
    %c160_177 = arith.constant 160 : index
    %c0_178 = arith.constant 0 : index
    %138 = vector.load %arg15[%c160_177, %c0_178] : memref<576x128xf32, #tpu.memory_space<vmem>>, vector<32x128xf32>
    tpu.vector_store %arg15[%c160_177, %c0_178], %137 {strides = array<i32>} : memref<576x128xf32, #tpu.memory_space<vmem>>, vector<32x128xf32>,
    %c0_179 = arith.constant 0 : index
    %c137_180 = arith.constant 137 : index
    %139 = vector.load %arg14[%c0_179, %c137_180] : memref<64x278xf32, #tpu.memory_space<vmem>>, vector<32x128xf32>
    %c192_181 = arith.constant 192 : index
    %c0_182 = arith.constant 0 : index
    %140 = vector.load %arg15[%c192_181, %c0_182] : memref<576x128xf32, #tpu.memory_space<vmem>>, vector<32x128xf32>
    tpu.vector_store %arg15[%c192_181, %c0_182], %139 {strides = array<i32>} : memref<576x128xf32, #tpu.memory_space<vmem>>, vector<32x128xf32>,
    %c0_183 = arith.constant 0 : index
    %c138_184 = arith.constant 138 : index
    %141 = vector.load %arg14[%c0_183, %c138_184] : memref<64x278xf32, #tpu.memory_space<vmem>>, vector<32x128xf32>
    %c224_185 = arith.constant 224 : index
    %c0_186 = arith.constant 0 : index
    %142 = vector.load %arg15[%c224_185, %c0_186] : memref<576x128xf32, #tpu.memory_space<vmem>>, vector<32x128xf32>
    tpu.vector_store %arg15[%c224_185, %c0_186], %141 {strides = array<i32>} : memref<576x128xf32, #tpu.memory_space<vmem>>, vector<32x128xf32>,
    %c0_187 = arith.constant 0 : index
    %c139_188 = arith.constant 139 : index
    %143 = vector.load %arg14[%c0_187, %c139_188] : memref<64x278xf32, #tpu.memory_space<vmem>>, vector<32x128xf32>
    %c256_189 = arith.constant 256 : index
    %c0_190 = arith.constant 0 : index
    %144 = vector.load %arg15[%c256_189, %c0_190] : memref<576x128xf32, #tpu.memory_space<vmem>>, vector<32x128xf32>
    tpu.vector_store %arg15[%c256_189, %c0_190], %143 {strides = array<i32>} : memref<576x128xf32, #tpu.memory_space<vmem>>, vector<32x128xf32>,
    %c0_191 = arith.constant 0 : index
    %c0_192 = arith.constant 0 : index
    %145 = vector.load %arg15[%c0_191, %c0_192] : memref<576x128xf32, #tpu.memory_space<vmem>>, vector<288x128xf32>
    %cst_193 = arith.constant dense<0.000000e+00> : vector<64x128xf32>
    %146 = tpu.matmul %125, %145, %cst_193 {dimension_numbers = #tpu.dot_dimension_numbers<[1], [0], [0], [1], [0, 0, 1, 1], [], []>} : vector<64x288xf32>, vector<288x128xf32>, vector<64x128xf32> -> vector<64x128xf32>
    %147 = vector.broadcast %126 : vector<64x1xf32> to vector<64x128xf32>
    %148 = arith.addf %146, %147 : vector<64x128xf32>
    %cst_194 = arith.constant 0.000000e+00 : f32
    %149 = vector.broadcast %cst_194 : f32 to vector<64x128xf32>
    %150 = arith.maximumf %148, %149 : vector<64x128xf32>
    %151 = vector.broadcast %0 : vector<1x128xf32> to vector<64x128xf32>
    %152 = arith.mulf %150, %151 : vector<64x128xf32>
    %c0_195 = arith.constant 0 : index
    %c128_196 = arith.constant 128 : index
    %153 = vector.load %arg14[%c0_195, %c128_196] : memref<64x278xf32, #tpu.memory_space<vmem>>, vector<64x128xf32>
    tpu.vector_store %arg14[%c0_195, %c128_196], %152 {strides = array<i32>} : memref<64x278xf32, #tpu.memory_space<vmem>>, vector<64x128xf32>,
    %c0_197 = arith.constant 0 : index
    %c0_198 = arith.constant 0 : index
    %154 = vector.load %arg10[%c0_197, %c0_198] : memref<48x576xf32, #tpu.memory_space<vmem>>, vector<48x576xf32>
    %c0_199 = arith.constant 0 : index
    %c0_200 = arith.constant 0 : index
    %155 = vector.load %arg11[%c0_199, %c0_200] : memref<48x1xf32, #tpu.memory_space<vmem>>, vector<48x1xf32>
    %c0_201 = arith.constant 0 : index
    %c117_202 = arith.constant 117 : index
    %156 = vector.load %arg14[%c0_201, %c117_202] : memref<64x278xf32, #tpu.memory_space<vmem>>, vector<64x128xf32>
    %c0_203 = arith.constant 0 : index
    %c0_204 = arith.constant 0 : index
    %157 = vector.load %arg15[%c0_203, %c0_204] : memref<576x128xf32, #tpu.memory_space<vmem>>, vector<64x128xf32>
    tpu.vector_store %arg15[%c0_203, %c0_204], %156 {strides = array<i32>} : memref<576x128xf32, #tpu.memory_space<vmem>>, vector<64x128xf32>,
    %c0_205 = arith.constant 0 : index
    %c118_206 = arith.constant 118 : index
    %158 = vector.load %arg14[%c0_205, %c118_206] : memref<64x278xf32, #tpu.memory_space<vmem>>, vector<64x128xf32>
    %c64_207 = arith.constant 64 : index
    %c0_208 = arith.constant 0 : index
    %159 = vector.load %arg15[%c64_207, %c0_208] : memref<576x128xf32, #tpu.memory_space<vmem>>, vector<64x128xf32>
    tpu.vector_store %arg15[%c64_207, %c0_208], %158 {strides = array<i32>} : memref<576x128xf32, #tpu.memory_space<vmem>>, vector<64x128xf32>,
    %c0_209 = arith.constant 0 : index
    %c119_210 = arith.constant 119 : index
    %160 = vector.load %arg14[%c0_209, %c119_210] : memref<64x278xf32, #tpu.memory_space<vmem>>, vector<64x128xf32>
    %c128_211 = arith.constant 128 : index
    %c0_212 = arith.constant 0 : index
    %161 = vector.load %arg15[%c128_211, %c0_212] : memref<576x128xf32, #tpu.memory_space<vmem>>, vector<64x128xf32>
    tpu.vector_store %arg15[%c128_211, %c0_212], %160 {strides = array<i32>} : memref<576x128xf32, #tpu.memory_space<vmem>>, vector<64x128xf32>,
    %c0_213 = arith.constant 0 : index
    %c127_214 = arith.constant 127 : index
    %162 = vector.load %arg14[%c0_213, %c127_214] : memref<64x278xf32, #tpu.memory_space<vmem>>, vector<64x128xf32>
    %c192_215 = arith.constant 192 : index
    %c0_216 = arith.constant 0 : index
    %163 = vector.load %arg15[%c192_215, %c0_216] : memref<576x128xf32, #tpu.memory_space<vmem>>, vector<64x128xf32>
    tpu.vector_store %arg15[%c192_215, %c0_216], %162 {strides = array<i32>} : memref<576x128xf32, #tpu.memory_space<vmem>>, vector<64x128xf32>,
    %c0_217 = arith.constant 0 : index
    %c128_218 = arith.constant 128 : index
    %164 = vector.load %arg14[%c0_217, %c128_218] : memref<64x278xf32, #tpu.memory_space<vmem>>, vector<64x128xf32>
    %c256_219 = arith.constant 256 : index
    %c0_220 = arith.constant 0 : index
    %165 = vector.load %arg15[%c256_219, %c0_220] : memref<576x128xf32, #tpu.memory_space<vmem>>, vector<64x128xf32>
    tpu.vector_store %arg15[%c256_219, %c0_220], %164 {strides = array<i32>} : memref<576x128xf32, #tpu.memory_space<vmem>>, vector<64x128xf32>,
    %c0_221 = arith.constant 0 : index
    %c129_222 = arith.constant 129 : index
    %166 = vector.load %arg14[%c0_221, %c129_222] : memref<64x278xf32, #tpu.memory_space<vmem>>, vector<64x128xf32>
    %c320 = arith.constant 320 : index
    %c0_223 = arith.constant 0 : index
    %167 = vector.load %arg15[%c320, %c0_223] : memref<576x128xf32, #tpu.memory_space<vmem>>, vector<64x128xf32>
    tpu.vector_store %arg15[%c320, %c0_223], %166 {strides = array<i32>} : memref<576x128xf32, #tpu.memory_space<vmem>>, vector<64x128xf32>,
    %c0_224 = arith.constant 0 : index
    %c137_225 = arith.constant 137 : index
    %168 = vector.load %arg14[%c0_224, %c137_225] : memref<64x278xf32, #tpu.memory_space<vmem>>, vector<64x128xf32>
    %c384 = arith.constant 384 : index
    %c0_226 = arith.constant 0 : index
    %169 = vector.load %arg15[%c384, %c0_226] : memref<576x128xf32, #tpu.memory_space<vmem>>, vector<64x128xf32>
    tpu.vector_store %arg15[%c384, %c0_226], %168 {strides = array<i32>} : memref<576x128xf32, #tpu.memory_space<vmem>>, vector<64x128xf32>,
    %c0_227 = arith.constant 0 : index
    %c138_228 = arith.constant 138 : index
    %170 = vector.load %arg14[%c0_227, %c138_228] : memref<64x278xf32, #tpu.memory_space<vmem>>, vector<64x128xf32>
    %c448 = arith.constant 448 : index
    %c0_229 = arith.constant 0 : index
    %171 = vector.load %arg15[%c448, %c0_229] : memref<576x128xf32, #tpu.memory_space<vmem>>, vector<64x128xf32>
    tpu.vector_store %arg15[%c448, %c0_229], %170 {strides = array<i32>} : memref<576x128xf32, #tpu.memory_space<vmem>>, vector<64x128xf32>,
    %c0_230 = arith.constant 0 : index
    %c139_231 = arith.constant 139 : index
    %172 = vector.load %arg14[%c0_230, %c139_231] : memref<64x278xf32, #tpu.memory_space<vmem>>, vector<64x128xf32>
    %c512 = arith.constant 512 : index
    %c0_232 = arith.constant 0 : index
    %173 = vector.load %arg15[%c512, %c0_232] : memref<576x128xf32, #tpu.memory_space<vmem>>, vector<64x128xf32>
    tpu.vector_store %arg15[%c512, %c0_232], %172 {strides = array<i32>} : memref<576x128xf32, #tpu.memory_space<vmem>>, vector<64x128xf32>,
    %c0_233 = arith.constant 0 : index
    %c0_234 = arith.constant 0 : index
    %174 = vector.load %arg15[%c0_233, %c0_234] : memref<576x128xf32, #tpu.memory_space<vmem>>, vector<576x128xf32>
    %cst_235 = arith.constant dense<0.000000e+00> : vector<48x128xf32>
    %175 = tpu.matmul %154, %174, %cst_235 {dimension_numbers = #tpu.dot_dimension_numbers<[1], [0], [0], [1], [0, 0, 1, 1], [], []>} : vector<48x576xf32>, vector<576x128xf32>, vector<48x128xf32> -> vector<48x128xf32>
    %176 = vector.broadcast %155 : vector<48x1xf32> to vector<48x128xf32>
    %177 = arith.addf %175, %176 : vector<48x128xf32>
    %178 = arith.negf %177 : vector<48x128xf32>
    %179 = math.exp %178 : vector<48x128xf32>
    %cst_236 = arith.constant 1.000000e+00 : f32
    %180 = vector.broadcast %cst_236 : f32 to vector<48x128xf32>
    %181 = arith.addf %180, %179 : vector<48x128xf32>
    %182 = arith.divf %180, %181 : vector<48x128xf32>
    %c0_237 = arith.constant 0 : index
    %c0_238 = arith.constant 0 : index
    %c0_239 = arith.constant 0 : index
    %183 = vector.load %arg13[%c0_237, %c0_238, %c0_239] : memref<1x48x128xf32, #tpu.memory_space<vmem>>, vector<1x48x128xf32>
    %184 = vector.shape_cast %183 : vector<1x48x128xf32> to vector<48x128xf32>
    %185 = vector.shape_cast %182 : vector<48x128xf32> to vector<1x48x128xf32>
    tpu.vector_store %arg13[%c0_237, %c0_238, %c0_239], %185 {strides = array<i32>} : memref<1x48x128xf32, #tpu.memory_space<vmem>>, vector<1x48x128xf32>,
    return
  }
  func.func @transform_0(%arg0: i32) -> (i32, i32, i32) {
    %c0_i32 = arith.constant 0 : i32
    %c0_i32_0 = arith.constant 0 : i32
    %c0_i32_1 = arith.constant 0 : i32
    return %arg0, %c0_i32, %c0_i32_0 : i32, i32, i32
  }
  func.func @transform_1(%arg0: i32) -> (i32, i32) {
    %c0_i32 = arith.constant 0 : i32
    %c0_i32_0 = arith.constant 0 : i32
    %c0_i32_1 = arith.constant 0 : i32
    return %c0_i32, %c0_i32_0 : i32, i32
  }
  func.func @transform_2(%arg0: i32) -> (i32, i32) {
    %c0_i32 = arith.constant 0 : i32
    %c0_i32_0 = arith.constant 0 : i32
    %c0_i32_1 = arith.constant 0 : i32
    return %c0_i32, %c0_i32_0 : i32, i32
  }
  func.func @transform_3(%arg0: i32) -> (i32, i32, i32) {
    %c0_i32 = arith.constant 0 : i32
    %c0_i32_0 = arith.constant 0 : i32
    %c0_i32_1 = arith.constant 0 : i32
    %c0_i32_2 = arith.constant 0 : i32
    return %c0_i32, %c0_i32_0, %c0_i32_1 : i32, i32, i32
  }
  func.func @transform_4(%arg0: i32) -> (i32, i32, i32) {
    %c0_i32 = arith.constant 0 : i32
    %c0_i32_0 = arith.constant 0 : i32
    %c0_i32_1 = arith.constant 0 : i32
    %c0_i32_2 = arith.constant 0 : i32
    return %c0_i32, %c0_i32_0, %c0_i32_1 : i32, i32, i32
  }
  func.func @transform_5(%arg0: i32) -> (i32, i32, i32) {
    %c0_i32 = arith.constant 0 : i32
    %c0_i32_0 = arith.constant 0 : i32
    %c0_i32_1 = arith.constant 0 : i32
    %c0_i32_2 = arith.constant 0 : i32
    return %c0_i32, %c0_i32_0, %c0_i32_1 : i32, i32, i32
  }
  func.func @transform_6(%arg0: i32) -> (i32, i32, i32) {
    %c0_i32 = arith.constant 0 : i32
    %c0_i32_0 = arith.constant 0 : i32
    %c0_i32_1 = arith.constant 0 : i32
    %c0_i32_2 = arith.constant 0 : i32
    return %c0_i32, %c0_i32_0, %c0_i32_1 : i32, i32, i32
  }
  func.func @transform_7(%arg0: i32) -> (i32, i32) {
    %c0_i32 = arith.constant 0 : i32
    %c0_i32_0 = arith.constant 0 : i32
    %c0_i32_1 = arith.constant 0 : i32
    return %c0_i32, %c0_i32_0 : i32, i32
  }
  func.func @transform_8(%arg0: i32) -> (i32, i32) {
    %c0_i32 = arith.constant 0 : i32
    %c0_i32_0 = arith.constant 0 : i32
    %c0_i32_1 = arith.constant 0 : i32
    return %c0_i32, %c0_i32_0 : i32, i32
  }
  func.func @transform_9(%arg0: i32) -> (i32, i32) {
    %c0_i32 = arith.constant 0 : i32
    %c0_i32_0 = arith.constant 0 : i32
    %c0_i32_1 = arith.constant 0 : i32
    return %c0_i32, %c0_i32_0 : i32, i32
  }
  func.func @transform_10(%arg0: i32) -> (i32, i32) {
    %c0_i32 = arith.constant 0 : i32
    %c0_i32_0 = arith.constant 0 : i32
    %c0_i32_1 = arith.constant 0 : i32
    return %c0_i32, %c0_i32_0 : i32, i32
  }
  func.func @transform_11(%arg0: i32) -> (i32, i32) {
    %c0_i32 = arith.constant 0 : i32
    %c0_i32_0 = arith.constant 0 : i32
    %c0_i32_1 = arith.constant 0 : i32
    return %c0_i32, %c0_i32_0 : i32, i32
  }
  func.func @transform_12(%arg0: i32) -> (i32, i32, i32) {
    %c0_i32 = arith.constant 0 : i32
    %c0_i32_0 = arith.constant 0 : i32
    %c0_i32_1 = arith.constant 0 : i32
    return %arg0, %c0_i32, %c0_i32_0 : i32, i32, i32
  }
}

</mosaic_0001>

<bundles_post_ra>
// kernel: tile.13
= control target key start
LH: loop header
LB: loop body
LE: loop exit
PB: predicated region body
PF: predicated region fallthrough
CT: control target
= control target key end

     0   :  { %2 = vsyncpa [#allocation1], 0  ;;  %s44_s6 = smov [#allocation0]   ;;  %s70_s0 = inlined_call_operand.hbm [shape: f32[16], index: 0, kind: input, shape index: {}]   ;;  %s71_s1 = inlined_call_operand.vmem [shape: f32[4,16], index: 1, kind: output, shape index: {}]  }
   0x1   :  { %s9_s7 = sshll.u32 %s44_s6, 4  ;;  %s20_s10 = scalar_lea.hbm %s70_s0, 16  ;;  %s10_s7 = int_to_ptr.vmem [resolvable:$true] %s9_s7 }
   0x2   :  { %p21_p0 = scmp.ne.s32.totalorder %s70_s0, %s20_s10  ;;  %p24_p1 = scmp.lt.u32.totalorder %s20_s10, %s70_s0 }
   0x4   :  { %p26_p2 = pnand %p24_p1, %p21_p0 }
   0x6   :  { %29 = shalt.err (!%p26_p2)
}
   0x7   :  { %s30_s15 = scalar_lea.vmem %s10_s7, 16  ;;  %s34_s16 = scalar_lea.vmem %s10_s7, 32 }
   0x8   :  { %p31_p3 = scmp.ne.s32.totalorder %s10_s7, %s30_s15  ;;  %p35_p4 = scmp.lt.s32.totalorder %s10_s7, %s10_s7 }
   0x9   :  { %p36_p5 = scmp.lt.s32.totalorder %s34_s16, %s30_s15 }
   0xb   :  { %p37_p6 = por %p36_p5, %p35_p4 }
   0xd   :  { %p38_p7 = pnand %p37_p6, %p31_p3 }
   0xf   :  { %41 = shalt.err (!%p38_p7)
}
  0x10   :  { %12 = dma.hbm_to_vmem [thread:$0]  %s70_s0, 16, %s10_s7, [#allocation1]  }
  0x11   :  { %42 = dma.done.wait [#allocation1], 16  }
  0x12   :  { %43 = vsyncadd [#allocation1], 4294967280  ;;  %v16_v0 = vld [vmem:[#allocation0] ss:$0 sm:$0xff] }
  0x13   :  { %17 = vst [vmem:[%s71_s1] sm:$0xf] %v16_v0 }
  0x14   :  { %18 = vsyncpa [#allocation1], 1 }

// kernel: tile.18
= control target key start
LH: loop header
LB: loop body
LE: loop exit
PB: predicated region body
PF: predicated region fallthrough
CT: control target
= control target key end

     0   :  { %2 = vsyncpa [#allocation1], 0  ;;  %s47_s6 = smov [#allocation0]   ;;  %s76_s0 = inlined_call_operand.hbm [shape: f32[3], index: 0, kind: input, shape index: {}]   ;;  %s77_s1 = inlined_call_operand.vmem [shape: f32[16,3], index: 1, kind: output, shape index: {}]  }
   0x1   :  { %s9_s7 = sshll.u32 %s47_s6, 4  ;;  %s23_s10 = scalar_lea.hbm %s76_s0, 16  ;;  %s10_s7 = int_to_ptr.vmem [resolvable:$true] %s9_s7 }
   0x2   :  { %p24_p0 = scmp.ne.s32.totalorder %s76_s0, %s23_s10  ;;  %p27_p1 = scmp.lt.u32.totalorder %s23_s10, %s76_s0 }
   0x4   :  { %p29_p2 = pnand %p27_p1, %p24_p0 }
   0x6   :  { %32 = shalt.err (!%p29_p2)
}
   0x7   :  { %s33_s15 = scalar_lea.vmem %s10_s7, 16  ;;  %s37_s16 = scalar_lea.vmem %s10_s7, 32 }
   0x8   :  { %p34_p3 = scmp.ne.s32.totalorder %s10_s7, %s33_s15  ;;  %p38_p4 = scmp.lt.s32.totalorder %s10_s7, %s10_s7 }
   0x9   :  { %p39_p5 = scmp.lt.s32.totalorder %s37_s16, %s33_s15 }
   0xb   :  { %p40_p6 = por %p39_p5, %p38_p4 }
   0xd   :  { %p41_p7 = pnand %p40_p6, %p34_p3 }
   0xf   :  { %44 = shalt.err (!%p41_p7)
}
  0x10   :  { %12 = dma.hbm_to_vmem [thread:$0]  %s76_s0, 16, %s10_s7, [#allocation1]  }
  0x11   :  { %45 = dma.done.wait [#allocation1], 16  }
  0x12   :  { %46 = vsyncadd [#allocation1], 4294967280  ;;  %v16_v0 = vld [vmem:[#allocation0] ss:$0 sm:$0xff] }
  0x13   :  { %17 = vst [vmem:[%s77_s1] sm:$0xff] %v16_v0  ;;  %21 = vst [vmem:[%s77_s1 + $0x8] sm:$0xff] %v16_v0 }
  0x14   :  { %20 = vsyncpa [#allocation1], 1 }

// kernel: tile.1
= control target key start
LH: loop header
LB: loop body
LE: loop exit
PB: predicated region body
PF: predicated region fallthrough
CT: control target
= control target key end

     0   :  { %s73_s10 = smov 126   ;;  %vm3_vm0 = vcmask 7168   ;;  %s74_s11 = smov 127   ;;  %s163_s0 = inlined_call_operand.vmem [shape: f32[16,3], index: 0, kind: input, shape index: {}]   ;;  %s164_s1 = inlined_call_operand.vmem [shape: f32[48,1], index: 1, kind: output, shape index: {}]  }
   0x1   :  { %v31_v0 = vld.sshfl [vmem:[%s163_s0] sm:$0xff pattern:$0x3d2c1b0a]   ;;  %v67_v4 = vld.sshfl [vmem:[%s163_s0 + $0x4] sm:$0xff pattern:$0x54321b0a]  }
   0x2   :  { %v10_v1 = vld.sshfl [vmem:[%s163_s0] sm:$0xff pattern:$0xe3d2c1b0]   ;;  %32 = vrot.lane.b32.xlu1 %v31_v0, %s73_s10  ;;  %v60_v5 = vld.sshfl [vmem:[%s163_s0 + $0x4] sm:$0xff pattern:$0x654321b0]  }
   0x3   :  { %11 = vrot.lane.b32.xlu0 %v10_v1, %s74_s11  ;;  %v2_v2 = vld [vmem:[%s163_s0] sm:$0xff]   ;;  %v54_v3 = vld [vmem:[%s163_s0 + $0x8] sm:$0xff]  }
   0x4   :  { %4 = vst.msk [vmem:[%s164_s1] ss:$3 sm:$0xff] %vm3_vm0, %v2_v2   ;;  %55 = vst.msk [vmem:[%s164_s1 + $0x18] ss:$3 sm:$0xff] %vm3_vm0, %v54_v3  }
   0x6   :  { %45 = vrot.lane.b32.xlu1 %v67_v4, %s73_s10 }
   0x7   :  { %24 = vrot.lane.b32.xlu0 %v60_v5, %s74_s11 }
  0x74   :  { %v33_v6 = vpop.permute.xlu1 %32  }
  0x75   :  { %v12_v7 = vpop.permute.xlu0 %11   ;;  %63 = vst.msk [vmem:[%s164_s1 + $0x20] ss:$-30 sm:$0x3] %vm3_vm0, %v33_v6   ;;  %64 = vst.msk [vmem:[%s164_s1 + $0x5f] ss:$-30 sm:$0xc] %vm3_vm0, %v33_v6  }
  0x76   :  { %65 = vst.msk [vmem:[%s164_s1 + $0x9e] ss:$-30 sm:$0x30] %vm3_vm0, %v33_v6   ;;  %66 = vst.msk [vmem:[%s164_s1 + $0xdd] ss:$-30 sm:$0xc0] %vm3_vm0, %v33_v6  }
  0x77   :  { %56 = vst.msk [vmem:[%s164_s1 + $0x1] ss:$33 sm:$0x3] %vm3_vm0, %v12_v7   ;;  %57 = vst.msk [vmem:[%s164_s1 - $0x3e] ss:$33 sm:$0xc] %vm3_vm0, %v12_v7  }
  0x78   :  { %58 = vst.msk [vmem:[%s164_s1 - $0x7d] ss:$33 sm:$0x30] %vm3_vm0, %v12_v7   ;;  %59 = vst.msk [vmem:[%s164_s1 - $0xbc] ss:$33 sm:$0xc0] %vm3_vm0, %v12_v7   ;;  %v46_v8 = vpop.permute.xlu1 %45  }
  0x79   :  { %v25_v9 = vpop.permute.xlu0 %24   ;;  %68 = vst.msk [vmem:[%s164_s1 + $0x2c] ss:$-30 sm:$0x3] %vm3_vm0, %v46_v8   ;;  %69 = vst.msk [vmem:[%s164_s1 + $0x6b] ss:$-30 sm:$0xc] %vm3_vm0, %v46_v8  }
  0x7a   :  { %70 = vst.msk [vmem:[%s164_s1 + $0x8] ss:$3 sm:$0xf0] %vm3_vm0, %v46_v8   ;;  %61 = vst.msk [vmem:[%s164_s1 + $0xd] ss:$33 sm:$0x3] %vm3_vm0, %v25_v9  }
  0x7b   :  { %62 = vst.msk [vmem:[%s164_s1 + $0xa] ss:$3 sm:$0xfc] %vm3_vm0, %v25_v9  }

// kernel: tile.0
= control target key start
LH: loop header
LB: loop body
LE: loop exit
PB: predicated region body
PF: predicated region fallthrough
CT: control target
= control target key end

     0   :  { %s176_s8 = smov 125   ;;  %s177_s9 = smov 126   ;;  %vm7_vm0 = vcmask 7168   ;;  %s331_s0 = inlined_call_operand.vmem [shape: f32[4,16], index: 0, kind: input, shape index: {}]   ;;  %s332_s1 = inlined_call_operand.vmem [shape: f32[64,1], index: 1, kind: output, shape index: {}]  }
   0x1   :  { %v4_v0 = vld [vmem:[%s331_s0] sm:$0xf]  ;;  %s175_s0 = smov 127   ;;  %s178_s10 = smov 124  }
   0x2   :  { %5 = vst [vmem:[#allocation0] sm:$0xf] %v4_v0  ;;  %s179_s11 = smov 123   ;;  %s180_s12 = smov 122  }
   0x3   :  { %s181_s13 = smov 121   ;;  %s182_s14 = smov 120  }
   0x4   :  { %s183_s19 = smov 119   ;;  %s184_s20 = smov 118  }
   0x5   :  { %s185_s21 = smov 117   ;;  %s186_s22 = smov 116  }
   0x6   :  { %s187_s23 = smov 115   ;;  %s188_s24 = smov 114  }
   0x7   :  { %s189_s25 = smov 113  }
   0x9   :  { %v10_v1 = vld [vmem:[#allocation0] sm:$0xf]  }
   0xa   :  { %v26_v2 = vld [vmem:[#allocation0] sm:$0xf]   ;;  %11 = vrot.lane.b32.xlu0 %v10_v1, %s175_s0 }
   0xb   :  { %27 = vrot.lane.b32.xlu1 %v26_v2, %s176_s8  ;;  %v18_v3 = vld [vmem:[#allocation0] sm:$0xf]  }
   0xc   :  { %v34_v4 = vld [vmem:[#allocation0] sm:$0xf]  }
   0xd   :  { %v42_v5 = vld [vmem:[#allocation0] sm:$0xf]  }
   0xe   :  { %19 = vrot.lane.b32.xlu0 %v18_v3, %s177_s9  ;;  %v50_v6 = vld [vmem:[#allocation0] sm:$0xf]  }
   0xf   :  { %35 = vrot.lane.b32.xlu1 %v34_v4, %s178_s10  ;;  %v58_v7 = vld [vmem:[#allocation0] sm:$0xf]  }
  0x10   :  { %v66_v8 = vld [vmem:[#allocation0] sm:$0xf]  }
  0x11   :  { %v74_v9 = vld [vmem:[#allocation0] sm:$0xf]  }
  0x12   :  { %43 = vrot.lane.b32.xlu0 %v42_v5, %s179_s11  ;;  %v82_v10 = vld [vmem:[#allocation0] sm:$0xf]  }
  0x13   :  { %51 = vrot.lane.b32.xlu1 %v50_v6, %s180_s12  ;;  %v6_v11 = vld [vmem:[#allocation0] sm:$0xf]  }
  0x14   :  { %8 = vst.msk [vmem:[%s332_s1] ss:$16 sm:$0x3] %vm7_vm0, %v6_v11   ;;  %9 = vst.msk [vmem:[%s332_s1] ss:$16 sm:$0xc] %vm7_vm0, %v6_v11  }
  0x15   :  { %v90_v12 = vld [vmem:[#allocation0] sm:$0xf]  }
  0x16   :  { %59 = vrot.lane.b32.xlu0 %v58_v7, %s181_s13  ;;  %v98_v13 = vld [vmem:[#allocation0] sm:$0xf]  }
  0x17   :  { %67 = vrot.lane.b32.xlu1 %v66_v8, %s182_s14  ;;  %v106_v14 = vld [vmem:[#allocation0] sm:$0xf]  }
  0x18   :  { %v114_v15 = vld [vmem:[#allocation0] sm:$0xf]  }
  0x19   :  { %v122_v16 = vld [vmem:[#allocation0] sm:$0xf]  }
  0x1a   :  { %75 = vrot.lane.b32.xlu0 %v74_v9, %s183_s19 }
  0x1b   :  { %83 = vrot.lane.b32.xlu1 %v82_v10, %s184_s20 }
  0x1e   :  { %91 = vrot.lane.b32.xlu0 %v90_v12, %s185_s21 }
  0x1f   :  { %99 = vrot.lane.b32.xlu1 %v98_v13, %s186_s22 }
  0x22   :  { %107 = vrot.lane.b32.xlu0 %v106_v14, %s187_s23 }
  0x23   :  { %115 = vrot.lane.b32.xlu1 %v114_v15, %s188_s24 }
  0x26   :  { %123 = vrot.lane.b32.xlu0 %v122_v16, %s189_s25 }
  0x7c   :  { %v12_v17 = vpop.permute.xlu0 %11  }
  0x7d   :  { %v28_v18 = vpop.permute.xlu1 %27   ;;  %130 = vst.msk [vmem:[%s332_s1 + $0x1] ss:$16 sm:$0x3] %vm7_vm0, %v12_v17   ;;  %131 = vst.msk [vmem:[%s332_s1 + $0x1] ss:$16 sm:$0xc] %vm7_vm0, %v12_v17  }
  0x7e   :  { %134 = vst.msk [vmem:[%s332_s1 + $0x3] ss:$16 sm:$0x3] %vm7_vm0, %v28_v18   ;;  %135 = vst.msk [vmem:[%s332_s1 + $0x3] ss:$16 sm:$0xc] %vm7_vm0, %v28_v18  }
  0x80   :  { %v20_v19 = vpop.permute.xlu0 %19  }
  0x81   :  { %v36_v20 = vpop.permute.xlu1 %35   ;;  %132 = vst.msk [vmem:[%s332_s1 + $0x2] ss:$16 sm:$0x3] %vm7_vm0, %v20_v19   ;;  %133 = vst.msk [vmem:[%s332_s1 + $0x2] ss:$16 sm:$0xc] %vm7_vm0, %v20_v19  }
  0x82   :  { %136 = vst.msk [vmem:[%s332_s1 + $0x4] ss:$16 sm:$0x3] %vm7_vm0, %v36_v20   ;;  %137 = vst.msk [vmem:[%s332_s1 + $0x4] ss:$16 sm:$0xc] %vm7_vm0, %v36_v20  }
  0x84   :  { %v44_v21 = vpop.permute.xlu0 %43  }
  0x85   :  { %v52_v22 = vpop.permute.xlu1 %51   ;;  %138 = vst.msk [vmem:[%s332_s1 + $0x5] ss:$16 sm:$0x3] %vm7_vm0, %v44_v21   ;;  %139 = vst.msk [vmem:[%s332_s1 + $0x5] ss:$16 sm:$0xc] %vm7_vm0, %v44_v21  }
  0x86   :  { %140 = vst.msk [vmem:[%s332_s1 + $0x6] ss:$16 sm:$0x3] %vm7_vm0, %v52_v22   ;;  %141 = vst.msk [vmem:[%s332_s1 + $0x6] ss:$16 sm:$0xc] %vm7_vm0, %v52_v22  }
  0x88   :  { %v60_v23 = vpop.permute.xlu0 %59  }
  0x89   :  { %v68_v24 = vpop.permute.xlu1 %67   ;;  %142 = vst.msk [vmem:[%s332_s1 + $0x7] ss:$16 sm:$0x3] %vm7_vm0, %v60_v23   ;;  %143 = vst.msk [vmem:[%s332_s1 + $0x7] ss:$16 sm:$0xc] %vm7_vm0, %v60_v23  }
  0x8a   :  { %144 = vst.msk [vmem:[%s332_s1 + $0x8] ss:$16 sm:$0x3] %vm7_vm0, %v68_v24   ;;  %145 = vst.msk [vmem:[%s332_s1 + $0x8] ss:$16 sm:$0xc] %vm7_vm0, %v68_v24  }
  0x8c   :  { %v76_v25 = vpop.permute.xlu0 %75  }
  0x8d   :  { %v84_v26 = vpop.permute.xlu1 %83   ;;  %146 = vst.msk [vmem:[%s332_s1 + $0x9] ss:$16 sm:$0x3] %vm7_vm0, %v76_v25   ;;  %147 = vst.msk [vmem:[%s332_s1 + $0x9] ss:$16 sm:$0xc] %vm7_vm0, %v76_v25  }
  0x8e   :  { %148 = vst.msk [vmem:[%s332_s1 + $0xa] ss:$16 sm:$0x3] %vm7_vm0, %v84_v26   ;;  %149 = vst.msk [vmem:[%s332_s1 + $0xa] ss:$16 sm:$0xc] %vm7_vm0, %v84_v26  }
  0x90   :  { %v92_v27 = vpop.permute.xlu0 %91  }
  0x91   :  { %v100_v28 = vpop.permute.xlu1 %99   ;;  %150 = vst.msk [vmem:[%s332_s1 + $0xb] ss:$16 sm:$0x3] %vm7_vm0, %v92_v27   ;;  %151 = vst.msk [vmem:[%s332_s1 + $0xb] ss:$16 sm:$0xc] %vm7_vm0, %v92_v27  }
  0x92   :  { %152 = vst.msk [vmem:[%s332_s1 + $0xc] ss:$16 sm:$0x3] %vm7_vm0, %v100_v28   ;;  %153 = vst.msk [vmem:[%s332_s1 + $0xc] ss:$16 sm:$0xc] %vm7_vm0, %v100_v28  }
  0x94   :  { %v108_v29 = vpop.permute.xlu0 %107  }
  0x95   :  { %v116_v30 = vpop.permute.xlu1 %115   ;;  %154 = vst.msk [vmem:[%s332_s1 + $0xd] ss:$16 sm:$0x3] %vm7_vm0, %v108_v29   ;;  %155 = vst.msk [vmem:[%s332_s1 + $0xd] ss:$16 sm:$0xc] %vm7_vm0, %v108_v29  }
  0x96   :  { %156 = vst.msk [vmem:[%s332_s1 + $0xe] ss:$16 sm:$0x3] %vm7_vm0, %v116_v30   ;;  %157 = vst.msk [vmem:[%s332_s1 + $0xe] ss:$16 sm:$0xc] %vm7_vm0, %v116_v30  }
  0x98   :  { %v124_v31 = vpop.permute.xlu0 %123  }
  0x99   :  { %158 = vst.msk [vmem:[%s332_s1 + $0xf] ss:$16 sm:$0x3] %vm7_vm0, %v124_v31   ;;  %159 = vst.msk [vmem:[%s332_s1 + $0xf] ss:$16 sm:$0xc] %vm7_vm0, %v124_v31  }

// kernel: res_decoder_forward.1
= control target key start
LH: loop header
LB: loop body
LE: loop exit
PB: predicated region body
PF: predicated region fallthrough
CT: control target
= control target key end

     0   :  { %s5774_s21 = smov 0   ;;  %s6840_s0 = inlined_call_operand.vmem [shape: f32[2,8,278], index: 0, kind: input, shape index: {}]   ;;  %s6841_s1 = inlined_call_operand.vmem [shape: f32[32,72], index: 1, kind: input, shape index: {}]   ;;  %s6842_s2 = inlined_call_operand.vmem [shape: f32[32,1], index: 2, kind: input, shape index: {}]   ;;  %s6843_s3 = inlined_call_operand.vmem [shape: f32[2,16,288], index: 3, kind: input, shape index: {}]   ;;  %s6844_s4 = inlined_call_operand.vmem [shape: f32[2,16,1], index: 4, kind: input, shape index: {}]   ;;  %s6845_s5 = inlined_call_operand.vmem [shape: f32[2,32,16], index: 5, kind: input, shape index: {}]   ;;  %s6846_s6 = inlined_call_operand.vmem [shape: f32[2,32,1], index: 6, kind: input, shape index: {}]   ;;  %s6847_s7 = inlined_call_operand.vmem [shape: f32[64,288], index: 7, kind: input, shape index: {}]   ;;  %s6848_s8 = inlined_call_operand.vmem [shape: f32[64,1], index: 8, kind: input, shape index: {}]   ;;  %s6849_s9 = inlined_call_operand.vmem [shape: f32[48,576], index: 9, kind: input, shape index: {}]   ;;  %s6850_s10 = inlined_call_operand.vmem [shape: f32[48,1], index: 10, kind: input, shape index: {}]   ;;  %s6851_s11 = inlined_call_operand.vmem [shape: f32[1,128], index: 11, kind: input, shape index: {}]   ;;  %s6852_s12 = inlined_call_operand.vmem [shape: f32[2,48,128], index: 12, kind: output, shape index: {}]  }
   0x1 LB: > { %s4116_s22 = sadd.s32 4294967295, %s5697_s21   ;;  %p4120_p0 = scmp.ge.s32.totalorder %s5697_s21, 1  ;;  %s5697_s21 = sphi %s5774_s21, %s22_s21  }
   0x2   : > { %p362_p1 = scmp.lt.s32.totalorder %s5697_s21, 3 }
   0x4   : > { %p363_p2 = pnand %p4120_p0, %p362_p1 }
   0x5   : > { %p404_p3 = scmp.lt.s32.totalorder (!%p363_p2), %s4116_s22, 1  ;;  %s6859_s27 = smov (!%p363_p2), 9   ;;  %v440_v5 = vld [vmem:[%s6841_s1] sm:$0xff] (!%p363_p2)  ;;  %vm575_vm0 = vcmask (!%p363_p2), 588800   ;;  %v445_v7 = vld [vmem:[%s6842_s2 + $0x8] sm:$0xff] (!%p363_p2)  ;;  %v5707_v8 = vmov (!%p363_p2), 0  }
   0x6   : > { %366 = sbr.rel (%p363_p2) target bundleno = 2547 (0x9f3), region = 68  ;;  %s5700_s28 = smov (!%p363_p2), 11   ;;  %4491 = vmatprep.mubr.msk.f32.mxu0 (!%p363_p2), %vm575_vm0, %v440_v5  ;;  %v444_v6 = vld [vmem:[%s6842_s2] sm:$0xff] (!%p363_p2)  ;;  %4863 = vset.pattern.permute.xlu1 (!%p363_p2), %v5707_v8  ;;  %v446_v9 = vld [vmem:[%s6842_s2 + $0x10] sm:$0xff] (!%p363_p2)  ;;  %v5708_v10 = vmov (!%p363_p2), 0.0   ;;  %v447_v11 = vld [vmem:[%s6842_s2 + $0x18] sm:$0xff] (!%p363_p2) }
   0x7   : > { %s6855_s29 = smov (!%p363_p2), 1   ;;  %s6863_s30 = smov (!%p363_p2), 10   ;;  %4864 = vset.pattern.permute.xlu0 (!%p363_p2), %v5707_v8  ;;  %415 = vst [vmem:[#allocation2] sm:$0xff] (!%p363_p2), %v5708_v10  ;;  %vm456_vm1 = vcmask (!%p363_p2), 89088   ;;  %vm468_vm2 = vcmask (!%p363_p2), 80896   ;;  %vm480_vm3 = vcmask (!%p363_p2), 72704  }
   0x8   : > { %s6861_s13 = smov (!%p363_p2), 127   ;;  %s5704_s14 = smov (!%p363_p2), 119   ;;  %vm492_vm4 = vcmask (!%p363_p2), 7168   ;;  %vm506_vm5 = vcmask (!%p363_p2), 1039360   ;;  %vm518_vm6 = vcmask (!%p363_p2), 973824   ;;  %vm530_vm7 = vcmask (!%p363_p2), 965632  }
   0x9   : > { %s6857_s15 = smov (!%p363_p2), 118   ;;  %s6853_s16 = smov (!%p363_p2), 117   ;;  %vm542_vm8 = vcmask (!%p363_p2), 957440   ;;  %v441_v47 = vld [vmem:[%s6841_s1 + $0x8] sm:$0xff] (!%p363_p2)  ;;  %v442_v48 = vld [vmem:[%s6841_s1 + $0x10] sm:$0xff] (!%p363_p2)  ;;  %v443_v49 = vld [vmem:[%s6841_s1 + $0x18] sm:$0xff] (!%p363_p2) }
   0xa   : > { %vm417_vm9 = vcmask (!%p363_p2), 179200   ;;  %v5851_v55 = vld [vmem:[%s6851_s11] ss:$0 sm:$0xff] (!%p363_p2)  ;;  %vm1105_vm10 = vcmask (!%p363_p2), 261120   ;;  %vm1296_vm11 = vcmask (!%p363_p2), 130048   ;;  %s6867_s17 = smov (!%p363_p2), 9  }
   0xb   : > { %421 = vst.msk [vmem:[#allocation2 + $0x28] sm:$0xff] (!%p363_p2), %vm417_vm9, %v5708_v10  ;;  %418 = vst.msk [vmem:[#allocation2 + $0x10] sm:$0xff] (!%p363_p2), %vm417_vm9, %v5708_v10  ;;  %s6868_s18 = smov (!%p363_p2), 118   ;;  %s6869_s24 = smov (!%p363_p2), 10   ;;  %vm3715_vm12 = vcmask (!%p363_p2), 523264  }
   0xc   : > { %424 = vst.msk [vmem:[#allocation2 + $0x40] sm:$0xff] (!%p363_p2), %vm417_vm9, %v5708_v10  ;;  %427 = vst.msk [vmem:[#allocation2 + $0x58] sm:$0xff] (!%p363_p2), %vm417_vm9, %v5708_v10  ;;  %s6870_s25 = smov (!%p363_p2), 127  }
   0xd   : > { %s6872_s22 = smov (!%p404_p3, %s4116_s22), 1  ;;  %430 = vst.msk [vmem:[#allocation2 + $0x70] sm:$0xff] %vm417_vm9, %v5708_v10  ;;  %433 = vst.msk [vmem:[#allocation2 + $0x88] sm:$0xff] %vm417_vm9, %v5708_v10 }
   0xe   : > { %s4808_s23 = smul.u32 24, %s6872_s22  ;;  %436 = vst.msk [vmem:[#allocation2 + $0xa0] sm:$0xff] %vm417_vm9, %v5708_v10  ;;  %439 = vst.msk [vmem:[#allocation2 + $0xb8] sm:$0xff] %vm417_vm9, %v5708_v10 }
  0x10   : > { %s408_s26 = scalar_lea.vmem %s6840_s0, %s4808_s23  ;;  %s6865_s23 = smov 1  }
  0x11   : > { %v472_v0 = vld [vmem:[%s408_s26] sm:$0xff]  ;;  %v5788_v1 = vld [vmem:[%s408_s26 + $0x8] sm:$0xff]  ;;  %v499_v3 = vld [vmem:[%s408_s26 + $0x10] sm:$0xff] }
  0x12   : > { %v4838_v2 = vpack.i.bf16 %v5788_v1, %v472_v0  ;;  %v4848_v4 = vpack.i.bf16 %v499_v3, %v5788_v1 }
  0x14   : > { %4839 = vrot.lane.b32.xlu1 %v4838_v2, %s6859_s27  ;;  %4829 = vrot.lane.b32.xlu0 %v4838_v2, %s5700_s28 }
  0x18   : > { %4844 = vrot.lane.b32.xlu1 %v4838_v2, %s6855_s29  ;;  %4834 = vrot.lane.b32.xlu0 %v4838_v2, %s6863_s30  ;;  %v5865_v2 = vld [vmem:[#allocation2 + $0x28] sm:$0xff] }
  0x1c   : > { %4849 = vrot.lane.b32.xlu0 %v4848_v4, %s6861_s13  ;;  %4854 = vrot.lane.b32.xlu1 %v4848_v4, %s5704_s14 }
  0x20   : > { %4859 = vrot.lane.b32.xlu0 %v4848_v4, %s6857_s15  ;;  %538 = vrot.lane.b32.xlu1 %v5788_v1, %s6853_s16 }
  0x24   : > { %540 = vrot.lane.b32.xlu0 %v499_v3, %s6853_s16  ;;  %557 = vperm.xlu1 %4863, %v444_v6   ;;  %v5868_v3 = vld [vmem:[#allocation2 + $0x10] sm:$0xff] }
  0x28   : > { %562 = vperm.xlu0 %4864, %v445_v7   ;;  %567 = vperm.xlu1 %4863, %v446_v9  }
  0x2c   : > { %572 = vperm.xlu1 %4863, %v447_v11  }
  0x86   : > { %v4840_v12 = vpop.permute.xlu1 %4839  ;;  %v4830_v13 = vpop.permute.xlu0 %4829 }
  0x87   : > { %v4842_v14 = vunpack.i.h.bf16 %v4840_v12  ;;  %v4841_v15 = vunpack.i.l.bf16 %v4840_v12  ;;  %v4832_v16 = vunpack.i.h.bf16 %v4830_v13  ;;  %v4831_v17 = vunpack.i.l.bf16 %v4830_v13 }
  0x89   : > { %v457_v24 = vsel %vm456_vm1, %v4831_v17, %v4832_v16  ;;  %v481_v26 = vsel %vm480_vm3, %v4841_v15, %v4842_v14  ;;  %v5897_v17 = vld [vmem:[#allocation2 + $0x58] sm:$0xff] }
  0x8a   : > { %v4845_v18 = vpop.permute.xlu1 %4844  ;;  %v4835_v19 = vpop.permute.xlu0 %4834 }
  0x8b   : > { %v4847_v20 = vunpack.i.h.bf16 %v4845_v18  ;;  %v4846_v21 = vunpack.i.l.bf16 %v4845_v18  ;;  %v4837_v22 = vunpack.i.h.bf16 %v4835_v19  ;;  %v4836_v23 = vunpack.i.l.bf16 %v4835_v19  ;;  %v5900_v18 = vld [vmem:[#allocation2 + $0x40] sm:$0xff] }
  0x8d   : > { %v469_v25 = vsel %vm468_vm2, %v4836_v23, %v4837_v22  ;;  %v493_v27 = vsel %vm492_vm4, %v4846_v21, %v4847_v20  ;;  %v692_v21 = vld [vmem:[%s6843_s3 + $0x8] sm:$0xff]  ;;  %v693_v22 = vld [vmem:[%s6843_s3 + $0x10] sm:$0xff] }
  0x8e   : > { %v4584_v28 = vpack.c.bf16 %v469_v25, %v457_v24  ;;  %v4850_v29 = vpop.permute.xlu0 %4849  ;;  %v4855_v30 = vpop.permute.xlu1 %4854  ;;  %v4588_v35 = vpack.c.bf16 %v493_v27, %v481_v26  ;;  %1176 = vmatprep.mubr.f32.mxu1 %v692_v21  ;;  %v698_v23 = vld [vmem:[%s6844_s4 + $0x8] sm:$0xff]  ;;  %v697_v24 = vld [vmem:[%s6844_s4] sm:$0xff]  ;;  %v1275_v27 = vld [vmem:[%s6846_s6 + $0x18] sm:$0xff] }
  0x8f   : > { %v4852_v31 = vunpack.i.h.bf16 %v4850_v29  ;;  %v4851_v32 = vunpack.i.l.bf16 %v4850_v29  ;;  %v4857_v33 = vunpack.i.h.bf16 %v4855_v30  ;;  %v4856_v34 = vunpack.i.l.bf16 %v4855_v30  ;;  %v1273_v25 = vld [vmem:[%s6846_s6 + $0x8] sm:$0xff]  ;;  %v1272_v26 = vld [vmem:[%s6846_s6] sm:$0xff] }
  0x90   : > { %4585 = vmatprep.subr.bf16.mxu0 %v4584_v28 }
  0x91   : > { %4587 = vmatpush3.bf16.msra.mxu0 %v4584_v28  ;;  %v507_v36 = vsel %vm506_vm5, %v4851_v32, %v4852_v31  ;;  %v519_v41 = vsel %vm518_vm6, %v4856_v34, %v4857_v33  ;;  %v1274_v28 = vld [vmem:[%s6846_s6 + $0x10] sm:$0xff] }
  0x92   : > { %4589 = vmatprep.subr.bf16.mxu0 %v4588_v35  ;;  %v4860_v37 = vpop.permute.xlu0 %4859  ;;  %v4592_v38 = vpack.c.bf16 %v507_v36, %v5788_v1  ;;  %v539_v44 = vpop.permute.xlu1 %538 }
  0x93   : > { %v4862_v39 = vunpack.i.h.bf16 %v4860_v37  ;;  %v4861_v40 = vunpack.i.l.bf16 %v4860_v37 }
  0x95   : > { %4591 = vmatpush3.bf16.msra.mxu0 %v4588_v35  ;;  %v531_v42 = vsel %vm530_vm7, %v4861_v40, %v4862_v39 }
  0x96   : > { %4593 = vmatprep.subr.bf16.mxu0 %v4592_v38  ;;  %v4596_v43 = vpack.c.bf16 %v531_v42, %v519_v41  ;;  %v541_v45 = vpop.permute.xlu0 %540 }
  0x97   : > { %v543_v46 = vsel %vm542_vm8, %v539_v44, %v541_v45 }
  0x99   : > { %4595 = vmatpush3.bf16.msra.mxu0 %v4592_v38 }
  0x9a   : > { %4597 = vmatprep.subr.bf16.mxu0 %v4596_v43 }
  0x9d   : > { %4599 = vmatpush3.bf16.msra.mxu0 %v4596_v43 }
  0x9e   : > { %4489 = vmatprep.subr.mxu0 %v543_v46 }
  0xa1   : > { %4490 = vmatpush3.msra.mxu0 %v543_v46 }
  0xa2   : > { %4492 = vmatmul.mubr.msk.f32.vlgmr.msra.gmra.mrb[0].mxu0 %vm575_vm0, %v441_v47 }
  0xa3   : > { %4494 = vmatprep.mubr.msk.f32.mxu0 %vm575_vm0, %v442_v48  ;;  %v558_v52 = vpop.permute.xlu1 %557 }
  0xa6   : > { %4495 = vmatmul.mubr.msk.f32.gmra.mrb[2].mxu0 %vm575_vm0, %v443_v49 }
  0xa7   : > { %v563_v50 = vpop.permute.xlu0 %562  ;;  %v568_v6 = vpop.permute.xlu1 %567  ;;  %4505 = vmatprep.mubr.msk.f32.mxu0 %vm1105_vm10, %v693_v22 }
  0xab   : > { %v573_v7 = vpop.permute.xlu1 %572 }
 0x175   : > { %v4493_v51 = vpop.f32.mrb[0].mxu0 }
 0x176   : > { %v660_v53 = vadd.f32 %v4493_v51, %v563_v50  ;;  %v654_v54 = vpop.f32.mrb[1].mxu0 }
 0x177   : > { %v655_v56 = vadd.f32 %v654_v54, %v558_v52 }
 0x178   : > { %v674_v57 = vmax.f32 %v660_v53, 0.0 }
 0x179   : > { %v673_v58 = vmax.f32 %v655_v56, 0.0  ;;  %v4496_v59 = vpop.f32.mrb[2].mxu0 }
 0x17a   : > { %v5854_v60 = vmul.f32 %v5851_v55, %v674_v57  ;;  %v664_v61 = vpop.f32.mrb[3].mxu0  ;;  %v670_v8 = vadd.f32 %v4496_v59, %v573_v7 }
 0x17b   : > { %v5857_v62 = vmul.f32 %v5851_v55, %v673_v58  ;;  %v665_v9 = vadd.f32 %v664_v61, %v568_v6 }
 0x17c   : > { %v4865_v63 = vpack.i.bf16 %v5854_v60, %v5708_v10  ;;  %v4870_v4 = vpack.i.bf16 %v5865_v2, %v5854_v60  ;;  %v676_v11 = vmax.f32 %v670_v8, 0.0 }
 0x17d   : > { %v4600_v0 = vpack.c.bf16 %v5854_v60, %v5857_v62  ;;  %v4900_v1 = vpack.i.bf16 %v5857_v62, %v5708_v10  ;;  %v4905_v5 = vpack.i.bf16 %v5868_v3, %v5857_v62  ;;  %v675_v12 = vmax.f32 %v665_v9, 0.0 }
 0x17e   : > { %4866 = vrot.lane.b32.xlu1 %v4865_v63, %s5700_s28  ;;  %v5886_v13 = vmul.f32 %v5851_v55, %v676_v11 }
 0x17f   : > { %4601 = vmatprep.subr.bf16.mxu1 %v4600_v0  ;;  %4901 = vrot.lane.b32.xlu0 %v4900_v1, %s5700_s28  ;;  %v5889_v14 = vmul.f32 %v5851_v55, %v675_v12 }
 0x180   : > { %v4935_v15 = vpack.i.bf16 %v5886_v13, %v5708_v10  ;;  %v4940_v19 = vpack.i.bf16 %v5897_v17, %v5886_v13 }
 0x181   : > { %v4970_v16 = vpack.i.bf16 %v5889_v14, %v5708_v10  ;;  %v4975_v20 = vpack.i.bf16 %v5900_v18, %v5889_v14  ;;  %v4604_v40 = vpack.c.bf16 %v5886_v13, %v5889_v14 }
 0x182   : > { %4871 = vrot.lane.b32.xlu1 %v4870_v4, %s6861_s13 }
 0x183   : > { %4906 = vrot.lane.b32.xlu0 %v4905_v5, %s6861_s13 }
 0x186   : > { %4876 = vrot.lane.b32.xlu1 %v4865_v63, %s6863_s30 }
 0x187   : > { %4911 = vrot.lane.b32.xlu0 %v4900_v1, %s6863_s30 }
 0x18a   : > { %4881 = vrot.lane.b32.xlu1 %v4870_v4, %s5704_s14 }
 0x18b   : > { %4916 = vrot.lane.b32.xlu0 %v4905_v5, %s5704_s14 }
 0x18e   : > { %4886 = vrot.lane.b32.xlu1 %v4865_v63, %s6859_s27 }
 0x18f   : > { %4921 = vrot.lane.b32.xlu0 %v4900_v1, %s6859_s27 }
 0x192   : > { %4891 = vrot.lane.b32.xlu1 %v4870_v4, %s6857_s15 }
 0x193   : > { %4926 = vrot.lane.b32.xlu0 %v4905_v5, %s6857_s15 }
 0x196   : > { %4896 = vrot.lane.b32.xlu1 %v4865_v63, %s6855_s29 }
 0x197   : > { %4931 = vrot.lane.b32.xlu0 %v4900_v1, %s6855_s29 }
 0x19a   : > { %4936 = vrot.lane.b32.xlu1 %v4935_v15, %s5700_s28 }
 0x19b   : > { %4971 = vrot.lane.b32.xlu0 %v4970_v16, %s5700_s28 }
 0x19e   : > { %4941 = vrot.lane.b32.xlu1 %v4940_v19, %s6861_s13 }
 0x19f   : > { %4976 = vrot.lane.b32.xlu0 %v4975_v20, %s6861_s13 }
 0x1a2   : > { %4946 = vrot.lane.b32.xlu1 %v4935_v15, %s6863_s30 }
 0x1a3   : > { %4981 = vrot.lane.b32.xlu0 %v4970_v16, %s6863_s30 }
 0x1a6   : > { %4951 = vrot.lane.b32.xlu1 %v4940_v19, %s5704_s14 }
 0x1a7   : > { %4986 = vrot.lane.b32.xlu0 %v4975_v20, %s5704_s14 }
 0x1aa   : > { %4956 = vrot.lane.b32.xlu1 %v4935_v15, %s6859_s27 }
 0x1ab   : > { %4991 = vrot.lane.b32.xlu0 %v4970_v16, %s6859_s27 }
 0x1ae   : > { %4961 = vrot.lane.b32.xlu1 %v4940_v19, %s6857_s15 }
 0x1af   : > { %4996 = vrot.lane.b32.xlu0 %v4975_v20, %s6857_s15 }
 0x1b2   : > { %4966 = vrot.lane.b32.xlu1 %v4935_v15, %s6855_s29 }
 0x1b3   : > { %5001 = vrot.lane.b32.xlu0 %v4970_v16, %s6855_s29 }
 0x1b6   : > { %5011 = vrot.lane.b32.xlu1 %v4870_v4, %s6853_s16 }
 0x1b7   : > { %5006 = vrot.lane.b32.xlu0 %v4905_v5, %s6853_s16 }
 0x1ba   : > { %5021 = vrot.lane.b32.xlu1 %v4940_v19, %s6853_s16 }
 0x1bb   : > { %5016 = vrot.lane.b32.xlu0 %v4975_v20, %s6853_s16  ;;  %s6866_s16 = smov 117  }
 0x1be   : > { %1102 = vperm.xlu1 %4863, %v698_v23  }
 0x1bf   : > { %1097 = vperm.xlu0 %4864, %v697_v24  }
 0x1c2   : > { %1283 = vperm.xlu1 %4863, %v1273_v25  }
 0x1c3   : > { %1278 = vperm.xlu0 %4864, %v1272_v26  }
 0x1c6   : > { %1293 = vperm.xlu1 %4863, %v1275_v27  }
 0x1c7   : > { %1288 = vperm.xlu0 %4864, %v1274_v28  }
 0x1f0   : > { %v4867_v29 = vpop.permute.xlu1 %4866 }
 0x1f1   : > { %v4869_v30 = vunpack.i.h.bf16 %v4867_v29  ;;  %v4868_v31 = vunpack.i.l.bf16 %v4867_v29  ;;  %v4902_v32 = vpop.permute.xlu0 %4901 }
 0x1f2   : > { %v4904_v33 = vunpack.i.h.bf16 %v4902_v32  ;;  %v4903_v34 = vunpack.i.l.bf16 %v4902_v32 }
 0x1f3   : > { %v732_v35 = vsel %vm456_vm1, %v4868_v31, %v4869_v30 }
 0x1f4   : > { %v4872_v36 = vpop.permute.xlu1 %4871  ;;  %v731_v37 = vsel %vm456_vm1, %v4903_v34, %v4904_v33 }
 0x1f5   : > { %v4907_v38 = vpop.permute.xlu0 %4906  ;;  %v4602_v39 = vpack.c.bf16 %v732_v35, %v731_v37  ;;  %v4874_v49 = vunpack.i.h.bf16 %v4872_v36  ;;  %v4873_v50 = vunpack.i.l.bf16 %v4872_v36 }
 0x1f6   : > { %v4909_v51 = vunpack.i.h.bf16 %v4907_v38  ;;  %v4908_v52 = vunpack.i.l.bf16 %v4907_v38 }
 0x1f7   : > { %4603 = vmatpush3.bf16.msra.mxu1 %v4602_v39  ;;  %v916_v0 = vsel %vm506_vm5, %v4873_v50, %v4874_v49 }
 0x1f8   : > { %v4877_v41 = vpop.permute.xlu1 %4876  ;;  %4605 = vmatprep.subr.bf16.mxu1 %v4604_v40  ;;  %v915_v63 = vsel %vm506_vm5, %v4908_v52, %v4909_v51 }
 0x1f9   : > { %v4912_v42 = vpop.permute.xlu0 %4911  ;;  %v4879_v56 = vunpack.i.h.bf16 %v4877_v41  ;;  %v4878_v57 = vunpack.i.l.bf16 %v4877_v41  ;;  %v4608_v9 = vpack.c.bf16 %v916_v0, %v915_v63 }
 0x1fa   : > { %v4914_v58 = vunpack.i.h.bf16 %v4912_v42  ;;  %v4913_v59 = vunpack.i.l.bf16 %v4912_v42 }
 0x1fb   : > { %v776_v11 = vsel %vm468_vm2, %v4878_v57, %v4879_v56 }
 0x1fc   : > { %v4882_v43 = vpop.permute.xlu1 %4881  ;;  %v775_v20 = vsel %vm468_vm2, %v4913_v59, %v4914_v58 }
 0x1fd   : > { %v4917_v44 = vpop.permute.xlu0 %4916  ;;  %v4884_v12 = vunpack.i.h.bf16 %v4882_v43  ;;  %v4883_v15 = vunpack.i.l.bf16 %v4882_v43  ;;  %v4610_v39 = vpack.c.bf16 %v776_v11, %v775_v20 }
 0x1fe   : > { %v4919_v21 = vunpack.i.h.bf16 %v4917_v44  ;;  %v4918_v26 = vunpack.i.l.bf16 %v4917_v44 }
 0x1ff   : > { %v960_v44 = vsel %vm518_vm6, %v4883_v15, %v4884_v12 }
 0x200   : > { %v4887_v45 = vpop.permute.xlu1 %4886  ;;  %v959_v43 = vsel %vm518_vm6, %v4918_v26, %v4919_v21 }
 0x201   : > { %v4922_v46 = vpop.permute.xlu0 %4921  ;;  %v4889_v27 = vunpack.i.h.bf16 %v4887_v45  ;;  %v4888_v30 = vunpack.i.l.bf16 %v4887_v45 }
 0x202   : > { %v4924_v31 = vunpack.i.h.bf16 %v4922_v46  ;;  %v4923_v32 = vunpack.i.l.bf16 %v4922_v46 }
 0x203   : > { %v820_v50 = vsel %vm480_vm3, %v4888_v30, %v4889_v27 }
 0x204   : > { %v5952_v47 = vpop.permute.xlu1 %4891  ;;  %v819_v49 = vsel %vm480_vm3, %v4923_v32, %v4924_v31 }
 0x205   : > { %v5954_v48 = vpop.permute.xlu0 %4926  ;;  %v4894_v45 = vunpack.i.h.bf16 %v5952_v47  ;;  %v4893_v51 = vunpack.i.l.bf16 %v5952_v47 }
 0x206   : > { %v4929_v52 = vunpack.i.h.bf16 %v5954_v48  ;;  %v4928_v56 = vunpack.i.l.bf16 %v5954_v48 }
 0x207   : > { %v1004_v11 = vsel %vm530_vm7, %v4893_v51, %v4894_v45 }
 0x208   : > { %v5956_v53 = vpop.permute.xlu1 %4896 }
 0x209   : > { %v5958_v54 = vpop.permute.xlu0 %4931  ;;  %v4899_v47 = vunpack.i.h.bf16 %v5956_v53  ;;  %v4898_v12 = vunpack.i.l.bf16 %v5956_v53 }
 0x20a   : > { %v4934_v21 = vunpack.i.h.bf16 %v5958_v54 }
 0x20c   : > { %v4937_v61 = vpop.permute.xlu1 %4936 }
 0x20d   : > { %v4939_v1 = vunpack.i.h.bf16 %v4937_v61  ;;  %v4938_v4 = vunpack.i.l.bf16 %v4937_v61  ;;  %v4972_v5 = vpop.permute.xlu0 %4971 }
 0x20e   : > { %v4974_v6 = vunpack.i.h.bf16 %v4972_v5  ;;  %v4973_v7 = vunpack.i.l.bf16 %v4972_v5  ;;  %v4616_v5 = vpack.c.bf16 %v960_v44, %v959_v43 }
 0x20f   : > { %v734_v8 = vsel %vm456_vm1, %v4938_v4, %v4939_v1 }
 0x210   : > { %v4942_v16 = vpop.permute.xlu1 %4941  ;;  %v733_v19 = vsel %vm456_vm1, %v4973_v7, %v4974_v6  ;;  %v4618_v6 = vpack.c.bf16 %v820_v50, %v819_v49 }
 0x211   : > { %v4944_v22 = vunpack.i.h.bf16 %v4942_v16  ;;  %v4943_v23 = vunpack.i.l.bf16 %v4942_v16  ;;  %v4977_v24 = vpop.permute.xlu0 %4976  ;;  %v4606_v25 = vpack.c.bf16 %v734_v8, %v733_v19 }
 0x212   : > { %v4979_v28 = vunpack.i.h.bf16 %v4977_v24  ;;  %v4978_v29 = vunpack.i.l.bf16 %v4977_v24 }
 0x213   : > { %4607 = vmatpush3.bf16.msra.mxu1 %v4606_v25  ;;  %v918_v33 = vsel %vm506_vm5, %v4943_v23, %v4944_v22  ;;  %v4933_v22 = vunpack.i.l.bf16 %v5958_v54  ;;  %v864_v54 = vsel %vm492_vm4, %v4898_v12, %v4899_v47 }
 0x214   : > { %v4947_v34 = vpop.permute.xlu1 %4946  ;;  %4609 = vmatprep.subr.bf16.mxu1 %v4608_v9  ;;  %v917_v35 = vsel %vm506_vm5, %v4978_v29, %v4979_v28  ;;  %v1003_v9 = vsel %vm530_vm7, %v4928_v56, %v4929_v52 }
 0x215   : > { %v4949_v36 = vunpack.i.h.bf16 %v4947_v34  ;;  %v4948_v37 = vunpack.i.l.bf16 %v4947_v34  ;;  %v4982_v38 = vpop.permute.xlu0 %4981  ;;  %v4612_v40 = vpack.c.bf16 %v918_v33, %v917_v35  ;;  %v4624_v31 = vpack.c.bf16 %v1004_v11, %v1003_v9 }
 0x216   : > { %v4984_v41 = vunpack.i.h.bf16 %v4982_v38  ;;  %v4983_v42 = vunpack.i.l.bf16 %v4982_v38  ;;  %v863_v34 = vsel %vm492_vm4, %v4933_v22, %v4934_v21 }
 0x217   : > { %4611 = vmatpush3.bf16.msra.mxu1 %v4610_v39  ;;  %v778_v46 = vsel %vm468_vm2, %v4948_v37, %v4949_v36 }
 0x218   : > { %v4952_v57 = vpop.permute.xlu1 %4951  ;;  %4613 = vmatprep.subr.bf16.mxu1 %v4612_v40  ;;  %v777_v58 = vsel %vm468_vm2, %v4983_v42, %v4984_v41  ;;  %v4626_v41 = vpack.c.bf16 %v864_v54, %v863_v34  ;;  %v1269_v54 = vld [vmem:[%s6845_s5 + $0x8] sm:$0xff] }
 0x219   : > { %v4954_v59 = vunpack.i.h.bf16 %v4952_v57  ;;  %v4953_v61 = vunpack.i.l.bf16 %v4952_v57  ;;  %v4987_v63 = vpop.permute.xlu0 %4986  ;;  %v4614_v0 = vpack.c.bf16 %v778_v46, %v777_v58 }
 0x21a   : > { %v4989_v1 = vunpack.i.h.bf16 %v4987_v63  ;;  %v4988_v4 = vunpack.i.l.bf16 %v4987_v63 }
 0x21b   : > { %4615 = vmatpush3.bf16.msra.mxu1 %v4614_v0  ;;  %v962_v7 = vsel %vm518_vm6, %v4953_v61, %v4954_v59  ;;  %v691_v59 = vld [vmem:[%s6843_s3] sm:$0xff] }
 0x21c   : > { %v4957_v8 = vpop.permute.xlu1 %4956  ;;  %4617 = vmatprep.subr.bf16.mxu1 %v4616_v5  ;;  %v961_v48 = vsel %vm518_vm6, %v4988_v4, %v4989_v1  ;;  %v695_v1 = vld [vmem:[%s6843_s3 + $0x20] sm:$0xff] }
 0x21d   : > { %v4959_v15 = vunpack.i.h.bf16 %v4957_v8  ;;  %v4958_v16 = vunpack.i.l.bf16 %v4957_v8  ;;  %v4992_v19 = vpop.permute.xlu0 %4991  ;;  %v4620_v20 = vpack.c.bf16 %v962_v7, %v961_v48  ;;  %v694_v48 = vld [vmem:[%s6843_s3 + $0x18] sm:$0xff] }
 0x21e   : > { %v4994_v23 = vunpack.i.h.bf16 %v4992_v19  ;;  %v4993_v24 = vunpack.i.l.bf16 %v4992_v19 }
 0x21f   : > { %4619 = vmatpush3.bf16.msra.mxu1 %v4618_v6  ;;  %v822_v25 = vsel %vm480_vm3, %v4958_v16, %v4959_v15  ;;  %v696_v15 = vld [vmem:[%s6843_s3 + $0x28] sm:$0xff]  ;;  %v1268_v16 = vld [vmem:[%s6845_s5] sm:$0xff] }
 0x220   : > { %v4962_v26 = vpop.permute.xlu1 %4961  ;;  %4621 = vmatprep.subr.bf16.mxu1 %v4620_v20  ;;  %v821_v27 = vsel %vm480_vm3, %v4993_v24, %v4994_v23 }
 0x221   : > { %v4964_v28 = vunpack.i.h.bf16 %v4962_v26  ;;  %v4963_v29 = vunpack.i.l.bf16 %v4962_v26  ;;  %v4997_v53 = vpop.permute.xlu0 %4996  ;;  %v4622_v30 = vpack.c.bf16 %v822_v25, %v821_v27 }
 0x222   : > { %v4999_v32 = vunpack.i.h.bf16 %v4997_v53  ;;  %v4998_v33 = vunpack.i.l.bf16 %v4997_v53 }
 0x223   : > { %4623 = vmatpush3.bf16.msra.mxu1 %v4622_v30  ;;  %v1006_v35 = vsel %vm530_vm7, %v4963_v29, %v4964_v28 }
 0x224   : > { %v4967_v36 = vpop.permute.xlu1 %4966  ;;  %4625 = vmatprep.subr.bf16.mxu1 %v4624_v31  ;;  %v1005_v37 = vsel %vm530_vm7, %v4998_v33, %v4999_v32 }
 0x225   : > { %v4969_v38 = vunpack.i.h.bf16 %v4967_v36  ;;  %v4968_v39 = vunpack.i.l.bf16 %v4967_v36  ;;  %v5002_v40 = vpop.permute.xlu0 %5001  ;;  %v4628_v42 = vpack.c.bf16 %v1006_v35, %v1005_v37  ;;  %v1270_v35 = vld [vmem:[%s6845_s5 + $0x10] sm:$0xff]  ;;  %v1271_v36 = vld [vmem:[%s6845_s5 + $0x18] sm:$0xff] }
 0x226   : > { %v5004_v43 = vunpack.i.h.bf16 %v5002_v40  ;;  %v5003_v44 = vunpack.i.l.bf16 %v5002_v40 }
 0x227   : > { %4627 = vmatpush3.bf16.msra.mxu1 %v4626_v41  ;;  %v866_v45 = vsel %vm492_vm4, %v4968_v39, %v4969_v38 }
 0x228   : > { %v5012_v46 = vpop.permute.xlu1 %5011  ;;  %4629 = vmatprep.subr.bf16.mxu1 %v4628_v42  ;;  %v865_v49 = vsel %vm492_vm4, %v5003_v44, %v5004_v43 }
 0x229   : > { %v5014_v50 = vunpack.i.h.bf16 %v5012_v46  ;;  %v5013_v51 = vunpack.i.l.bf16 %v5012_v46  ;;  %v5007_v52 = vpop.permute.xlu0 %5006  ;;  %v4630_v56 = vpack.c.bf16 %v866_v45, %v865_v49 }
 0x22a   : > { %v5009_v57 = vunpack.i.h.bf16 %v5007_v52  ;;  %v5008_v58 = vunpack.i.l.bf16 %v5007_v52 }
 0x22b   : > { %4631 = vmatpush3.bf16.msra.mxu1 %v4630_v56  ;;  %v1048_v61 = vsel %vm542_vm8, %v5013_v51, %v5014_v50 }
 0x22c   : > { %v5022_v63 = vpop.permute.xlu1 %5021  ;;  %v1047_v0 = vsel %vm542_vm8, %v5008_v58, %v5009_v57 }
 0x22d   : > { %v5024_v4 = vunpack.i.h.bf16 %v5022_v63  ;;  %v5023_v5 = vunpack.i.l.bf16 %v5022_v63  ;;  %v5017_v6 = vpop.permute.xlu0 %5016  ;;  %v4632_v7 = vpack.c.bf16 %v1048_v61, %v1047_v0 }
 0x22e   : > { %v5019_v47 = vunpack.i.h.bf16 %v5017_v6  ;;  %v5018_v8 = vunpack.i.l.bf16 %v5017_v6  ;;  %1177 = vmatmul.mubr.f32.vlgmr.msra.gmra.mrb[0].mxu1 %v691_v59 }
 0x22f   : > { %4633 = vmatprep.subr.bf16.mxu0 %v4632_v7  ;;  %1181 = vmatprep.mubr.f32.mxu1 %v695_v1  ;;  %v1050_v9 = vsel %vm542_vm8, %v5023_v5, %v5024_v4 }
 0x230   : > { %4635 = vmatpush3.bf16.msra.mxu0 %v4632_v7  ;;  %v1049_v11 = vsel %vm542_vm8, %v5018_v8, %v5019_v47  ;;  %v4140_v47 = vld [vmem:[%s6844_s4 + $0x10] sm:$0xff]  ;;  %v4149_v8 = vld [vmem:[%s6846_s6 + $0x28] sm:$0xff] }
 0x231   : > { %v4636_v12 = vpack.c.bf16 %v1050_v9, %v1049_v11  ;;  %v4151_v9 = vld [vmem:[%s6846_s6 + $0x38] sm:$0xff]  ;;  %v4150_v11 = vld [vmem:[%s6846_s6 + $0x30] sm:$0xff] }
 0x232   : > { %1182 = vmatmul.mubr.f32.gmra.mrb[2].mxu1 %v694_v48  ;;  %v4148_v48 = vld [vmem:[%s6846_s6 + $0x20] sm:$0xff] }
 0x233   : > { %4637 = vmatprep.subr.bf16.mxu0 %v4636_v12 }
 0x234   : > { %4639 = vmatpush3.bf16.msra.mxu0 %v4636_v12 }
 0x237   : > { %4506 = vmatmul.mubr.msk.f32.vlgmr.msra.gmra.mrb[4].mxu0 %vm1105_vm10, %v696_v15 }
 0x238   : > { %4512 = vmatprep.mubr.msk.f32.mxu0 %vm1296_vm11, %v1268_v16 }
 0x23d   : > { %v1103_v25 = vpop.permute.xlu1 %1102 }
 0x23e   : > { %v1098_v26 = vpop.permute.xlu0 %1097 }
 0x241   : > { %v1284_v37 = vpop.permute.xlu1 %1283 }
 0x242   : > { %v1279_v39 = vpop.permute.xlu0 %1278 }
 0x245   : > { %v1294_v59 = vpop.permute.xlu1 %1293 }
 0x246   : > { %v1289_v61 = vpop.permute.xlu0 %1288 }
 0x301   : > { %v4223_v19 = vpop.f32.mrb[0].mxu1 }
 0x302   : > { %v4224_v20 = vpop.f32.mrb[1].mxu1 }
 0x303   : > { %v4225_v21 = vadd.f32 %v4224_v20, %v4223_v19 }
 0x305   : > { %v4226_v22 = vpop.f32.mrb[2].mxu1  ;;  %v1179_v29 = vadd.f32 %v4225_v21, %v1098_v26 }
 0x306   : > { %v4227_v23 = vpop.f32.mrb[3].mxu1 }
 0x307   : > { %v4228_v24 = vadd.f32 %v4227_v23, %v4226_v22 }
 0x309   : > { %v1184_v27 = vadd.f32 %v4228_v24, %v1103_v25 }
 0x30a   : > { %v4507_v28 = vpop.f32.mrb[4].mxu0 }
 0x30b   : > { %v1259_v53 = vadd.f32 %v4507_v28, %v1184_v27  ;;  %v1253_v30 = vpop.f32.mrb[5].mxu0 }
 0x30c   : > { %v1254_v31 = vadd.f32 %v1253_v30, %v1179_v29 }
 0x30d   : > { %v1263_v32 = vmax.f32 %v1259_v53, 0.0 }
 0x30e   : > { %v1262_v33 = vmax.f32 %v1254_v31, 0.0 }
 0x310   : > { %v4640_v34 = vpack.c.bf16 %v1263_v32, %v1262_v33 }
 0x312   : > { %4641 = vmatprep.subr.bf16.mxu0 %v4640_v34 }
 0x313   : > { %4643 = vmatpush3.bf16.msra.mxu0 %v4640_v34 }
 0x316   : > { %4513 = vmatmul.mubr.msk.f32.vlgmr.msra.gmra.mrb[6].mxu0 %vm1296_vm11, %v1269_v54 }
 0x317   : > { %4515 = vmatprep.mubr.msk.f32.mxu0 %vm1296_vm11, %v1270_v35 }
 0x31a   : > { %4516 = vmatmul.mubr.msk.f32.gmra.mrb[8].mxu0 %vm1296_vm11, %v1271_v36 }
 0x3e9   : > { %v4514_v38 = vpop.f32.mrb[6].mxu0 }
 0x3ea   : > { %v1381_v40 = vadd.f32 %v4514_v38, %v1284_v37  ;;  %v1375_v41 = vpop.f32.mrb[7].mxu0 }
 0x3eb   : > { %v1376_v42 = vadd.f32 %v1375_v41, %v1279_v39 }
 0x3ec   : > { %v1395_v43 = vadd.f32 %v1381_v40, %v5854_v60 }
 0x3ed   : > { %v1394_v44 = vadd.f32 %v1376_v42, %v5857_v62  ;;  %v4517_v45 = vpop.f32.mrb[8].mxu0 }
 0x3ee   : > { %v1399_v46 = vmax.f32 %v1395_v43, 0.0  ;;  %v1385_v49 = vpop.f32.mrb[9].mxu0  ;;  %v1391_v63 = vadd.f32 %v4517_v45, %v1294_v59 }
 0x3ef   : > { %v1398_v50 = vmax.f32 %v1394_v44, 0.0  ;;  %v1386_v0 = vadd.f32 %v1385_v49, %v1289_v61 }
 0x3f0   : > { %v6030_v51 = vmul.f32 %v5851_v55, %v1399_v46 }
 0x3f1   : > { %v6033_v52 = vmul.f32 %v5851_v55, %v1398_v50 }
 0x3f2   : > { %v5025_v56 = vpack.i.bf16 %v6030_v51, %v5708_v10  ;;  %v5030_v62 = vpack.i.bf16 %v5865_v2, %v6030_v51  ;;  %v1397_v2 = vadd.f32 %v1391_v63, %v5886_v13 }
 0x3f3   : > { %v4644_v57 = vpack.c.bf16 %v6030_v51, %v6033_v52  ;;  %v5060_v60 = vpack.i.bf16 %v6033_v52, %v5708_v10  ;;  %v5065_v58 = vpack.i.bf16 %v5868_v3, %v6033_v52  ;;  %v1396_v3 = vadd.f32 %v1386_v0, %v5889_v14 }
 0x3f4   : > { %5026 = vrot.lane.b32.xlu1 %v5025_v56, %s5700_s28  ;;  %v1401_v1 = vmax.f32 %v1397_v2, 0.0 }
 0x3f5   : > { %4645 = vmatprep.subr.bf16.mxu0 %v4644_v57  ;;  %5061 = vrot.lane.b32.xlu0 %v5060_v60, %s5700_s28  ;;  %v1400_v4 = vmax.f32 %v1396_v3, 0.0 }
 0x3f6   : > { %v6060_v5 = vmul.f32 %v5851_v55, %v1401_v1 }
 0x3f7   : > { %v6063_v6 = vmul.f32 %v5851_v55, %v1400_v4 }
 0x3f8   : > { %5031 = vrot.lane.b32.xlu1 %v5030_v62, %s6861_s13  ;;  %v5095_v13 = vpack.i.bf16 %v6060_v5, %v5708_v10  ;;  %v5100_v7 = vpack.i.bf16 %v5897_v17, %v6060_v5  ;;  %v4136_v17 = vld [vmem:[%s6843_s3 + $0x40] sm:$0xff] }
 0x3f9   : > { %5066 = vrot.lane.b32.xlu0 %v5065_v58, %s6861_s13  ;;  %v5130_v14 = vpack.i.bf16 %v6063_v6, %v5708_v10  ;;  %v5135_v55 = vpack.i.bf16 %v5900_v18, %v6063_v6  ;;  %v4135_v10 = vld [vmem:[%s6843_s3 + $0x38] sm:$0xff]  ;;  %4526 = vmatprep.mubr.msk.f32.mxu1 %vm1105_vm10, %v4136_v17  ;;  %v4648_v27 = vpack.c.bf16 %v6060_v5, %v6063_v6 }
 0x3fa   : > { %1896 = vmatprep.mubr.f32.mxu0 %v4135_v10  ;;  %v4141_v18 = vld [vmem:[%s6844_s4 + $0x18] sm:$0xff] }
 0x3fc   : > { %5036 = vrot.lane.b32.xlu1 %v5025_v56, %s6863_s30 }
 0x3fd   : > { %5071 = vrot.lane.b32.xlu0 %v5060_v60, %s6863_s30 }
 0x400   : > { %5041 = vrot.lane.b32.xlu1 %v5030_v62, %s5704_s14 }
 0x401   : > { %5076 = vrot.lane.b32.xlu0 %v5065_v58, %s5704_s14 }
 0x404   : > { %5046 = vrot.lane.b32.xlu1 %v5025_v56, %s6859_s27 }
 0x405   : > { %5081 = vrot.lane.b32.xlu0 %v5060_v60, %s6859_s27 }
 0x408   : > { %5051 = vrot.lane.b32.xlu1 %v5030_v62, %s6857_s15 }
 0x409   : > { %5086 = vrot.lane.b32.xlu0 %v5065_v58, %s6857_s15 }
 0x40c   : > { %5056 = vrot.lane.b32.xlu1 %v5025_v56, %s6865_s23 }
 0x40d   : > { %5091 = vrot.lane.b32.xlu0 %v5060_v60, %s6865_s23 }
 0x410   : > { %5096 = vrot.lane.b32.xlu1 %v5095_v13, %s5700_s28 }
 0x411   : > { %5131 = vrot.lane.b32.xlu0 %v5130_v14, %s5700_s28 }
 0x414   : > { %5101 = vrot.lane.b32.xlu1 %v5100_v7, %s6861_s13 }
 0x415   : > { %5136 = vrot.lane.b32.xlu0 %v5135_v55, %s6861_s13 }
 0x418   : > { %5106 = vrot.lane.b32.xlu1 %v5095_v13, %s6863_s30 }
 0x419   : > { %5141 = vrot.lane.b32.xlu0 %v5130_v14, %s6863_s30 }
 0x41c   : > { %5111 = vrot.lane.b32.xlu1 %v5100_v7, %s5704_s14 }
 0x41d   : > { %5146 = vrot.lane.b32.xlu0 %v5135_v55, %s5704_s14 }
 0x420   : > { %5116 = vrot.lane.b32.xlu1 %v5095_v13, %s6859_s27 }
 0x421   : > { %5151 = vrot.lane.b32.xlu0 %v5130_v14, %s6859_s27 }
 0x424   : > { %5121 = vrot.lane.b32.xlu1 %v5100_v7, %s6857_s15 }
 0x425   : > { %5156 = vrot.lane.b32.xlu0 %v5135_v55, %s6857_s15 }
 0x428   : > { %5126 = vrot.lane.b32.xlu1 %v5095_v13, %s6865_s23 }
 0x429   : > { %5161 = vrot.lane.b32.xlu0 %v5130_v14, %s6865_s23 }
 0x42c   : > { %5171 = vrot.lane.b32.xlu1 %v5030_v62, %s6866_s16 }
 0x42d   : > { %5166 = vrot.lane.b32.xlu0 %v5065_v58, %s6866_s16 }
 0x430   : > { %5181 = vrot.lane.b32.xlu1 %v5100_v7, %s6866_s16 }
 0x431   : > { %5176 = vrot.lane.b32.xlu0 %v5135_v55, %s6866_s16 }
 0x434   : > { %1823 = vperm.xlu1 %4863, %v4141_v18  }
 0x435   : > { %1818 = vperm.xlu0 %4864, %v4140_v47  }
 0x438   : > { %2005 = vperm.xlu1 %4863, %v4149_v8  }
 0x439   : > { %2000 = vperm.xlu0 %4864, %v4148_v48  }
 0x43c   : > { %2015 = vperm.xlu1 %4863, %v4151_v9  }
 0x43d   : > { %2010 = vperm.xlu0 %4864, %v4150_v11  }
 0x466   : > { %v5027_v12 = vpop.permute.xlu1 %5026 }
 0x467   : > { %v5029_v15 = vunpack.i.h.bf16 %v5027_v12  ;;  %v5028_v16 = vunpack.i.l.bf16 %v5027_v12  ;;  %v5062_v19 = vpop.permute.xlu0 %5061 }
 0x468   : > { %v5064_v20 = vunpack.i.h.bf16 %v5062_v19  ;;  %v5063_v21 = vunpack.i.l.bf16 %v5062_v19 }
 0x469   : > { %v1453_v22 = vsel %vm456_vm1, %v5028_v16, %v5029_v15 }
 0x46a   : > { %v1452_v23 = vsel %vm456_vm1, %v5063_v21, %v5064_v20  ;;  %v5032_v24 = vpop.permute.xlu1 %5031 }
 0x46b   : > { %v5067_v25 = vpop.permute.xlu0 %5066  ;;  %v4646_v26 = vpack.c.bf16 %v1453_v22, %v1452_v23  ;;  %v5034_v54 = vunpack.i.h.bf16 %v5032_v24  ;;  %v5033_v35 = vunpack.i.l.bf16 %v5032_v24 }
 0x46c   : > { %v5069_v36 = vunpack.i.h.bf16 %v5067_v25  ;;  %v5068_v37 = vunpack.i.l.bf16 %v5067_v25 }
 0x46d   : > { %4647 = vmatpush3.bf16.msra.mxu0 %v4646_v26  ;;  %v1637_v46 = vsel %vm506_vm5, %v5033_v35, %v5034_v54 }
 0x46e   : > { %v5037_v28 = vpop.permute.xlu1 %5036  ;;  %4649 = vmatprep.subr.bf16.mxu0 %v4648_v27  ;;  %v1636_v45 = vsel %vm506_vm5, %v5068_v37, %v5069_v36 }
 0x46f   : > { %v5072_v29 = vpop.permute.xlu0 %5071  ;;  %v5039_v40 = vunpack.i.h.bf16 %v5037_v28  ;;  %v5038_v41 = vunpack.i.l.bf16 %v5037_v28  ;;  %v4652_v59 = vpack.c.bf16 %v1637_v46, %v1636_v45 }
 0x470   : > { %v5074_v42 = vunpack.i.h.bf16 %v5072_v29  ;;  %v5073_v43 = vunpack.i.l.bf16 %v5072_v29 }
 0x471   : > { %v1497_v62 = vsel %vm468_vm2, %v5038_v41, %v5039_v40 }
 0x472   : > { %v5042_v53 = vpop.permute.xlu1 %5041  ;;  %v1496_v61 = vsel %vm468_vm2, %v5073_v43, %v5074_v42 }
 0x473   : > { %v5077_v30 = vpop.permute.xlu0 %5076  ;;  %v5044_v63 = vunpack.i.h.bf16 %v5042_v53  ;;  %v5043_v0 = vunpack.i.l.bf16 %v5042_v53  ;;  %v4654_v20 = vpack.c.bf16 %v1497_v62, %v1496_v61 }
 0x474   : > { %v5079_v1 = vunpack.i.h.bf16 %v5077_v30  ;;  %v5078_v55 = vunpack.i.l.bf16 %v5077_v30 }
 0x475   : > { %v1681_v25 = vsel %vm518_vm6, %v5043_v0, %v5044_v63 }
 0x476   : > { %v5047_v31 = vpop.permute.xlu1 %5046  ;;  %v1680_v24 = vsel %vm518_vm6, %v5078_v55, %v5079_v1 }
 0x477   : > { %v5082_v32 = vpop.permute.xlu0 %5081  ;;  %v5049_v10 = vunpack.i.h.bf16 %v5047_v31  ;;  %v5048_v47 = vunpack.i.l.bf16 %v5047_v31  ;;  %v4660_v43 = vpack.c.bf16 %v1681_v25, %v1680_v24 }
 0x478   : > { %v5084_v8 = vunpack.i.h.bf16 %v5082_v32  ;;  %v5083_v48 = vunpack.i.l.bf16 %v5082_v32 }
 0x479   : > { %v1541_v26 = vsel %vm480_vm3, %v5048_v47, %v5049_v10 }
 0x47a   : > { %v6122_v33 = vpop.permute.xlu1 %5051  ;;  %v1540_v27 = vsel %vm480_vm3, %v5083_v48, %v5084_v8 }
 0x47b   : > { %v6124_v34 = vpop.permute.xlu0 %5086  ;;  %v5054_v28 = vunpack.i.h.bf16 %v6122_v33  ;;  %v5053_v53 = vunpack.i.l.bf16 %v6122_v33 }
 0x47c   : > { %v5089_v30 = vunpack.i.h.bf16 %v6124_v34  ;;  %v5088_v31 = vunpack.i.l.bf16 %v6124_v34 }
 0x47e   : > { %v6126_v38 = vpop.permute.xlu1 %5056 }
 0x47f   : > { %v6128_v39 = vpop.permute.xlu0 %5091  ;;  %v5059_v33 = vunpack.i.h.bf16 %v6126_v38 }
 0x480   : > { %v5093_v61 = vunpack.i.l.bf16 %v6128_v39 }
 0x482   : > { %v5097_v44 = vpop.permute.xlu1 %5096 }
 0x483   : > { %v5099_v49 = vunpack.i.h.bf16 %v5097_v44  ;;  %v5098_v50 = vunpack.i.l.bf16 %v5097_v44  ;;  %v5132_v56 = vpop.permute.xlu0 %5131  ;;  %v4662_v44 = vpack.c.bf16 %v1541_v26, %v1540_v27 }
 0x484   : > { %v5134_v57 = vunpack.i.h.bf16 %v5132_v56  ;;  %v5133_v60 = vunpack.i.l.bf16 %v5132_v56  ;;  %v5058_v56 = vunpack.i.l.bf16 %v6126_v38 }
 0x485   : > { %v1455_v58 = vsel %vm456_vm1, %v5098_v50, %v5099_v49  ;;  %v1724_v49 = vsel %vm530_vm7, %v5088_v31, %v5089_v30  ;;  %v1725_v50 = vsel %vm530_vm7, %v5053_v53, %v5054_v28 }
 0x486   : > { %v1454_v2 = vsel %vm456_vm1, %v5133_v60, %v5134_v57  ;;  %v5102_v3 = vpop.permute.xlu1 %5101  ;;  %v1585_v55 = vsel %vm492_vm4, %v5058_v56, %v5059_v33  ;;  %v4139_v33 = vld [vmem:[%s6843_s3 + $0x58] sm:$0xff] }
 0x487   : > { %v5104_v4 = vunpack.i.h.bf16 %v5102_v3  ;;  %v5103_v13 = vunpack.i.l.bf16 %v5102_v3  ;;  %v5137_v14 = vpop.permute.xlu0 %5136  ;;  %v4650_v7 = vpack.c.bf16 %v1455_v58, %v1454_v2 }
 0x488   : > { %v5139_v17 = vunpack.i.h.bf16 %v5137_v14  ;;  %v5138_v18 = vunpack.i.l.bf16 %v5137_v14 }
 0x489   : > { %4651 = vmatpush3.bf16.msra.mxu0 %v4650_v7  ;;  %v1639_v9 = vsel %vm506_vm5, %v5103_v13, %v5104_v4  ;;  %v4668_v7 = vpack.c.bf16 %v1725_v50, %v1724_v49 }
 0x48a   : > { %v5107_v11 = vpop.permute.xlu1 %5106  ;;  %4653 = vmatprep.subr.bf16.mxu0 %v4652_v59  ;;  %v1638_v12 = vsel %vm506_vm5, %v5138_v18, %v5139_v17  ;;  %v5094_v59 = vunpack.i.h.bf16 %v6128_v39 }
 0x48b   : > { %v5109_v15 = vunpack.i.h.bf16 %v5107_v11  ;;  %v5108_v16 = vunpack.i.l.bf16 %v5107_v11  ;;  %v5142_v19 = vpop.permute.xlu0 %5141  ;;  %v4656_v21 = vpack.c.bf16 %v1639_v9, %v1638_v12 }
 0x48c   : > { %v5144_v22 = vunpack.i.h.bf16 %v5142_v19  ;;  %v5143_v23 = vunpack.i.l.bf16 %v5142_v19  ;;  %v1584_v10 = vsel %vm492_vm4, %v5093_v61, %v5094_v59 }
 0x48d   : > { %v1499_v29 = vsel %vm468_vm2, %v5108_v16, %v5109_v15  ;;  %4655 = vmatpush3.bf16.msra.mxu0 %v4654_v20  ;;  %v4670_v12 = vpack.c.bf16 %v1585_v55, %v1584_v10 }
 0x48e   : > { %v1498_v32 = vsel %vm468_vm2, %v5143_v23, %v5144_v22  ;;  %v5112_v54 = vpop.permute.xlu1 %5111  ;;  %4657 = vmatprep.subr.bf16.mxu0 %v4656_v21 }
 0x48f   : > { %v5114_v35 = vunpack.i.h.bf16 %v5112_v54  ;;  %v5113_v36 = vunpack.i.l.bf16 %v5112_v54  ;;  %v5147_v37 = vpop.permute.xlu0 %5146  ;;  %v4658_v40 = vpack.c.bf16 %v1499_v29, %v1498_v32  ;;  %v4134_v29 = vld [vmem:[%s6843_s3 + $0x30] sm:$0xff] }
 0x490   : > { %v5149_v41 = vunpack.i.h.bf16 %v5147_v37  ;;  %v5148_v42 = vunpack.i.l.bf16 %v5147_v37  ;;  %v4138_v32 = vld [vmem:[%s6843_s3 + $0x50] sm:$0xff] }
 0x491   : > { %4659 = vmatpush3.bf16.msra.mxu0 %v4658_v40  ;;  %v1683_v45 = vsel %vm518_vm6, %v5113_v36, %v5114_v35 }
 0x492   : > { %v5117_v46 = vpop.permute.xlu1 %5116  ;;  %4661 = vmatprep.subr.bf16.mxu0 %v4660_v43  ;;  %v1682_v34 = vsel %vm518_vm6, %v5148_v42, %v5149_v41  ;;  %v4137_v42 = vld [vmem:[%s6843_s3 + $0x48] sm:$0xff] }
 0x493   : > { %v5119_v57 = vunpack.i.h.bf16 %v5117_v46  ;;  %v5118_v60 = vunpack.i.l.bf16 %v5117_v46  ;;  %v5152_v62 = vpop.permute.xlu0 %5151  ;;  %v4664_v58 = vpack.c.bf16 %v1683_v45, %v1682_v34  ;;  %v4144_v46 = vld [vmem:[%s6845_s5 + $0x20] sm:$0xff] }
 0x494   : > { %v5154_v63 = vunpack.i.h.bf16 %v5152_v62  ;;  %v5153_v0 = vunpack.i.l.bf16 %v5152_v62 }
 0x495   : > { %v1543_v2 = vsel %vm480_vm3, %v5118_v60, %v5119_v57  ;;  %4663 = vmatpush3.bf16.msra.mxu0 %v4662_v44 }
 0x496   : > { %v1542_v3 = vsel %vm480_vm3, %v5153_v0, %v5154_v63  ;;  %v5122_v1 = vpop.permute.xlu1 %5121  ;;  %4665 = vmatprep.subr.bf16.mxu0 %v4664_v58 }
 0x497   : > { %v5124_v4 = vunpack.i.h.bf16 %v5122_v1  ;;  %v5123_v13 = vunpack.i.l.bf16 %v5122_v1  ;;  %v5157_v38 = vpop.permute.xlu0 %5156  ;;  %v4666_v14 = vpack.c.bf16 %v1543_v2, %v1542_v3 }
 0x498   : > { %v5159_v17 = vunpack.i.h.bf16 %v5157_v38  ;;  %v5158_v39 = vunpack.i.l.bf16 %v5157_v38  ;;  %v4145_v38 = vld [vmem:[%s6845_s5 + $0x28] sm:$0xff] }
 0x499   : > { %4667 = vmatpush3.bf16.msra.mxu0 %v4666_v14  ;;  %v1727_v18 = vsel %vm530_vm7, %v5123_v13, %v5124_v4  ;;  %v4146_v14 = vld [vmem:[%s6845_s5 + $0x30] sm:$0xff] }
 0x49a   : > { %v5127_v47 = vpop.permute.xlu1 %5126  ;;  %4669 = vmatprep.subr.bf16.mxu0 %v4668_v7  ;;  %v1726_v8 = vsel %vm530_vm7, %v5158_v39, %v5159_v17  ;;  %v4147_v7 = vld [vmem:[%s6845_s5 + $0x38] sm:$0xff] }
 0x49b   : > { %v5129_v48 = vunpack.i.h.bf16 %v5127_v47  ;;  %v5128_v9 = vunpack.i.l.bf16 %v5127_v47  ;;  %v5162_v11 = vpop.permute.xlu0 %5161  ;;  %v4672_v15 = vpack.c.bf16 %v1727_v18, %v1726_v8 }
 0x49c   : > { %v5164_v16 = vunpack.i.h.bf16 %v5162_v11  ;;  %v5163_v19 = vunpack.i.l.bf16 %v5162_v11 }
 0x49d   : > { %v1587_v20 = vsel %vm492_vm4, %v5128_v9, %v5129_v48  ;;  %4671 = vmatpush3.bf16.msra.mxu0 %v4670_v12 }
 0x49e   : > { %v1586_v21 = vsel %vm492_vm4, %v5163_v19, %v5164_v16  ;;  %v5172_v22 = vpop.permute.xlu1 %5171  ;;  %4673 = vmatprep.subr.bf16.mxu0 %v4672_v15 }
 0x49f   : > { %v5174_v23 = vunpack.i.h.bf16 %v5172_v22  ;;  %v5173_v24 = vunpack.i.l.bf16 %v5172_v22  ;;  %v5167_v25 = vpop.permute.xlu0 %5166  ;;  %v4674_v26 = vpack.c.bf16 %v1587_v20, %v1586_v21  ;;  %v6202_v22 = vld [vmem:[%s6851_s11] ss:$0 sm:$0xff] }
 0x4a0   : > { %v5169_v27 = vunpack.i.h.bf16 %v5167_v25  ;;  %v5168_v28 = vunpack.i.l.bf16 %v5167_v25 }
 0x4a1   : > { %4675 = vmatpush3.bf16.msra.mxu0 %v4674_v26  ;;  %v1769_v53 = vsel %vm542_vm8, %v5173_v24, %v5174_v23  ;;  %v6208_v26 = vld [vmem:[#allocation2] sm:$0xff] }
 0x4a2   : > { %v5182_v30 = vpop.permute.xlu1 %5181  ;;  %v1768_v31 = vsel %vm542_vm8, %v5168_v28, %v5169_v27 }
 0x4a3   : > { %v5184_v54 = vunpack.i.h.bf16 %v5182_v30  ;;  %v5183_v35 = vunpack.i.l.bf16 %v5182_v30  ;;  %v5177_v36 = vpop.permute.xlu0 %5176  ;;  %v4676_v37 = vpack.c.bf16 %v1769_v53, %v1768_v31  ;;  %v6212_v30 = vld [vmem:[#allocation2 + $0x28] sm:$0xff] }
 0x4a4   : > { %v5179_v40 = vunpack.i.h.bf16 %v5177_v36  ;;  %v5178_v41 = vunpack.i.l.bf16 %v5177_v36  ;;  %1897 = vmatmul.mubr.f32.vlgmr.msra.gmra.mrb[10].mxu0 %v4134_v29 }
 0x4a5   : > { %4677 = vmatprep.subr.bf16.mxu1 %v4676_v37  ;;  %1901 = vmatprep.mubr.f32.mxu0 %v4138_v32  ;;  %v1771_v43 = vsel %vm542_vm8, %v5183_v35, %v5184_v54 }
 0x4a6   : > { %4679 = vmatpush3.bf16.msra.mxu1 %v4676_v37  ;;  %v1770_v44 = vsel %vm542_vm8, %v5178_v41, %v5179_v40  ;;  %v6244_v40 = vld [vmem:[#allocation2 + $0x58] sm:$0xff]  ;;  %v6247_v41 = vld [vmem:[#allocation2 + $0x40] sm:$0xff] }
 0x4a7   : > { %v4680_v45 = vpack.c.bf16 %v1771_v43, %v1770_v44  ;;  %v2132_v44 = vld [vmem:[%s6847_s7 + $0x8] sm:$0xff] }
 0x4a8   : > { %1902 = vmatmul.mubr.f32.gmra.mrb[12].mxu0 %v4137_v42 }
 0x4a9   : > { %4681 = vmatprep.subr.bf16.mxu1 %v4680_v45 }
 0x4aa   : > { %4683 = vmatpush3.bf16.msra.mxu1 %v4680_v45  ;;  %v2133_v45 = vld [vmem:[%s6847_s7 + $0x10] sm:$0xff] }
 0x4ab   : > { %4547 = vmatprep.mubr.msk.f32.mxu0 %vm1105_vm10, %v2133_v45 }
 0x4ad   : > { %4527 = vmatmul.mubr.msk.f32.vlgmr.msra.gmra.mrb[4].mxu1 %vm1105_vm10, %v4139_v33  ;;  %v2156_v33 = vld [vmem:[%s6848_s8 + $0x8] sm:$0xff] }
 0x4ae   : > { %4533 = vmatprep.mubr.msk.f32.mxu1 %vm1296_vm11, %v4144_v46  ;;  %v2155_v46 = vld [vmem:[%s6848_s8] sm:$0xff] }
 0x4b3   : > { %v1824_v62 = vpop.permute.xlu1 %1823 }
 0x4b4   : > { %v1819_v58 = vpop.permute.xlu0 %1818 }
 0x4b7   : > { %v2006_v55 = vpop.permute.xlu1 %2005 }
 0x4b8   : > { %v2001_v10 = vpop.permute.xlu0 %2000 }
 0x4bb   : > { %v2016_v48 = vpop.permute.xlu1 %2015 }
 0x4bc   : > { %v2011_v12 = vpop.permute.xlu0 %2010 }
 0x577   : > { %v4273_v34 = vpop.f32.mrb[10].mxu0 }
 0x578   : > { %v4274_v49 = vpop.f32.mrb[11].mxu0 }
 0x579   : > { %v4275_v50 = vadd.f32 %v4274_v49, %v4273_v34  ;;  %v2158_v34 = vld [vmem:[%s6848_s8 + $0x18] sm:$0xff]  ;;  %v2157_v49 = vld [vmem:[%s6848_s8 + $0x10] sm:$0xff] }
 0x57b   : > { %v4276_v56 = vpop.f32.mrb[12].mxu0  ;;  %v1899_v63 = vadd.f32 %v4275_v50, %v1819_v58  ;;  %v2160_v50 = vld [vmem:[%s6848_s8 + $0x28] sm:$0xff] }
 0x57c   : > { %v4277_v57 = vpop.f32.mrb[13].mxu0 }
 0x57d   : > { %v4278_v60 = vadd.f32 %v4277_v57, %v4276_v56  ;;  %v2159_v56 = vld [vmem:[%s6848_s8 + $0x20] sm:$0xff]  ;;  %v2162_v57 = vld [vmem:[%s6848_s8 + $0x38] sm:$0xff] }
 0x57f   : > { %v1904_v59 = vadd.f32 %v4278_v60, %v1824_v62  ;;  %v2161_v60 = vld [vmem:[%s6848_s8 + $0x30] sm:$0xff] }
 0x580   : > { %v4528_v61 = vpop.f32.mrb[4].mxu1 }
 0x581   : > { %v1979_v0 = vadd.f32 %v4528_v61, %v1904_v59  ;;  %v1973_v2 = vpop.f32.mrb[5].mxu1 }
 0x582   : > { %v1974_v3 = vadd.f32 %v1973_v2, %v1899_v63 }
 0x583   : > { %v1983_v1 = vmax.f32 %v1979_v0, 0.0 }
 0x584   : > { %v1982_v4 = vmax.f32 %v1974_v3, 0.0 }
 0x586   : > { %v4684_v13 = vpack.c.bf16 %v1983_v1, %v1982_v4 }
 0x588   : > { %4685 = vmatprep.subr.bf16.mxu1 %v4684_v13 }
 0x589   : > { %4687 = vmatpush3.bf16.msra.mxu1 %v4684_v13 }
 0x58c   : > { %4534 = vmatmul.mubr.msk.f32.vlgmr.msra.gmra.mrb[6].mxu1 %vm1296_vm11, %v4145_v38 }
 0x58d   : > { %4536 = vmatprep.mubr.msk.f32.mxu1 %vm1296_vm11, %v4146_v14 }
 0x590   : > { %4537 = vmatmul.mubr.msk.f32.gmra.mrb[8].mxu1 %vm1296_vm11, %v4147_v7 }
 0x591   : > { %2687 = vmatprep.mubr.f32.mxu1 %v2132_v44 }
 0x65f   : > { %v4535_v17 = vpop.f32.mrb[6].mxu1 }
 0x660   : > { %v2102_v39 = vadd.f32 %v4535_v17, %v2006_v55  ;;  %v2096_v18 = vpop.f32.mrb[7].mxu1 }
 0x661   : > { %v2097_v47 = vadd.f32 %v2096_v18, %v2001_v10 }
 0x662   : > { %v2116_v8 = vadd.f32 %v2102_v39, %v6030_v51 }
 0x663   : > { %v2115_v9 = vadd.f32 %v2097_v47, %v6033_v52  ;;  %v4538_v11 = vpop.f32.mrb[8].mxu1 }
 0x664   : > { %v2120_v15 = vmax.f32 %v2116_v8, 0.0  ;;  %v2112_v16 = vadd.f32 %v4538_v11, %v2016_v48  ;;  %v2106_v19 = vpop.f32.mrb[9].mxu1 }
 0x665   : > { %v2119_v20 = vmax.f32 %v2115_v9, 0.0  ;;  %v2107_v21 = vadd.f32 %v2106_v19, %v2011_v12 }
 0x666   : > { %v2124_v23 = vmul.f32 %v6202_v22, %v2120_v15  ;;  %v2118_v24 = vadd.f32 %v2112_v16, %v6060_v5  ;;  %v6218_v5 = vld [vmem:[#allocation2 + $0x10] sm:$0xff] }
 0x667   : > { %v2123_v51 = vmul.f32 %v6202_v22, %v2119_v20  ;;  %v2117_v52 = vadd.f32 %v2107_v21, %v6063_v6 }
 0x668   : > { %v2122_v25 = vmax.f32 %v2118_v24, 0.0  ;;  %v5185_v27 = vpack.i.bf16 %v2124_v23, %v6208_v26  ;;  %v5190_v32 = vpack.i.bf16 %v6212_v30, %v2124_v23 }
 0x669   : > { %v2121_v28 = vmax.f32 %v2117_v52, 0.0  ;;  %v4688_v29 = vpack.c.bf16 %v2124_v23, %v2123_v51  ;;  %v5220_v53 = vpack.i.bf16 %v2123_v51, %v6208_v26  ;;  %v5225_v54 = vpack.i.bf16 %v6218_v5, %v2123_v51 }
 0x66a   : > { %v6215_v31 = vmul.f32 %v6202_v22, %v2122_v25  ;;  %5186 = vrot.lane.b32.xlu1 %v5185_v27, %s5700_s28 }
 0x66b   : > { %v6221_v6 = vmul.f32 %v6202_v22, %v2121_v28  ;;  %4689 = vmatprep.subr.bf16.mxu1 %v4688_v29  ;;  %5221 = vrot.lane.b32.xlu0 %v5220_v53, %s5700_s28 }
 0x66c   : > { %v5255_v36 = vpack.i.bf16 %v6215_v31, %v6208_v26  ;;  %v5260_v42 = vpack.i.bf16 %v6244_v40, %v6215_v31 }
 0x66d   : > { %v4692_v35 = vpack.c.bf16 %v6215_v31, %v6221_v6  ;;  %v5285_v37 = vpack.i.bf16 %v6221_v6, %v6208_v26  ;;  %v5290_v43 = vpack.i.bf16 %v6247_v41, %v6221_v6 }
 0x66e   : > { %5191 = vrot.lane.b32.xlu1 %v5190_v32, %s6861_s13 }
 0x66f   : > { %5226 = vrot.lane.b32.xlu0 %v5225_v54, %s6861_s13 }
 0x672   : > { %5196 = vrot.lane.b32.xlu1 %v5185_v27, %s6863_s30 }
 0x673   : > { %5231 = vrot.lane.b32.xlu0 %v5220_v53, %s6863_s30 }
 0x676   : > { %5201 = vrot.lane.b32.xlu1 %v5190_v32, %s5704_s14 }
 0x677   : > { %5236 = vrot.lane.b32.xlu0 %v5225_v54, %s5704_s14 }
 0x67a   : > { %5206 = vrot.lane.b32.xlu1 %v5185_v27, %s6867_s17 }
 0x67b   : > { %5241 = vrot.lane.b32.xlu0 %v5220_v53, %s6867_s17 }
 0x67e   : > { %5211 = vrot.lane.b32.xlu1 %v5190_v32, %s6868_s18 }
 0x67f   : > { %5246 = vrot.lane.b32.xlu0 %v5225_v54, %s6868_s18 }
 0x682   : > { %5216 = vrot.lane.b32.xlu1 %v5185_v27, %s6865_s23 }
 0x683   : > { %5251 = vrot.lane.b32.xlu0 %v5220_v53, %s6865_s23 }
 0x686   : > { %5256 = vrot.lane.b32.xlu1 %v5255_v36, %s5700_s28 }
 0x687   : > { %5286 = vrot.lane.b32.xlu0 %v5285_v37, %s5700_s28 }
 0x68a   : > { %5261 = vrot.lane.b32.xlu1 %v5260_v42, %s6861_s13 }
 0x68b   : > { %5291 = vrot.lane.b32.xlu0 %v5290_v43, %s6861_s13 }
 0x68e   : > { %5266 = vrot.lane.b32.xlu1 %v5255_v36, %s6863_s30 }
 0x68f   : > { %5296 = vrot.lane.b32.xlu0 %v5285_v37, %s6863_s30 }
 0x692   : > { %5271 = vrot.lane.b32.xlu1 %v5260_v42, %s5704_s14 }
 0x693   : > { %5301 = vrot.lane.b32.xlu0 %v5290_v43, %s5704_s14 }
 0x696   : > { %5276 = vrot.lane.b32.xlu1 %v5255_v36, %s6867_s17 }
 0x697   : > { %5306 = vrot.lane.b32.xlu0 %v5285_v37, %s6867_s17 }
 0x69a   : > { %5281 = vrot.lane.b32.xlu1 %v5260_v42, %s6868_s18 }
 0x69b   : > { %5311 = vrot.lane.b32.xlu0 %v5290_v43, %s6868_s18 }
 0x69e   : > { %5321 = vrot.lane.b32.xlu1 %v5255_v36, %s6865_s23 }
 0x69f   : > { %5316 = vrot.lane.b32.xlu0 %v5285_v37, %s6865_s23 }
 0x6a2   : > { %5331 = vrot.lane.b32.xlu1 %v5190_v32, %s6866_s16 }
 0x6a3   : > { %5326 = vrot.lane.b32.xlu0 %v5225_v54, %s6866_s16 }
 0x6a6   : > { %5341 = vrot.lane.b32.xlu1 %v5260_v42, %s6866_s16 }
 0x6a7   : > { %5336 = vrot.lane.b32.xlu0 %v5290_v43, %s6866_s16 }
 0x6aa   : > { %2566 = vperm.xlu1 %4863, %v2156_v33  }
 0x6ab   : > { %2561 = vperm.xlu0 %4864, %v2155_v46  }
 0x6ae   : > { %2576 = vperm.xlu1 %4863, %v2158_v34  }
 0x6af   : > { %2571 = vperm.xlu0 %4864, %v2157_v49  }
 0x6b2   : > { %2586 = vperm.xlu1 %4863, %v2160_v50  }
 0x6b3   : > { %2581 = vperm.xlu0 %4864, %v2159_v56  }
 0x6b6   : > { %2596 = vperm.xlu1 %4863, %v2162_v57  }
 0x6b7   : > { %2591 = vperm.xlu0 %4864, %v2161_v60  }
 0x6dc   : > { %v5187_v62 = vpop.permute.xlu1 %5186 }
 0x6dd   : > { %v5189_v58 = vunpack.i.h.bf16 %v5187_v62  ;;  %v5188_v59 = vunpack.i.l.bf16 %v5187_v62  ;;  %v5222_v61 = vpop.permute.xlu0 %5221 }
 0x6de   : > { %v5224_v63 = vunpack.i.h.bf16 %v5222_v61  ;;  %v5223_v0 = vunpack.i.l.bf16 %v5222_v61 }
 0x6df   : > { %v2196_v2 = vsel %vm456_vm1, %v5188_v59, %v5189_v58 }
 0x6e0   : > { %v2195_v3 = vsel %vm456_vm1, %v5223_v0, %v5224_v63  ;;  %v5192_v1 = vpop.permute.xlu1 %5191 }
 0x6e1   : > { %v5227_v4 = vpop.permute.xlu0 %5226  ;;  %v4690_v13 = vpack.c.bf16 %v2196_v2, %v2195_v3  ;;  %v5194_v47 = vunpack.i.h.bf16 %v5192_v1  ;;  %v5193_v8 = vunpack.i.l.bf16 %v5192_v1 }
 0x6e2   : > { %v5229_v48 = vunpack.i.h.bf16 %v5227_v4  ;;  %v5228_v9 = vunpack.i.l.bf16 %v5227_v4 }
 0x6e3   : > { %4691 = vmatpush3.bf16.msra.mxu1 %v4690_v13  ;;  %v2380_v24 = vsel %vm506_vm5, %v5193_v8, %v5194_v47 }
 0x6e4   : > { %v5197_v38 = vpop.permute.xlu1 %5196  ;;  %4693 = vmatprep.subr.bf16.mxu1 %v4692_v35  ;;  %v2379_v23 = vsel %vm506_vm5, %v5228_v9, %v5229_v48 }
 0x6e5   : > { %v5232_v14 = vpop.permute.xlu0 %5231  ;;  %v5199_v15 = vunpack.i.h.bf16 %v5197_v38  ;;  %v5198_v16 = vunpack.i.l.bf16 %v5197_v38  ;;  %v4696_v31 = vpack.c.bf16 %v2380_v24, %v2379_v23 }
 0x6e6   : > { %v5234_v19 = vunpack.i.h.bf16 %v5232_v14  ;;  %v5233_v20 = vunpack.i.l.bf16 %v5232_v14 }
 0x6e7   : > { %v2240_v29 = vsel %vm468_vm2, %v5198_v16, %v5199_v15 }
 0x6e8   : > { %v5202_v7 = vpop.permute.xlu1 %5201  ;;  %v2239_v6 = vsel %vm468_vm2, %v5233_v20, %v5234_v19 }
 0x6e9   : > { %v5237_v55 = vpop.permute.xlu0 %5236  ;;  %v5204_v32 = vunpack.i.h.bf16 %v5202_v7  ;;  %v5203_v54 = vunpack.i.l.bf16 %v5202_v7  ;;  %v4698_v0 = vpack.c.bf16 %v2240_v29, %v2239_v6 }
 0x6ea   : > { %v5239_v37 = vunpack.i.h.bf16 %v5237_v55  ;;  %v5238_v33 = vunpack.i.l.bf16 %v5237_v55 }
 0x6eb   : > { %v2424_v13 = vsel %vm518_vm6, %v5203_v54, %v5204_v32 }
 0x6ec   : > { %v5207_v10 = vpop.permute.xlu1 %5206  ;;  %v2423_v4 = vsel %vm518_vm6, %v5238_v33, %v5239_v37 }
 0x6ed   : > { %v5242_v17 = vpop.permute.xlu0 %5241  ;;  %v5209_v46 = vunpack.i.h.bf16 %v5207_v10  ;;  %v5208_v50 = vunpack.i.l.bf16 %v5207_v10  ;;  %v4704_v23 = vpack.c.bf16 %v2424_v13, %v2423_v4 }
 0x6ee   : > { %v5244_v56 = vunpack.i.h.bf16 %v5242_v17  ;;  %v5243_v57 = vunpack.i.l.bf16 %v5242_v17 }
 0x6ef   : > { %v2284_v38 = vsel %vm480_vm3, %v5208_v50, %v5209_v46 }
 0x6f0   : > { %v6306_v39 = vpop.permute.xlu1 %5211  ;;  %v2283_v14 = vsel %vm480_vm3, %v5243_v57, %v5244_v56 }
 0x6f1   : > { %v6308_v18 = vpop.permute.xlu0 %5246  ;;  %v5214_v7 = vunpack.i.h.bf16 %v6306_v39  ;;  %v5213_v10 = vunpack.i.l.bf16 %v6306_v39  ;;  %v4706_v24 = vpack.c.bf16 %v2284_v38, %v2283_v14 }
 0x6f2   : > { %v5249_v17 = vunpack.i.h.bf16 %v6308_v18  ;;  %v5248_v47 = vunpack.i.l.bf16 %v6308_v18 }
 0x6f4   : > { %v6310_v11 = vpop.permute.xlu1 %5216 }
 0x6f5   : > { %v6312_v12 = vpop.permute.xlu0 %5251  ;;  %v5219_v39 = vunpack.i.h.bf16 %v6310_v11 }
 0x6f6   : > { %v5254_v32 = vunpack.i.h.bf16 %v6312_v12  ;;  %v5253_v54 = vunpack.i.l.bf16 %v6312_v12 }
 0x6f8   : > { %v5257_v21 = vpop.permute.xlu1 %5256 }
 0x6f9   : > { %v5259_v51 = vunpack.i.h.bf16 %v5257_v21  ;;  %v5258_v52 = vunpack.i.l.bf16 %v5257_v21  ;;  %v5287_v25 = vpop.permute.xlu0 %5286 }
 0x6fa   : > { %v5289_v27 = vunpack.i.h.bf16 %v5287_v25  ;;  %v5288_v28 = vunpack.i.l.bf16 %v5287_v25  ;;  %v2467_v25 = vsel %vm530_vm7, %v5248_v47, %v5249_v17  ;;  %v2131_v17 = vld [vmem:[%s6847_s7] sm:$0xff] }
 0x6fb   : > { %v2198_v53 = vsel %vm456_vm1, %v5258_v52, %v5259_v51 }
 0x6fc   : > { %v2197_v35 = vsel %vm456_vm1, %v5288_v28, %v5289_v27  ;;  %v5262_v36 = vpop.permute.xlu1 %5261  ;;  %v2468_v27 = vsel %vm530_vm7, %v5213_v10, %v5214_v7  ;;  %v5218_v28 = vunpack.i.l.bf16 %v6310_v11 }
 0x6fd   : > { %v4694_v42 = vpack.c.bf16 %v2198_v53, %v2197_v35  ;;  %v5264_v43 = vunpack.i.h.bf16 %v5262_v36  ;;  %v5263_v44 = vunpack.i.l.bf16 %v5262_v36  ;;  %v5292_v45 = vpop.permute.xlu0 %5291  ;;  %v4712_v46 = vpack.c.bf16 %v2468_v27, %v2467_v25  ;;  %v2137_v25 = vld [vmem:[%s6847_s7 + $0x30] sm:$0xff]  ;;  %v2136_v27 = vld [vmem:[%s6847_s7 + $0x28] sm:$0xff] }
 0x6fe   : > { %v5294_v34 = vunpack.i.h.bf16 %v5292_v45  ;;  %v5293_v49 = vunpack.i.l.bf16 %v5292_v45 }
 0x6ff   : > { %4695 = vmatpush3.bf16.msra.mxu1 %v4694_v42  ;;  %v2382_v60 = vsel %vm506_vm5, %v5263_v44, %v5264_v43 }
 0x700   : > { %v5267_v62 = vpop.permute.xlu1 %5266  ;;  %4697 = vmatprep.subr.bf16.mxu1 %v4696_v31  ;;  %v2381_v58 = vsel %vm506_vm5, %v5293_v49, %v5294_v34  ;;  %v2328_v34 = vsel %vm492_vm4, %v5218_v28, %v5219_v39  ;;  %v2327_v49 = vsel %vm492_vm4, %v5253_v54, %v5254_v32  ;;  %v2141_v28 = vld [vmem:[%s6847_s7 + $0x50] sm:$0xff]  ;;  %v2143_v54 = vld [vmem:[%s6847_s7 + $0x60] sm:$0xff] }
 0x701   : > { %v5269_v59 = vunpack.i.h.bf16 %v5267_v62  ;;  %v5268_v61 = vunpack.i.l.bf16 %v5267_v62  ;;  %v5297_v63 = vpop.permute.xlu0 %5296  ;;  %v4700_v2 = vpack.c.bf16 %v2382_v60, %v2381_v58  ;;  %v4714_v62 = vpack.c.bf16 %v2328_v34, %v2327_v49  ;;  %v2145_v32 = vld [vmem:[%s6847_s7 + $0x70] sm:$0xff] }
 0x702   : > { %v5299_v3 = vunpack.i.h.bf16 %v5297_v63  ;;  %v5298_v1 = vunpack.i.l.bf16 %v5297_v63 }
 0x703   : > { %v2242_v55 = vsel %vm468_vm2, %v5268_v61, %v5269_v59  ;;  %4699 = vmatpush3.bf16.msra.mxu1 %v4698_v0 }
 0x704   : > { %v2241_v8 = vsel %vm468_vm2, %v5298_v1, %v5299_v3  ;;  %v5272_v48 = vpop.permute.xlu1 %5271  ;;  %4701 = vmatprep.subr.bf16.mxu1 %v4700_v2 }
 0x705   : > { %v4702_v9 = vpack.c.bf16 %v2242_v55, %v2241_v8  ;;  %v5274_v15 = vunpack.i.h.bf16 %v5272_v48  ;;  %v5273_v16 = vunpack.i.l.bf16 %v5272_v48  ;;  %v5302_v19 = vpop.permute.xlu0 %5301 }
 0x706   : > { %v5304_v20 = vunpack.i.h.bf16 %v5302_v19  ;;  %v5303_v21 = vunpack.i.l.bf16 %v5302_v19 }
 0x707   : > { %4703 = vmatpush3.bf16.msra.mxu1 %v4702_v9  ;;  %v2426_v51 = vsel %vm518_vm6, %v5273_v16, %v5274_v15  ;;  %v2135_v9 = vld [vmem:[%s6847_s7 + $0x20] sm:$0xff] }
 0x708   : > { %v5277_v52 = vpop.permute.xlu1 %5276  ;;  %4705 = vmatprep.subr.bf16.mxu1 %v4704_v23  ;;  %v2425_v18 = vsel %vm518_vm6, %v5303_v21, %v5304_v20 }
 0x709   : > { %v5279_v29 = vunpack.i.h.bf16 %v5277_v52  ;;  %v5278_v53 = vunpack.i.l.bf16 %v5277_v52  ;;  %v5307_v31 = vpop.permute.xlu0 %5306  ;;  %v4708_v6 = vpack.c.bf16 %v2426_v51, %v2425_v18  ;;  %v2138_v52 = vld [vmem:[%s6847_s7 + $0x38] sm:$0xff] }
 0x70a   : > { %v5309_v35 = vunpack.i.h.bf16 %v5307_v31  ;;  %v5308_v36 = vunpack.i.l.bf16 %v5307_v31  ;;  %v2142_v31 = vld [vmem:[%s6847_s7 + $0x58] sm:$0xff] }
 0x70b   : > { %v2286_v37 = vsel %vm480_vm3, %v5278_v53, %v5279_v29  ;;  %4707 = vmatpush3.bf16.msra.mxu1 %v4706_v24  ;;  %v2134_v24 = vld [vmem:[%s6847_s7 + $0x18] sm:$0xff]  ;;  %v2139_v29 = vld [vmem:[%s6847_s7 + $0x40] sm:$0xff]  ;;  %v2140_v53 = vld [vmem:[%s6847_s7 + $0x48] sm:$0xff] }
 0x70c   : > { %v2285_v42 = vsel %vm480_vm3, %v5308_v36, %v5309_v35  ;;  %v5282_v43 = vpop.permute.xlu1 %5281  ;;  %4709 = vmatprep.subr.bf16.mxu1 %v4708_v6  ;;  %v2144_v6 = vld [vmem:[%s6847_s7 + $0x68] sm:$0xff]  ;;  %v2147_v35 = vld [vmem:[%s6847_s7 + $0x80] sm:$0xff] }
 0x70d   : > { %v4710_v44 = vpack.c.bf16 %v2286_v37, %v2285_v42  ;;  %v5284_v45 = vunpack.i.h.bf16 %v5282_v43  ;;  %v5283_v11 = vunpack.i.l.bf16 %v5282_v43  ;;  %v5312_v33 = vpop.permute.xlu0 %5311  ;;  %v2148_v36 = vld [vmem:[%s6847_s7 + $0x88] sm:$0xff]  ;;  %v2151_v37 = vld [vmem:[%s6847_s7 + $0xa0] sm:$0xff]  ;;  %v2146_v42 = vld [vmem:[%s6847_s7 + $0x78] sm:$0xff] }
 0x70e   : > { %v5314_v50 = vunpack.i.h.bf16 %v5312_v33  ;;  %v5313_v12 = vunpack.i.l.bf16 %v5312_v33  ;;  %v2150_v43 = vld [vmem:[%s6847_s7 + $0x98] sm:$0xff]  ;;  %v2152_v33 = vld [vmem:[%s6847_s7 + $0xa8] sm:$0xff] }
 0x70f   : > { %4711 = vmatpush3.bf16.msra.mxu1 %v4710_v44  ;;  %v2470_v56 = vsel %vm530_vm7, %v5283_v11, %v5284_v45  ;;  %v2154_v44 = vld [vmem:[%s6847_s7 + $0xb8] sm:$0xff]  ;;  %v2149_v45 = vld [vmem:[%s6847_s7 + $0x90] sm:$0xff] }
 0x710   : > { %v5322_v57 = vpop.permute.xlu1 %5321  ;;  %4713 = vmatprep.subr.bf16.mxu1 %v4712_v46  ;;  %v2469_v60 = vsel %vm530_vm7, %v5313_v12, %v5314_v50  ;;  %v2153_v11 = vld [vmem:[%s6847_s7 + $0xb0] sm:$0xff] }
 0x711   : > { %v5324_v58 = vunpack.i.h.bf16 %v5322_v57  ;;  %v5323_v59 = vunpack.i.l.bf16 %v5322_v57  ;;  %v5317_v61 = vpop.permute.xlu0 %5316  ;;  %v4716_v63 = vpack.c.bf16 %v2470_v56, %v2469_v60 }
 0x712   : > { %v5319_v0 = vunpack.i.h.bf16 %v5317_v61  ;;  %v5318_v2 = vunpack.i.l.bf16 %v5317_v61 }
 0x713   : > { %v2330_v3 = vsel %vm492_vm4, %v5323_v59, %v5324_v58  ;;  %4715 = vmatpush3.bf16.msra.mxu1 %v4714_v62 }
 0x714   : > { %v2329_v1 = vsel %vm492_vm4, %v5318_v2, %v5319_v0  ;;  %v5332_v4 = vpop.permute.xlu1 %5331  ;;  %4717 = vmatprep.subr.bf16.mxu1 %v4716_v63 }
 0x715   : > { %v4718_v13 = vpack.c.bf16 %v2330_v3, %v2329_v1  ;;  %v5334_v38 = vunpack.i.h.bf16 %v5332_v4  ;;  %v5333_v14 = vunpack.i.l.bf16 %v5332_v4  ;;  %v5327_v7 = vpop.permute.xlu0 %5326 }
 0x716   : > { %v5329_v55 = vunpack.i.h.bf16 %v5327_v7  ;;  %v5328_v10 = vunpack.i.l.bf16 %v5327_v7 }
 0x717   : > { %4719 = vmatpush3.bf16.msra.mxu1 %v4718_v13  ;;  %v2512_v47 = vsel %vm542_vm8, %v5333_v14, %v5334_v38 }
 0x718   : > { %v5342_v8 = vpop.permute.xlu1 %5341  ;;  %v2511_v48 = vsel %vm542_vm8, %v5328_v10, %v5329_v55 }
 0x719   : > { %v5344_v15 = vunpack.i.h.bf16 %v5342_v8  ;;  %v5343_v16 = vunpack.i.l.bf16 %v5342_v8  ;;  %v5337_v19 = vpop.permute.xlu0 %5336  ;;  %v4720_v20 = vpack.c.bf16 %v2512_v47, %v2511_v48 }
 0x71a   : > { %v5339_v21 = vunpack.i.h.bf16 %v5337_v19  ;;  %v5338_v23 = vunpack.i.l.bf16 %v5337_v19  ;;  %2688 = vmatmul.mubr.f32.vlgmr.msra.gmra.mrb[10].mxu1 %v2131_v17 }
 0x71b   : > { %4721 = vmatprep.subr.bf16.mxu0 %v4720_v20  ;;  %2692 = vmatprep.mubr.f32.mxu1 %v2135_v9  ;;  %v2514_v51 = vsel %vm542_vm8, %v5343_v16, %v5344_v15 }
 0x71c   : > { %4723 = vmatpush3.bf16.msra.mxu0 %v4720_v20  ;;  %v2513_v39 = vsel %vm542_vm8, %v5338_v23, %v5339_v21 }
 0x71d   : > { %v4724_v18 = vpack.c.bf16 %v2514_v51, %v2513_v39 }
 0x71e   : > { %2693 = vmatmul.mubr.f32.gmra.mrb[12].mxu1 %v2134_v24 }
 0x71f   : > { %4725 = vmatprep.subr.bf16.mxu0 %v4724_v18  ;;  %2697 = vmatprep.mubr.f32.mxu1 %v2138_v52 }
 0x720   : > { %4727 = vmatpush3.bf16.msra.mxu0 %v4724_v18 }
 0x722   : > { %2698 = vmatmul.mubr.f32.gmra.mrb[14].mxu1 %v2137_v25 }
 0x723   : > { %4548 = vmatmul.mubr.msk.f32.vlgmr.msra.gmra.mrb[14].mxu0 %vm1105_vm10, %v2136_v27  ;;  %2702 = vmatprep.mubr.f32.mxu1 %v2141_v28 }
 0x724   : > { %4550 = vmatprep.mubr.msk.f32.mxu0 %vm1105_vm10, %v2139_v29 }
 0x726   : > { %2703 = vmatmul.mubr.f32.gmra.mrb[16].mxu1 %v2140_v53 }
 0x727   : > { %4551 = vmatmul.mubr.msk.f32.gmra.mrb[16].mxu0 %vm1105_vm10, %v2142_v31  ;;  %2707 = vmatprep.mubr.f32.mxu1 %v2144_v6 }
 0x728   : > { %4553 = vmatprep.mubr.msk.f32.mxu0 %vm1105_vm10, %v2145_v32 }
 0x729   : > { %v2567_v60 = vpop.permute.xlu1 %2566 }
 0x72a   : > { %2708 = vmatmul.mubr.f32.gmra.mrb[18].mxu1 %v2143_v54  ;;  %v2562_v12 = vpop.permute.xlu0 %2561 }
 0x72b   : > { %2712 = vmatprep.mubr.f32.mxu1 %v2147_v35  ;;  %4554 = vmatmul.mubr.msk.f32.gmra.mrb[18].mxu0 %vm1105_vm10, %v2148_v36 }
 0x72c   : > { %4556 = vmatprep.mubr.msk.f32.mxu0 %vm1105_vm10, %v2151_v37 }
 0x72d   : > { %v2577_v48 = vpop.permute.xlu1 %2576 }
 0x72e   : > { %2713 = vmatmul.mubr.f32.gmra.mrb[20].mxu1 %v2146_v42  ;;  %v2572_v1 = vpop.permute.xlu0 %2571 }
 0x72f   : > { %2717 = vmatprep.mubr.f32.mxu1 %v2150_v43  ;;  %4557 = vmatmul.mubr.msk.f32.gmra.mrb[20].mxu0 %vm1105_vm10, %v2154_v44 }
 0x731   : > { %v2587_v42 = vpop.permute.xlu1 %2586 }
 0x732   : > { %2718 = vmatmul.mubr.f32.gmra.mrb[22].mxu1 %v2149_v45  ;;  %v2582_v27 = vpop.permute.xlu0 %2581 }
 0x733   : > { %2722 = vmatprep.mubr.f32.mxu1 %v2153_v11 }
 0x736   : > { %2723 = vmatmul.mubr.f32.gmra.mrb[24].mxu1 %v2152_v33 }
 0x7ed   : > { %v4323_v46 = vpop.f32.mrb[10].mxu1 }
 0x7ee   : > { %v4324_v34 = vpop.f32.mrb[11].mxu1 }
 0x7ef   : > { %v4325_v49 = vadd.f32 %v4324_v34, %v4323_v46 }
 0x7f1   : > { %v4326_v50 = vpop.f32.mrb[12].mxu1  ;;  %v2690_v63 = vadd.f32 %v4325_v49, %v2562_v12 }
 0x7f2   : > { %v4327_v56 = vpop.f32.mrb[13].mxu1 }
 0x7f3   : > { %v4328_v57 = vadd.f32 %v4327_v56, %v4326_v50  ;;  %v2592_v56 = vpop.permute.xlu0 %2591 }
 0x7f5   : > { %v4329_v62 = vpop.f32.mrb[14].mxu1  ;;  %v2695_v58 = vadd.f32 %v4328_v57, %v2567_v60 }
 0x7f6   : > { %v4330_v59 = vpop.f32.mrb[15].mxu1  ;;  %v4549_v61 = vpop.f32.mrb[14].mxu0 }
 0x7f7   : > { %v4331_v0 = vadd.f32 %v4330_v59, %v4329_v62  ;;  %v2800_v2 = vadd.f32 %v4549_v61, %v2695_v58  ;;  %v2794_v3 = vpop.f32.mrb[15].mxu0  ;;  %v2597_v61 = vpop.permute.xlu1 %2596 }
 0x7f8   : > { %v2795_v4 = vadd.f32 %v2794_v3, %v2690_v63 }
 0x7f9   : > { %v2834_v13 = vmax.f32 %v2800_v2, 0.0  ;;  %v4332_v38 = vpop.f32.mrb[16].mxu1  ;;  %v2700_v14 = vadd.f32 %v4331_v0, %v2572_v1 }
 0x7fa   : > { %v2833_v7 = vmax.f32 %v2795_v4, 0.0  ;;  %v4333_v55 = vpop.f32.mrb[17].mxu1  ;;  %v4552_v10 = vpop.f32.mrb[16].mxu0 }
 0x7fb   : > { %v6426_v17 = vmul.f32 %v6202_v22, %v2834_v13  ;;  %v4334_v47 = vadd.f32 %v4333_v55, %v4332_v38  ;;  %v2804_v8 = vpop.f32.mrb[17].mxu0  ;;  %v3360_v55 = vld [vmem:[#allocation2 + $0x88] sm:$0xff] }
 0x7fc   : > { %v6429_v9 = vmul.f32 %v6202_v22, %v2833_v7  ;;  %v2805_v15 = vadd.f32 %v2804_v8, %v2700_v14 }
 0x7fd   : > { %v2705_v16 = vadd.f32 %v4334_v47, %v2577_v48  ;;  %v4335_v19 = vpop.f32.mrb[18].mxu1  ;;  %v5380_v20 = vpack.i.bf16 %v6426_v17, %v6208_v26  ;;  %v5390_v11 = vpack.i.bf16 %v6212_v30, %v6426_v17 }
 0x7fe   : > { %v2835_v21 = vmax.f32 %v2805_v15, 0.0  ;;  %v4336_v23 = vpop.f32.mrb[19].mxu1  ;;  %v4555_v24 = vpop.f32.mrb[18].mxu0  ;;  %v5345_v51 = vpack.i.bf16 %v6429_v9, %v6208_v26  ;;  %v4762_v25 = vpack.c.bf16 %v6426_v17, %v6429_v9  ;;  %v5355_v46 = vpack.i.bf16 %v6218_v5, %v6429_v9 }
 0x7ff   : > { %v2810_v39 = vadd.f32 %v4552_v10, %v2705_v16  ;;  %v4337_v52 = vadd.f32 %v4336_v23, %v4335_v19  ;;  %v2814_v18 = vpop.f32.mrb[19].mxu0  ;;  %5381 = vrot.lane.b32.xlu1 %v5380_v20, %s6867_s17  ;;  %v3358_v10 = vld [vmem:[#allocation2 + $0x70] sm:$0xff]  ;;  %v3364_v16 = vld [vmem:[#allocation2 + $0xb8] sm:$0xff]  ;;  %v3362_v19 = vld [vmem:[#allocation2 + $0xa0] sm:$0xff] }
 0x800   : > { %v6439_v28 = vmul.f32 %v6202_v22, %v2835_v21  ;;  %5346 = vrot.lane.b32.xlu0 %v5345_v51, %s6867_s17  ;;  %v2860_v23 = vld [vmem:[%s6849_s9 + $0x18] sm:$0xff] }
 0x801   : > { %v2836_v29 = vmax.f32 %v2810_v39, 0.0  ;;  %v4338_v53 = vpop.f32.mrb[20].mxu1  ;;  %v2710_v31 = vadd.f32 %v4337_v52, %v2582_v27  ;;  %3893 = vmatprep.mubr.f32.mxu1 %v2860_v23  ;;  %v3530_v27 = vld [vmem:[#allocation2 + $0x40] sm:$0xff] }
 0x802   : > { %v4339_v6 = vpop.f32.mrb[21].mxu1  ;;  %v4558_v32 = vpop.f32.mrb[20].mxu0  ;;  %v5415_v14 = vpack.i.bf16 %v6439_v28, %v6208_v26  ;;  %v5425_v7 = vpack.i.bf16 %v6247_v41, %v6439_v28 }
 0x803   : > { %v6443_v54 = vmul.f32 %v6202_v22, %v2836_v29  ;;  %v4340_v35 = vadd.f32 %v4339_v6, %v4338_v53  ;;  %v2815_v36 = vadd.f32 %v2814_v18, %v2710_v31  ;;  %v2824_v37 = vpop.f32.mrb[21].mxu0  ;;  %5386 = vrot.lane.b32.xlu1 %v5380_v20, %s5700_s28  ;;  %v3532_v18 = vld [vmem:[#allocation2 + $0x58] sm:$0xff] }
 0x804   : > { %5351 = vrot.lane.b32.xlu0 %v5345_v51, %s5700_s28 }
 0x805   : > { %v2715_v43 = vadd.f32 %v4340_v35, %v2587_v42  ;;  %v2837_v44 = vmax.f32 %v2815_v36, 0.0  ;;  %v4341_v45 = vpop.f32.mrb[22].mxu1  ;;  %v4766_v34 = vpack.c.bf16 %v6443_v54, %v6439_v28  ;;  %v5450_v38 = vpack.i.bf16 %v6443_v54, %v6208_v26 }
 0x806   : > { %v4342_v33 = vpop.f32.mrb[23].mxu1  ;;  %v5640_v53 = vpack.i.bf16 %v3532_v18, %v6443_v54  ;;  %v5635_v35 = vpack.i.bf16 %v3530_v27, %v6439_v28 }
 0x807   : > { %v2820_v49 = vadd.f32 %v4555_v24, %v2715_v43  ;;  %v6454_v50 = vmul.f32 %v6202_v22, %v2837_v44  ;;  %v4343_v12 = vadd.f32 %v4342_v33, %v4341_v45  ;;  %5391 = vrot.lane.b32.xlu1 %v5390_v11, %s5704_s14  ;;  %v3528_v24 = vld [vmem:[#allocation2 + $0x28] sm:$0xff] }
 0x808   : > { %5356 = vrot.lane.b32.xlu0 %v5355_v46, %s5704_s14  ;;  %v5630_v39 = vpack.i.bf16 %v3528_v24, %v6426_v17  ;;  %v2892_v17 = vld [vmem:[%s6850_s10 + $0x28] sm:$0xff] }
 0x809   : > { %v2838_v57 = vmax.f32 %v2820_v49, 0.0  ;;  %v4344_v60 = vpop.f32.mrb[24].mxu1  ;;  %v2720_v30 = vadd.f32 %v4343_v12, %v2592_v56  ;;  %v5485_v41 = vpack.i.bf16 %v6454_v50, %v6208_v26  ;;  %v6507_v8 = vpack.i.bf16 %v3358_v10, %v6454_v50  ;;  %v2890_v10 = vld [vmem:[%s6850_s10 + $0x18] sm:$0xff] }
 0x80a   : > { %v4345_v62 = vpop.f32.mrb[25].mxu1 }
 0x80b   : > { %v6459_v58 = vmul.f32 %v6202_v22, %v2838_v57  ;;  %v4346_v5 = vadd.f32 %v4345_v62, %v4344_v60  ;;  %v2825_v59 = vadd.f32 %v2824_v37, %v2720_v30  ;;  %5396 = vrot.lane.b32.xlu1 %v5380_v20, %s6865_s23 }
 0x80c   : > { %5361 = vrot.lane.b32.xlu0 %v5345_v51, %s6865_s23 }
 0x80d   : > { %v2725_v63 = vadd.f32 %v4346_v5, %v2597_v61  ;;  %v2839_v0 = vmax.f32 %v2825_v59, 0.0  ;;  %v4770_v2 = vpack.c.bf16 %v6459_v58, %v6454_v50  ;;  %v5525_v47 = vpack.i.bf16 %v3360_v55, %v6459_v58 }
 0x80f   : > { %v2830_v3 = vadd.f32 %v4558_v32, %v2725_v63  ;;  %v6466_v1 = vmul.f32 %v6202_v22, %v2839_v0  ;;  %5401 = vrot.lane.b32.xlu1 %v5380_v20, %s6869_s24  ;;  %v2888_v0 = vld [vmem:[%s6850_s10 + $0x8] sm:$0xff] }
 0x810   : > { %5366 = vrot.lane.b32.xlu0 %v5345_v51, %s6869_s24  ;;  %v3526_v51 = vld [vmem:[#allocation2 + $0x10] sm:$0xff] }
 0x811   : > { %v2840_v4 = vmax.f32 %v2830_v3, 0.0  ;;  %v5545_v15 = vpack.i.bf16 %v6466_v1, %v6208_v26  ;;  %v5560_v21 = vpack.i.bf16 %v3362_v19, %v6466_v1  ;;  %v5600_v52 = vpack.i.bf16 %v3526_v51, %v6429_v9  ;;  %v2891_v51 = vld [vmem:[%s6850_s10 + $0x20] sm:$0xff] }
 0x813   : > { %v2848_v13 = vmul.f32 %v6202_v22, %v2840_v4  ;;  %5406 = vrot.lane.b32.xlu1 %v5390_v11, %s6868_s18  ;;  %v5460_v22 = vpack.i.bf16 %v6244_v40, %v6443_v54  ;;  %v5515_v40 = vpack.i.bf16 %v6459_v58, %v6208_v26 }
 0x814   : > { %5371 = vrot.lane.b32.xlu0 %v5355_v46, %s6868_s18 }
 0x815   : > { %2856 = vst [vmem:[#allocation2 + $0xb0] sm:$0xff] %v2848_v13  ;;  %v5575_v48 = vpack.i.bf16 %v2848_v13, %v6208_v26  ;;  %v5605_v20 = vpack.i.bf16 %v3364_v16, %v2848_v13  ;;  %v2858_v26 = vld [vmem:[%s6849_s9 + $0x8] sm:$0xff]  ;;  %v2887_v13 = vld [vmem:[%s6850_s10] sm:$0xff] }
 0x816   : > { %3798 = vmatprep.mubr.f32.mxu0 %v2858_v26 }
 0x817   : > { %5411 = vrot.lane.b32.xlu1 %v5390_v11, %s6870_s25 }
 0x818   : > { %5376 = vrot.lane.b32.xlu0 %v5355_v46, %s6870_s25 }
 0x81b   : > { %5451 = vrot.lane.b32.xlu1 %v5450_v38, %s6867_s17 }
 0x81c   : > { %5416 = vrot.lane.b32.xlu0 %v5415_v14, %s6867_s17 }
 0x81f   : > { %5456 = vrot.lane.b32.xlu1 %v5450_v38, %s5700_s28 }
 0x820   : > { %5421 = vrot.lane.b32.xlu0 %v5415_v14, %s5700_s28 }
 0x823   : > { %5461 = vrot.lane.b32.xlu1 %v5460_v22, %s5704_s14 }
 0x824   : > { %5426 = vrot.lane.b32.xlu0 %v5425_v7, %s5704_s14 }
 0x827   : > { %5466 = vrot.lane.b32.xlu1 %v5450_v38, %s6865_s23 }
 0x828   : > { %5431 = vrot.lane.b32.xlu0 %v5415_v14, %s6865_s23 }
 0x82b   : > { %5471 = vrot.lane.b32.xlu1 %v5450_v38, %s6869_s24 }
 0x82c   : > { %5436 = vrot.lane.b32.xlu0 %v5415_v14, %s6869_s24 }
 0x82f   : > { %5476 = vrot.lane.b32.xlu1 %v5460_v22, %s6868_s18 }
 0x830   : > { %5441 = vrot.lane.b32.xlu0 %v5425_v7, %s6868_s18 }
 0x833   : > { %5481 = vrot.lane.b32.xlu1 %v5460_v22, %s6870_s25 }
 0x834   : > { %5446 = vrot.lane.b32.xlu0 %v5425_v7, %s6870_s25 }
 0x837   : > { %5516 = vrot.lane.b32.xlu1 %v5515_v40, %s6867_s17 }
 0x838   : > { %5486 = vrot.lane.b32.xlu0 %v5485_v41, %s6867_s17 }
 0x83b   : > { %5521 = vrot.lane.b32.xlu1 %v5515_v40, %s5700_s28 }
 0x83c   : > { %5491 = vrot.lane.b32.xlu0 %v5485_v41, %s5700_s28 }
 0x83f   : > { %5526 = vrot.lane.b32.xlu1 %v5525_v47, %s5704_s14 }
 0x840   : > { %5496 = vrot.lane.b32.xlu0 %v6507_v8, %s5704_s14 }
 0x843   : > { %5531 = vrot.lane.b32.xlu1 %v5515_v40, %s6865_s23 }
 0x844   : > { %5501 = vrot.lane.b32.xlu0 %v5485_v41, %s6865_s23 }
 0x847   : > { %5536 = vrot.lane.b32.xlu1 %v5515_v40, %s6869_s24 }
 0x848   : > { %5506 = vrot.lane.b32.xlu0 %v5485_v41, %s6869_s24 }
 0x84b   : > { %5541 = vrot.lane.b32.xlu1 %v5525_v47, %s6868_s18 }
 0x84c   : > { %5511 = vrot.lane.b32.xlu0 %v6507_v8, %s6868_s18 }
 0x84f   : > { %5576 = vrot.lane.b32.xlu1 %v5575_v48, %s6867_s17 }
 0x850   : > { %5546 = vrot.lane.b32.xlu0 %v5545_v15, %s6867_s17 }
 0x853   : > { %5581 = vrot.lane.b32.xlu1 %v5575_v48, %s5700_s28 }
 0x854   : > { %5551 = vrot.lane.b32.xlu0 %v5545_v15, %s5700_s28 }
 0x857   : > { %5586 = vrot.lane.b32.xlu1 %v5525_v47, %s6870_s25 }
 0x858   : > { %5556 = vrot.lane.b32.xlu0 %v6507_v8, %s6870_s25 }
 0x85b   : > { %5606 = vrot.lane.b32.xlu1 %v5605_v20, %s5704_s14 }
 0x85c   : > { %5561 = vrot.lane.b32.xlu0 %v5560_v21, %s5704_s14 }
 0x85f   : > { %5611 = vrot.lane.b32.xlu1 %v5575_v48, %s6865_s23 }
 0x860   : > { %5566 = vrot.lane.b32.xlu0 %v5545_v15, %s6865_s23 }
 0x863   : > { %5616 = vrot.lane.b32.xlu1 %v5575_v48, %s6869_s24  ;;  %v2889_v48 = vld [vmem:[%s6850_s10 + $0x10] sm:$0xff] }
 0x864   : > { %5571 = vrot.lane.b32.xlu0 %v5545_v15, %s6869_s24 }
 0x867   : > { %5621 = vrot.lane.b32.xlu1 %v5605_v20, %s6868_s18 }
 0x868   : > { %5591 = vrot.lane.b32.xlu0 %v5560_v21, %s6868_s18 }
 0x86b   : > { %5626 = vrot.lane.b32.xlu1 %v5605_v20, %s6870_s25 }
 0x86c   : > { %5596 = vrot.lane.b32.xlu0 %v5560_v21, %s6870_s25 }
 0x86f   : > { %5631 = vrot.lane.b32.xlu1 %v5630_v39, %s6866_s16 }
 0x870   : > { %5601 = vrot.lane.b32.xlu0 %v5600_v52, %s6866_s16 }
 0x871   : > { %v5382_v29 = vpop.permute.xlu1 %5381 }
 0x872   : > { %v5384_v31 = vunpack.i.h.bf16 %v5382_v29  ;;  %v5383_v6 = vunpack.i.l.bf16 %v5382_v29  ;;  %v5347_v32 = vpop.permute.xlu0 %5346 }
 0x873   : > { %v5349_v36 = vunpack.i.h.bf16 %v5347_v32  ;;  %v5348_v37 = vunpack.i.l.bf16 %v5347_v32  ;;  %5641 = vrot.lane.b32.xlu1 %v5640_v53, %s6866_s16 }
 0x874   : > { %5636 = vrot.lane.b32.xlu0 %v5635_v35, %s6866_s16  ;;  %v3134_v42 = vsel %vm480_vm3, %v5383_v6, %v5384_v31 }
 0x875   : > { %v5387_v43 = vpop.permute.xlu1 %5386  ;;  %v3133_v44 = vsel %vm480_vm3, %v5348_v37, %v5349_v36 }
 0x876   : > { %v5389_v45 = vunpack.i.h.bf16 %v5387_v43  ;;  %v5388_v11 = vunpack.i.l.bf16 %v5387_v43  ;;  %v5352_v33 = vpop.permute.xlu0 %5351  ;;  %v4728_v46 = vpack.c.bf16 %v3134_v42, %v3133_v44 }
 0x877   : > { %v5354_v49 = vunpack.i.h.bf16 %v5352_v33  ;;  %v5353_v12 = vunpack.i.l.bf16 %v5352_v33  ;;  %5651 = vrot.lane.b32.xlu1 %v5525_v47, %s6866_s16 }
 0x878   : > { %v2958_v56 = vsel %vm456_vm1, %v5388_v11, %v5389_v45  ;;  %4729 = vmatprep.subr.bf16.mxu0 %v4728_v46  ;;  %5646 = vrot.lane.b32.xlu0 %v6507_v8, %s6866_s16 }
 0x879   : > { %v2957_v57 = vsel %vm456_vm1, %v5353_v12, %v5354_v49  ;;  %v5392_v60 = vpop.permute.xlu1 %5391 }
 0x87a   : > { %v4730_v30 = vpack.c.bf16 %v2958_v56, %v2957_v57  ;;  %v5394_v62 = vunpack.i.h.bf16 %v5392_v60  ;;  %v5393_v5 = vunpack.i.l.bf16 %v5392_v60  ;;  %v5357_v59 = vpop.permute.xlu0 %5356 }
 0x87b   : > { %v5359_v61 = vunpack.i.h.bf16 %v5357_v59  ;;  %v5358_v63 = vunpack.i.l.bf16 %v5357_v59  ;;  %5661 = vrot.lane.b32.xlu1 %v5605_v20, %s6866_s16 }
 0x87c   : > { %5656 = vrot.lane.b32.xlu0 %v5560_v21, %s6866_s16  ;;  %4731 = vmatpush3.bf16.msra.mxu0 %v4730_v30  ;;  %v3414_v3 = vsel %vm518_vm6, %v5393_v5, %v5394_v62  ;;  %s4809_s16 = smul.u32 48, %s6872_s22 }
 0x87d   : > { %v5397_v4 = vpop.permute.xlu1 %5396  ;;  %v3413_v38 = vsel %vm518_vm6, %v5358_v63, %v5359_v61 }
 0x87e   : > { %v5399_v14 = vunpack.i.h.bf16 %v5397_v4  ;;  %v5398_v22 = vunpack.i.l.bf16 %v5397_v4  ;;  %v5362_v7 = vpop.permute.xlu0 %5361  ;;  %v4760_v40 = vpack.c.bf16 %v3414_v3, %v3413_v38  ;;  %s413_s13 = scalar_lea.vmem %s6852_s12, %s4809_s16 }
 0x87f   : > { %v5364_v41 = vunpack.i.h.bf16 %v5362_v7  ;;  %v5363_v55 = vunpack.i.l.bf16 %v5362_v7  ;;  %3692 = vperm.xlu1 %4863, %v2888_v0  }
 0x880   : > { %3687 = vperm.xlu0 %4864, %v2887_v13   ;;  %4761 = vmatprep.subr.bf16.mxu1 %v4760_v40  ;;  %v6575_v47 = vsel %vm492_vm4, %v5398_v22, %v5399_v14 }
 0x881   : > { %v5402_v8 = vpop.permute.xlu1 %5401  ;;  %4763 = vmatpush3.bf16.msra.mxu1 %v4762_v25  ;;  %v6584_v15 = vsel %vm492_vm4, %v5363_v55, %v5364_v41 }
 0x882   : > { %v5404_v16 = vunpack.i.h.bf16 %v5402_v8  ;;  %v5403_v19 = vunpack.i.l.bf16 %v5402_v8  ;;  %v5367_v20 = vpop.permute.xlu0 %5366  ;;  %v4744_v21 = vpack.c.bf16 %v6575_v47, %v6584_v15 }
 0x883   : > { %v5369_v26 = vunpack.i.h.bf16 %v5367_v20  ;;  %v5368_v23 = vunpack.i.l.bf16 %v5367_v20  ;;  %3702 = vperm.xlu1 %4863, %v2890_v10  }
 0x884   : > { %v6589_v24 = vsel %vm468_vm2, %v5403_v19, %v5404_v16  ;;  %3697 = vperm.xlu0 %4864, %v2889_v48  }
 0x885   : > { %v6595_v9 = vsel %vm468_vm2, %v5368_v23, %v5369_v26  ;;  %v5407_v25 = vpop.permute.xlu1 %5406 }
 0x886   : > { %v4746_v39 = vpack.c.bf16 %v6589_v24, %v6595_v9  ;;  %v5409_v52 = vunpack.i.h.bf16 %v5407_v25  ;;  %v5408_v18 = vunpack.i.l.bf16 %v5407_v25  ;;  %v5372_v27 = vpop.permute.xlu0 %5371 }
 0x887   : > { %v5374_v29 = vunpack.i.h.bf16 %v5372_v27  ;;  %v5373_v53 = vunpack.i.l.bf16 %v5372_v27  ;;  %3712 = vperm.xlu1 %4863, %v2892_v17  }
 0x888   : > { %3707 = vperm.xlu0 %4864, %v2891_v51   ;;  %v6603_v31 = vsel %vm530_vm7, %v5408_v18, %v5409_v52 }
 0x889   : > { %v5412_v6 = vpop.permute.xlu1 %5411  ;;  %v6606_v32 = vsel %vm530_vm7, %v5373_v53, %v5374_v29 }
 0x88a   : > { %v5414_v35 = vunpack.i.h.bf16 %v5412_v6  ;;  %v5413_v36 = vunpack.i.l.bf16 %v5412_v6  ;;  %v5377_v37 = vpop.permute.xlu0 %5376  ;;  %v4776_v42 = vpack.c.bf16 %v6603_v31, %v6606_v32 }
 0x88b   : > { %v5379_v43 = vunpack.i.h.bf16 %v5377_v37  ;;  %v5378_v44 = vunpack.i.l.bf16 %v5377_v37 }
 0x88c   : > { %v6611_v45 = vsel %vm506_vm5, %v5413_v36, %v5414_v35 }
 0x88d   : > { %v6614_v11 = vsel %vm506_vm5, %v5378_v44, %v5379_v43  ;;  %v5452_v33 = vpop.permute.xlu1 %5451 }
 0x88e   : > { %v4778_v46 = vpack.c.bf16 %v6611_v45, %v6614_v11  ;;  %v5454_v49 = vunpack.i.h.bf16 %v5452_v33  ;;  %v5453_v12 = vunpack.i.l.bf16 %v5452_v33  ;;  %v5417_v56 = vpop.permute.xlu0 %5416  ;;  %v2857_v45 = vld [vmem:[%s6849_s9] sm:$0xff] }
 0x88f   : > { %v5419_v57 = vunpack.i.h.bf16 %v5417_v56  ;;  %v5418_v60 = vunpack.i.l.bf16 %v5417_v56 }
 0x890   : > { %v3136_v30 = vsel %vm480_vm3, %v5453_v12, %v5454_v49 }
 0x891   : > { %v5457_v62 = vpop.permute.xlu1 %5456  ;;  %v3135_v5 = vsel %vm480_vm3, %v5418_v60, %v5419_v57 }
 0x892   : > { %v5459_v59 = vunpack.i.h.bf16 %v5457_v62  ;;  %v5458_v61 = vunpack.i.l.bf16 %v5457_v62  ;;  %v5422_v63 = vpop.permute.xlu0 %5421  ;;  %v4732_v0 = vpack.c.bf16 %v3136_v30, %v3135_v5 }
 0x893   : > { %v5424_v3 = vunpack.i.h.bf16 %v5422_v63  ;;  %v5423_v4 = vunpack.i.l.bf16 %v5422_v63 }
 0x894   : > { %v2960_v13 = vsel %vm456_vm1, %v5458_v61, %v5459_v59  ;;  %4733 = vmatprep.subr.bf16.mxu0 %v4732_v0 }
 0x895   : > { %v2959_v38 = vsel %vm456_vm1, %v5423_v4, %v5424_v3  ;;  %v5462_v14 = vpop.permute.xlu1 %5461 }
 0x896   : > { %v4734_v22 = vpack.c.bf16 %v2960_v13, %v2959_v38  ;;  %v5464_v7 = vunpack.i.h.bf16 %v5462_v14  ;;  %v5463_v40 = vunpack.i.l.bf16 %v5462_v14  ;;  %v5427_v41 = vpop.permute.xlu0 %5426 }
 0x897   : > { %v5429_v55 = vunpack.i.h.bf16 %v5427_v41  ;;  %v5428_v10 = vunpack.i.l.bf16 %v5427_v41 }
 0x898   : > { %4735 = vmatpush3.bf16.msra.mxu0 %v4734_v22  ;;  %v3416_v8 = vsel %vm518_vm6, %v5463_v40, %v5464_v7 }
 0x899   : > { %v6623_v48 = vpop.permute.xlu1 %5466  ;;  %v3415_v16 = vsel %vm518_vm6, %v5428_v10, %v5429_v55 }
 0x89a   : > { %v6626_v19 = vpop.permute.xlu0 %5431  ;;  %v4764_v20 = vpack.c.bf16 %v3416_v8, %v3415_v16  ;;  %v5469_v40 = vunpack.i.h.bf16 %v6623_v48  ;;  %v5468_v55 = vunpack.i.l.bf16 %v6623_v48 }
 0x89b   : > { %v5434_v10 = vunpack.i.h.bf16 %v6626_v19 }
 0x89c   : > { %4765 = vmatprep.subr.bf16.mxu1 %v4764_v20 }
 0x89d   : > { %v6628_v26 = vpop.permute.xlu1 %5471  ;;  %4767 = vmatpush3.bf16.msra.mxu1 %v4766_v34 }
 0x89e   : > { %v6633_v23 = vpop.permute.xlu0 %5436  ;;  %v5474_v50 = vunpack.i.h.bf16 %v6628_v26 }
 0x8a1   : > { %v6635_v17 = vpop.permute.xlu1 %5476 }
 0x8a2   : > { %v6637_v25 = vpop.permute.xlu0 %5441 }
 0x8a5   : > { %v6639_v51 = vpop.permute.xlu1 %5481 }
 0x8a6   : > { %v6641_v52 = vpop.permute.xlu0 %5446  ;;  %v5484_v47 = vunpack.i.h.bf16 %v6639_v51  ;;  %v5483_v15 = vunpack.i.l.bf16 %v6639_v51 }
 0x8a9   : > { %v5517_v18 = vpop.permute.xlu1 %5516 }
 0x8aa   : > { %v5519_v27 = vunpack.i.h.bf16 %v5517_v18  ;;  %v5518_v29 = vunpack.i.l.bf16 %v5517_v18  ;;  %v5487_v53 = vpop.permute.xlu0 %5486  ;;  %v5433_v18 = vunpack.i.l.bf16 %v6626_v19 }
 0x8ab   : > { %v5489_v6 = vunpack.i.h.bf16 %v5487_v53  ;;  %v5488_v35 = vunpack.i.l.bf16 %v5487_v53  ;;  %v5438_v53 = vunpack.i.l.bf16 %v6633_v23 }
 0x8ac   : > { %v3138_v36 = vsel %vm480_vm3, %v5518_v29, %v5519_v27  ;;  %v5473_v27 = vunpack.i.l.bf16 %v6628_v26  ;;  %v5439_v29 = vunpack.i.h.bf16 %v6633_v23 }
 0x8ad   : > { %v5522_v28 = vpop.permute.xlu1 %5521  ;;  %v3137_v54 = vsel %vm480_vm3, %v5488_v35, %v5489_v6 }
 0x8ae   : > { %v5524_v34 = vunpack.i.h.bf16 %v5522_v28  ;;  %v5523_v37 = vunpack.i.l.bf16 %v5522_v28  ;;  %v5492_v43 = vpop.permute.xlu0 %5491  ;;  %v4736_v44 = vpack.c.bf16 %v3138_v36, %v3137_v54  ;;  %v3048_v26 = vsel %vm468_vm2, %v5473_v27, %v5474_v50 }
 0x8af   : > { %v5494_v33 = vunpack.i.h.bf16 %v5492_v43  ;;  %v5493_v49 = vunpack.i.l.bf16 %v5492_v43  ;;  %v3223_v43 = vsel %vm492_vm4, %v5433_v18, %v5434_v10  ;;  %v5448_v27 = vunpack.i.l.bf16 %v6641_v52 }
 0x8b0   : > { %v2962_v12 = vsel %vm456_vm1, %v5523_v37, %v5524_v34  ;;  %4737 = vmatprep.subr.bf16.mxu0 %v4736_v44  ;;  %v3224_v44 = vsel %vm492_vm4, %v5468_v55, %v5469_v40 }
 0x8b1   : > { %v2961_v56 = vsel %vm456_vm1, %v5493_v49, %v5494_v33  ;;  %v5527_v57 = vpop.permute.xlu1 %5526  ;;  %v3047_v33 = vsel %vm468_vm2, %v5438_v53, %v5439_v29  ;;  %v4748_v40 = vpack.c.bf16 %v3224_v44, %v3223_v43 }
 0x8b2   : > { %v4738_v60 = vpack.c.bf16 %v2962_v12, %v2961_v56  ;;  %v5529_v30 = vunpack.i.h.bf16 %v5527_v57  ;;  %v5528_v62 = vunpack.i.l.bf16 %v5527_v57  ;;  %v5497_v5 = vpop.permute.xlu0 %5496  ;;  %v3252_v12 = vld [vmem:[#allocation2 + $0xb0] sm:$0xff] }
 0x8b3   : > { %v5499_v59 = vunpack.i.h.bf16 %v5497_v5  ;;  %v5498_v61 = vunpack.i.l.bf16 %v5497_v5 }
 0x8b4   : > { %4739 = vmatpush3.bf16.msra.mxu0 %v4738_v60  ;;  %v3418_v63 = vsel %vm518_vm6, %v5528_v62, %v5529_v30 }
 0x8b5   : > { %v5532_v0 = vpop.permute.xlu1 %5531  ;;  %v3417_v3 = vsel %vm518_vm6, %v5498_v61, %v5499_v59  ;;  %v4774_v61 = vpack.c.bf16 %v3252_v12, %v6466_v1 }
 0x8b6   : > { %v5502_v4 = vpop.permute.xlu0 %5501  ;;  %v4768_v13 = vpack.c.bf16 %v3418_v63, %v3417_v3  ;;  %v5534_v23 = vunpack.i.h.bf16 %v5532_v0  ;;  %v5533_v56 = vunpack.i.l.bf16 %v5532_v0  ;;  %v4750_v63 = vpack.c.bf16 %v3048_v26, %v3047_v33 }
 0x8b7   : > { %v5504_v57 = vunpack.i.h.bf16 %v5502_v4  ;;  %v5503_v60 = vunpack.i.l.bf16 %v5502_v4  ;;  %v5479_v3 = vunpack.i.h.bf16 %v6635_v17  ;;  %v5444_v0 = vunpack.i.h.bf16 %v6637_v25 }
 0x8b8   : > { %4769 = vmatprep.subr.bf16.mxu1 %v4768_v13  ;;  %v5478_v13 = vunpack.i.l.bf16 %v6635_v17  ;;  %v5443_v4 = vunpack.i.l.bf16 %v6637_v25  ;;  %v3226_v1 = vsel %vm492_vm4, %v5533_v56, %v5534_v23 }
 0x8b9   : > { %v6649_v38 = vpop.permute.xlu1 %5536  ;;  %4771 = vmatpush3.bf16.msra.mxu1 %v4770_v2  ;;  %v3225_v55 = vsel %vm492_vm4, %v5503_v60, %v5504_v57 }
 0x8ba   : > { %v6654_v14 = vpop.permute.xlu0 %5506  ;;  %v5539_v10 = vunpack.i.h.bf16 %v6649_v38  ;;  %v3503_v53 = vsel %vm530_vm7, %v5443_v4, %v5444_v0  ;;  %v4752_v24 = vpack.c.bf16 %v3226_v1, %v3225_v55 }
 0x8bb   : > { %v5509_v18 = vunpack.i.h.bf16 %v6654_v14  ;;  %v5508_v25 = vunpack.i.l.bf16 %v6654_v14 }
 0x8bd   : > { %v6656_v22 = vpop.permute.xlu1 %5541 }
 0x8be   : > { %v6658_v7 = vpop.permute.xlu0 %5511 }
 0x8bf   : > { %v5514_v43 = vunpack.i.h.bf16 %v6658_v7  ;;  %v5513_v44 = vunpack.i.l.bf16 %v6658_v7 }
 0x8c1   : > { %v5577_v41 = vpop.permute.xlu1 %5576  ;;  %v3505_v32 = vsel %vm530_vm7, %v5513_v44, %v5514_v43 }
 0x8c2   : > { %v5579_v8 = vunpack.i.h.bf16 %v5577_v41  ;;  %v5578_v16 = vunpack.i.l.bf16 %v5577_v41  ;;  %v5547_v20 = vpop.permute.xlu0 %5546 }
 0x8c3   : > { %v5549_v58 = vunpack.i.h.bf16 %v5547_v20  ;;  %v5548_v2 = vunpack.i.l.bf16 %v5547_v20 }
 0x8c4   : > { %v3140_v6 = vsel %vm480_vm3, %v5578_v16, %v5579_v8  ;;  %v5538_v8 = vunpack.i.l.bf16 %v6649_v38  ;;  %v3504_v38 = vsel %vm530_vm7, %v5478_v13, %v5479_v3 }
 0x8c5   : > { %v5582_v48 = vpop.permute.xlu1 %5581  ;;  %v3139_v35 = vsel %vm480_vm3, %v5548_v2, %v5549_v58  ;;  %v5449_v2 = vunpack.i.h.bf16 %v6641_v52  ;;  %v5544_v52 = vunpack.i.h.bf16 %v6656_v22 }
 0x8c6   : > { %v5584_v36 = vunpack.i.h.bf16 %v5582_v48  ;;  %v5583_v28 = vunpack.i.l.bf16 %v5582_v48  ;;  %v5552_v54 = vpop.permute.xlu0 %5551  ;;  %v4740_v34 = vpack.c.bf16 %v3140_v6, %v3139_v35  ;;  %v3050_v9 = vsel %vm468_vm2, %v5538_v8, %v5539_v10 }
 0x8c7   : > { %v5554_v19 = vunpack.i.h.bf16 %v5552_v54  ;;  %v5553_v37 = vunpack.i.l.bf16 %v5552_v54  ;;  %v3328_v54 = vsel %vm506_vm5, %v5483_v15, %v5484_v47 }
 0x8c8   : > { %v2964_v49 = vsel %vm456_vm1, %v5583_v28, %v5584_v36  ;;  %4741 = vmatprep.subr.bf16.mxu0 %v4740_v34 }
 0x8c9   : > { %v2963_v30 = vsel %vm456_vm1, %v5553_v37, %v5554_v19  ;;  %v6676_v62 = vpop.permute.xlu1 %5586  ;;  %v4780_v19 = vpack.c.bf16 %v3504_v38, %v3503_v53  ;;  %v5543_v37 = vunpack.i.l.bf16 %v6656_v22  ;;  %v3327_v22 = vsel %vm506_vm5, %v5448_v27, %v5449_v2  ;;  %v2862_v38 = vld [vmem:[%s6849_s9 + $0x28] sm:$0xff] }
 0x8ca   : > { %v4742_v5 = vpack.c.bf16 %v2964_v49, %v2963_v30  ;;  %v6678_v59 = vpop.permute.xlu0 %5556  ;;  %v5589_v60 = vunpack.i.h.bf16 %v6676_v62 }
 0x8cc   : > { %4743 = vmatpush3.bf16.msra.mxu0 %v4742_v5  ;;  %v5588_v5 = vunpack.i.l.bf16 %v6676_v62 }
 0x8cd   : > { %v5607_v41 = vpop.permute.xlu1 %5606  ;;  %4745 = vmatprep.subr.bf16.mxu0 %v4744_v21 }
 0x8ce   : > { %v5609_v17 = vunpack.i.h.bf16 %v5607_v41  ;;  %v5608_v16 = vunpack.i.l.bf16 %v5607_v41  ;;  %v5562_v20 = vpop.permute.xlu0 %5561  ;;  %v3330_v1 = vsel %vm506_vm5, %v5588_v5, %v5589_v60 }
 0x8cf   : > { %v5564_v50 = vunpack.i.h.bf16 %v5562_v20  ;;  %v5563_v58 = vunpack.i.l.bf16 %v5562_v20 }
 0x8d0   : > { %4747 = vmatpush3.bf16.msra.mxu0 %v4746_v39  ;;  %v3420_v21 = vsel %vm518_vm6, %v5608_v16, %v5609_v17  ;;  %v3049_v39 = vsel %vm468_vm2, %v5508_v25, %v5509_v18 }
 0x8d1   : > { %v5612_v29 = vpop.permute.xlu1 %5611  ;;  %4749 = vmatprep.subr.bf16.mxu0 %v4748_v40  ;;  %v3419_v14 = vsel %vm518_vm6, %v5563_v58, %v5564_v50  ;;  %v4754_v23 = vpack.c.bf16 %v3050_v9, %v3049_v39 }
 0x8d2   : > { %v5614_v6 = vunpack.i.h.bf16 %v5612_v29  ;;  %v5613_v51 = vunpack.i.l.bf16 %v5612_v29  ;;  %v5567_v48 = vpop.permute.xlu0 %5566  ;;  %v4772_v35 = vpack.c.bf16 %v3420_v21, %v3419_v14  ;;  %v2868_v29 = vld [vmem:[%s6849_s9 + $0x58] sm:$0xff] }
 0x8d3   : > { %v5569_v36 = vunpack.i.h.bf16 %v5567_v48  ;;  %v5568_v28 = vunpack.i.l.bf16 %v5567_v48 }
 0x8d4   : > { %4751 = vmatpush3.bf16.msra.mxu0 %v4750_v63  ;;  %4773 = vmatprep.subr.bf16.mxu1 %v4772_v35  ;;  %v3228_v34 = vsel %vm492_vm4, %v5613_v51, %v5614_v6  ;;  %v5558_v63 = vunpack.i.l.bf16 %v6678_v59 }
 0x8d5   : > { %v5617_v26 = vpop.permute.xlu1 %5616  ;;  %4753 = vmatprep.subr.bf16.mxu0 %v4752_v24  ;;  %4775 = vmatpush3.bf16.msra.mxu1 %v4774_v61  ;;  %v3227_v33 = vsel %vm492_vm4, %v5568_v28, %v5569_v36  ;;  %v5559_v61 = vunpack.i.h.bf16 %v6678_v59  ;;  %v4782_v59 = vpack.c.bf16 %v3328_v54, %v3327_v22  ;;  %v2867_v24 = vld [vmem:[%s6849_s9 + $0x50] sm:$0xff] }
 0x8d6   : > { %v5619_v49 = vunpack.i.h.bf16 %v5617_v26  ;;  %v5618_v12 = vunpack.i.l.bf16 %v5617_v26  ;;  %v5572_v56 = vpop.permute.xlu0 %5571  ;;  %4777 = vmatprep.subr.bf16.mxu1 %v4776_v42  ;;  %v4756_v57 = vpack.c.bf16 %v3228_v34, %v3227_v33  ;;  %v3506_v42 = vsel %vm530_vm7, %v5543_v37, %v5544_v52  ;;  %v2859_v36 = vld [vmem:[%s6849_s9 + $0x10] sm:$0xff]  ;;  %v2873_v37 = vld [vmem:[%s6849_s9 + $0x80] sm:$0xff]  ;;  %v2872_v33 = vld [vmem:[%s6849_s9 + $0x78] sm:$0xff] }
 0x8d7   : > { %v5574_v30 = vunpack.i.h.bf16 %v5572_v56  ;;  %v5573_v7 = vunpack.i.l.bf16 %v5572_v56  ;;  %v3329_v10 = vsel %vm506_vm5, %v5558_v63, %v5559_v61  ;;  %v4784_v8 = vpack.c.bf16 %v3506_v42, %v3505_v32  ;;  %v2865_v26 = vld [vmem:[%s6849_s9 + $0x40] sm:$0xff]  ;;  %v2870_v63 = vld [vmem:[%s6849_s9 + $0x68] sm:$0xff] }
 0x8d8   : > { %v3052_v3 = vsel %vm468_vm2, %v5618_v12, %v5619_v49  ;;  %4755 = vmatpush3.bf16.msra.mxu0 %v4754_v23  ;;  %v4786_v50 = vpack.c.bf16 %v3330_v1, %v3329_v10  ;;  %v2864_v12 = vld [vmem:[%s6849_s9 + $0x38] sm:$0xff]  ;;  %v2869_v32 = vld [vmem:[%s6849_s9 + $0x60] sm:$0xff]  ;;  %v2875_v1 = vld [vmem:[%s6849_s9 + $0x90] sm:$0xff] }
 0x8d9   : > { %v3051_v13 = vsel %vm468_vm2, %v5573_v7, %v5574_v30  ;;  %v5622_v31 = vpop.permute.xlu1 %5621  ;;  %4757 = vmatprep.subr.bf16.mxu0 %v4756_v57  ;;  %4779 = vmatpush3.bf16.msra.mxu1 %v4778_v46  ;;  %v2863_v46 = vld [vmem:[%s6849_s9 + $0x30] sm:$0xff]  ;;  %v2878_v7 = vld [vmem:[%s6849_s9 + $0xa8] sm:$0xff] }
 0x8da   : > { %v4758_v62 = vpack.c.bf16 %v3052_v3, %v3051_v13  ;;  %v5624_v40 = vunpack.i.h.bf16 %v5622_v31  ;;  %v5623_v0 = vunpack.i.l.bf16 %v5622_v31  ;;  %v5592_v4 = vpop.permute.xlu0 %5591  ;;  %4781 = vmatprep.subr.bf16.mxu1 %v4780_v19  ;;  %v2877_v3 = vld [vmem:[%s6849_s9 + $0xa0] sm:$0xff]  ;;  %v2882_v10 = vld [vmem:[%s6849_s9 + $0xc8] sm:$0xff] }
 0x8db   : > { %v5594_v41 = vunpack.i.h.bf16 %v5592_v4  ;;  %v5593_v55 = vunpack.i.l.bf16 %v5592_v4 }
 0x8dc   : > { %4759 = vmatpush3.bf16.msra.mxu0 %v4758_v62  ;;  %v3508_v16 = vsel %vm530_vm7, %v5623_v0, %v5624_v40 }
 0x8dd   : > { %v5627_v11 = vpop.permute.xlu1 %5626  ;;  %4783 = vmatpush3.bf16.msra.mxu1 %v4782_v59  ;;  %v3507_v17 = vsel %vm530_vm7, %v5593_v55, %v5594_v41  ;;  %v2883_v59 = vld [vmem:[%s6849_s9 + $0xd0] sm:$0xff] }
 0x8de   : > { %v5629_v20 = vunpack.i.h.bf16 %v5627_v11  ;;  %v5628_v18 = vunpack.i.l.bf16 %v5627_v11  ;;  %v5597_v25 = vpop.permute.xlu0 %5596  ;;  %4785 = vmatprep.subr.bf16.mxu1 %v4784_v8  ;;  %v4788_v21 = vpack.c.bf16 %v3508_v16, %v3507_v17  ;;  %v2880_v17 = vld [vmem:[%s6849_s9 + $0xb8] sm:$0xff]  ;;  %v2861_v16 = vld [vmem:[%s6849_s9 + $0x20] sm:$0xff] }
 0x8df   : > { %v5599_v58 = vunpack.i.h.bf16 %v5597_v25  ;;  %v5598_v47 = vunpack.i.l.bf16 %v5597_v25  ;;  %3799 = vmatmul.mubr.f32.vlgmr.msra.gmra.mrb[22].mxu0 %v2857_v45  ;;  %v2874_v45 = vld [vmem:[%s6849_s9 + $0x88] sm:$0xff]  ;;  %v2885_v25 = vld [vmem:[%s6849_s9 + $0xe0] sm:$0xff] }
 0x8e0   : > { %v3332_v15 = vsel %vm506_vm5, %v5628_v18, %v5629_v20  ;;  %3803 = vmatprep.mubr.f32.mxu0 %v2863_v46  ;;  %v2879_v20 = vld [vmem:[%s6849_s9 + $0xb0] sm:$0xff]  ;;  %v2866_v18 = vld [vmem:[%s6849_s9 + $0x48] sm:$0xff] }
 0x8e1   : > { %v3331_v2 = vsel %vm506_vm5, %v5598_v47, %v5599_v58  ;;  %v5632_v27 = vpop.permute.xlu1 %5631  ;;  %4787 = vmatpush3.bf16.msra.mxu1 %v4786_v50  ;;  %v2871_v50 = vld [vmem:[%s6849_s9 + $0x70] sm:$0xff]  ;;  %v2884_v58 = vld [vmem:[%s6849_s9 + $0xd8] sm:$0xff] }
 0x8e2   : > { %v4790_v14 = vpack.c.bf16 %v3332_v15, %v3331_v2  ;;  %v5634_v53 = vunpack.i.h.bf16 %v5632_v27  ;;  %v5633_v6 = vunpack.i.l.bf16 %v5632_v27  ;;  %v5602_v51 = vpop.permute.xlu0 %5601  ;;  %4789 = vmatprep.subr.bf16.mxu1 %v4788_v21  ;;  %v2876_v47 = vld [vmem:[%s6849_s9 + $0x98] sm:$0xff]  ;;  %v2881_v15 = vld [vmem:[%s6849_s9 + $0xc0] sm:$0xff]  ;;  %v2886_v21 = vld [vmem:[%s6849_s9 + $0xe8] sm:$0xff] }
 0x8e3   : > { %v5604_v48 = vunpack.i.h.bf16 %v5602_v51  ;;  %v5603_v35 = vunpack.i.l.bf16 %v5602_v51  ;;  %3804 = vmatmul.mubr.f32.gmra.mrb[24].mxu0 %v2862_v38 }
 0x8e4   : > { %3808 = vmatprep.mubr.f32.mxu0 %v2868_v29  ;;  %v3590_v9 = vsel %vm542_vm8, %v5633_v6, %v5634_v53 }
 0x8e5   : > { %v5642_v39 = vpop.permute.xlu1 %5641  ;;  %4791 = vmatpush3.bf16.msra.mxu1 %v4790_v14  ;;  %v3589_v28 = vsel %vm542_vm8, %v5603_v35, %v5604_v48 }
 0x8e6   : > { %v5644_v54 = vunpack.i.h.bf16 %v5642_v39  ;;  %v5643_v52 = vunpack.i.l.bf16 %v5642_v39  ;;  %v5637_v34 = vpop.permute.xlu0 %5636  ;;  %v4792_v19 = vpack.c.bf16 %v3590_v9, %v3589_v28 }
 0x8e7   : > { %v5639_v43 = vunpack.i.h.bf16 %v5637_v34  ;;  %v5638_v44 = vunpack.i.l.bf16 %v5637_v34  ;;  %3809 = vmatmul.mubr.f32.gmra.mrb[26].mxu0 %v2867_v24 }
 0x8e8   : > { %3894 = vmatmul.mubr.f32.vlgmr.msra.gmra.mrb[26].mxu1 %v2859_v36  ;;  %4793 = vmatprep.subr.bf16.mxu0 %v4792_v19  ;;  %v3592_v23 = vsel %vm542_vm8, %v5643_v52, %v5644_v54 }
 0x8e9   : > { %v5652_v49 = vpop.permute.xlu1 %5651  ;;  %4795 = vmatpush3.bf16.msra.mxu0 %v4792_v19  ;;  %3813 = vmatprep.mubr.f32.mxu0 %v2873_v37  ;;  %v3591_v56 = vsel %vm542_vm8, %v5638_v44, %v5639_v43 }
 0x8ea   : > { %v5654_v57 = vunpack.i.h.bf16 %v5652_v49  ;;  %v5653_v22 = vunpack.i.l.bf16 %v5652_v49  ;;  %v5647_v60 = vpop.permute.xlu0 %5646  ;;  %3898 = vmatprep.mubr.f32.mxu1 %v2865_v26  ;;  %v4796_v30 = vpack.c.bf16 %v3592_v23, %v3591_v56 }
 0x8eb   : > { %v5649_v5 = vunpack.i.h.bf16 %v5647_v60  ;;  %v5648_v61 = vunpack.i.l.bf16 %v5647_v60  ;;  %3814 = vmatmul.mubr.f32.gmra.mrb[28].mxu0 %v2872_v33 }
 0x8ec   : > { %3899 = vmatmul.mubr.f32.gmra.mrb[28].mxu1 %v2864_v12  ;;  %4797 = vmatprep.subr.bf16.mxu0 %v4796_v30  ;;  %v3594_v13 = vsel %vm542_vm8, %v5653_v22, %v5654_v57 }
 0x8ed   : > { %v5662_v31 = vpop.permute.xlu1 %5661  ;;  %4799 = vmatpush3.bf16.msra.mxu0 %v4796_v30  ;;  %3818 = vmatprep.mubr.f32.mxu0 %v2878_v7  ;;  %v3593_v42 = vsel %vm542_vm8, %v5648_v61, %v5649_v5 }
 0x8ee   : > { %v5664_v62 = vunpack.i.h.bf16 %v5662_v31  ;;  %v5663_v40 = vunpack.i.l.bf16 %v5662_v31  ;;  %v5657_v0 = vpop.permute.xlu0 %5656  ;;  %3903 = vmatprep.mubr.f32.mxu1 %v2870_v63  ;;  %v4800_v4 = vpack.c.bf16 %v3594_v13, %v3593_v42 }
 0x8ef   : > { %v5659_v41 = vunpack.i.h.bf16 %v5657_v0  ;;  %v5658_v55 = vunpack.i.l.bf16 %v5657_v0  ;;  %3819 = vmatmul.mubr.f32.gmra.mrb[30].mxu0 %v2877_v3 }
 0x8f0   : > { %3904 = vmatmul.mubr.f32.gmra.mrb[30].mxu1 %v2869_v32  ;;  %4801 = vmatprep.subr.bf16.mxu0 %v4800_v4  ;;  %v3596_v8 = vsel %vm542_vm8, %v5663_v40, %v5664_v62 }
 0x8f1   : > { %4803 = vmatpush3.bf16.msra.mxu0 %v4800_v4  ;;  %3823 = vmatprep.mubr.f32.mxu0 %v2883_v59  ;;  %v3595_v11 = vsel %vm542_vm8, %v5658_v55, %v5659_v41 }
 0x8f2   : > { %3908 = vmatprep.mubr.f32.mxu1 %v2875_v1  ;;  %v4804_v46 = vpack.c.bf16 %v3596_v8, %v3595_v11 }
 0x8f3   : > { %3824 = vmatmul.mubr.f32.gmra.mrb[32].mxu0 %v2882_v10 }
 0x8f4   : > { %3909 = vmatmul.mubr.f32.gmra.mrb[32].mxu1 %v2874_v45  ;;  %4805 = vmatprep.subr.bf16.mxu0 %v4804_v46 }
 0x8f5   : > { %4807 = vmatpush3.bf16.msra.mxu0 %v4804_v46  ;;  %3913 = vmatprep.mubr.f32.mxu1 %v2880_v17 }
 0x8f6   : > { %4575 = vmatprep.mubr.msk.f32.mxu0 %vm3715_vm12, %v2861_v16 }
 0x8f8   : > { %3914 = vmatmul.mubr.f32.gmra.mrb[34].mxu1 %v2879_v20  ;;  %4576 = vmatmul.mubr.msk.f32.vlgmr.msra.gmra.mrb[34].mxu0 %vm3715_vm12, %v2866_v18 }
 0x8f9   : > { %3918 = vmatprep.mubr.f32.mxu1 %v2885_v25  ;;  %4578 = vmatprep.mubr.msk.f32.mxu0 %vm3715_vm12, %v2871_v50 }
 0x8fc   : > { %3919 = vmatmul.mubr.f32.gmra.mrb[36].mxu1 %v2884_v58  ;;  %4579 = vmatmul.mubr.msk.f32.gmra.mrb[36].mxu0 %vm3715_vm12, %v2876_v47 }
 0x8fd   : > { %4581 = vmatprep.mubr.msk.f32.mxu0 %vm3715_vm12, %v2881_v15 }
 0x8fe   : > { %v3693_v19 = vpop.permute.xlu1 %3692 }
 0x8ff   : > { %v3688_v35 = vpop.permute.xlu0 %3687 }
 0x900   : > { %4582 = vmatmul.mubr.msk.f32.gmra.mrb[38].mxu0 %vm3715_vm12, %v2886_v21 }
 0x902   : > { %v3703_v3 = vpop.permute.xlu1 %3702 }
 0x903   : > { %v3698_v56 = vpop.permute.xlu0 %3697 }
 0x906   : > { %v3713_v45 = vpop.permute.xlu1 %3712 }
 0x907   : > { %v3708_v62 = vpop.permute.xlu0 %3707 }
 0x9b2   : > { %v4391_v38 = vpop.f32.mrb[22].mxu0 }
 0x9b3   : > { %v4392_v2 = vpop.f32.mrb[23].mxu0 }
 0x9b4   : > { %v4393_v27 = vadd.f32 %v4392_v2, %v4391_v38 }
 0x9b6   : > { %v4394_v29 = vpop.f32.mrb[24].mxu0  ;;  %v3801_v39 = vadd.f32 %v4393_v27, %v3688_v35 }
 0x9b7   : > { %v4395_v14 = vpop.f32.mrb[25].mxu0 }
 0x9b8   : > { %v4396_v53 = vadd.f32 %v4395_v14, %v4394_v29 }
 0x9ba   : > { %v4397_v6 = vpop.f32.mrb[26].mxu0  ;;  %v3806_v44 = vadd.f32 %v4396_v53, %v3693_v19 }
 0x9bb   : > { %v4398_v51 = vpop.f32.mrb[27].mxu0  ;;  %v4441_v48 = vpop.f32.mrb[26].mxu1 }
 0x9bc   : > { %v4399_v24 = vadd.f32 %v4398_v51, %v4397_v6  ;;  %v4442_v9 = vpop.f32.mrb[27].mxu1 }
 0x9bd   : > { %v4443_v36 = vadd.f32 %v4442_v9, %v4441_v48 }
 0x9be   : > { %v4400_v28 = vpop.f32.mrb[28].mxu0  ;;  %v3811_v60 = vadd.f32 %v4399_v24, %v3698_v56 }
 0x9bf   : > { %v4401_v54 = vpop.f32.mrb[29].mxu0  ;;  %v4444_v52 = vpop.f32.mrb[28].mxu1  ;;  %v3896_v34 = vadd.f32 %v4443_v36, %v3801_v39 }
 0x9c0   : > { %v4402_v37 = vadd.f32 %v4401_v54, %v4400_v28  ;;  %v4445_v43 = vpop.f32.mrb[29].mxu1 }
 0x9c1   : > { %v4446_v26 = vadd.f32 %v4445_v43, %v4444_v52 }
 0x9c2   : > { %v4403_v33 = vpop.f32.mrb[30].mxu0  ;;  %v3816_v32 = vadd.f32 %v4402_v37, %v3703_v3 }
 0x9c3   : > { %v4404_v23 = vpop.f32.mrb[31].mxu0  ;;  %v4447_v49 = vpop.f32.mrb[30].mxu1  ;;  %v3901_v12 = vadd.f32 %v4446_v26, %v3806_v44 }
 0x9c4   : > { %v4405_v57 = vadd.f32 %v4404_v23, %v4403_v33  ;;  %v4448_v22 = vpop.f32.mrb[31].mxu1 }
 0x9c5   : > { %v4449_v30 = vadd.f32 %v4448_v22, %v4447_v49 }
 0x9c6   : > { %v4406_v7 = vpop.f32.mrb[32].mxu0  ;;  %v3821_v1 = vadd.f32 %v4405_v57, %v3708_v62 }
 0x9c7   : > { %v4407_v5 = vpop.f32.mrb[33].mxu0  ;;  %v4450_v61 = vpop.f32.mrb[32].mxu1  ;;  %v3906_v63 = vadd.f32 %v4449_v30, %v3811_v60 }
 0x9c8   : > { %v4408_v13 = vadd.f32 %v4407_v5, %v4406_v7  ;;  %v4451_v31 = vpop.f32.mrb[33].mxu1 }
 0x9c9   : > { %v4452_v42 = vadd.f32 %v4451_v31, %v4450_v61 }
 0x9ca   : > { %v3826_v58 = vadd.f32 %v4408_v13, %v3713_v45 }
 0x9cb   : > { %v4453_v40 = vpop.f32.mrb[34].mxu1  ;;  %v4577_v0 = vpop.f32.mrb[34].mxu0  ;;  %v3911_v4 = vadd.f32 %v4452_v42, %v3816_v32 }
 0x9cc   : > { %v3996_v59 = vadd.f32 %v4577_v0, %v3901_v12  ;;  %v4454_v41 = vpop.f32.mrb[35].mxu1  ;;  %v3990_v55 = vpop.f32.mrb[35].mxu0 }
 0x9cd   : > { %v4455_v10 = vadd.f32 %v4454_v41, %v4453_v40  ;;  %v3991_v8 = vadd.f32 %v3990_v55, %v3896_v34 }
 0x9ce   : > { %v4171_v11 = vmul.f32 -1.442695, %v3996_v59 }
 0x9cf   : > { %v4170_v46 = vmul.f32 -1.442695, %v3991_v8  ;;  %v4456_v17 = vpop.f32.mrb[36].mxu1  ;;  %v4580_v16 = vpop.f32.mrb[36].mxu0  ;;  %v3916_v20 = vadd.f32 %v4455_v10, %v3821_v1 }
 0x9d0   : > { %5665 = vpow2.f32 %v4171_v11  ;;  %v4006_v18 = vadd.f32 %v4580_v16, %v3911_v4  ;;  %v4457_v25 = vpop.f32.mrb[37].mxu1  ;;  %v4000_v50 = vpop.f32.mrb[37].mxu0 }
 0x9d1   : > { %5667 = vpow2.f32 %v4170_v46  ;;  %v4458_v47 = vadd.f32 %v4457_v25, %v4456_v17  ;;  %v4001_v15 = vadd.f32 %v4000_v50, %v3906_v63 }
 0x9d2   : > { %v4173_v21 = vmul.f32 -1.442695, %v4006_v18 }
 0x9d3   : > { %v4172_v38 = vmul.f32 -1.442695, %v4001_v15  ;;  %v3921_v2 = vadd.f32 %v4458_v47, %v3826_v58  ;;  %v4583_v27 = vpop.f32.mrb[38].mxu0 }
 0x9d4   : > { %5669 = vpow2.f32 %v4173_v21  ;;  %v4010_v29 = vpop.f32.mrb[39].mxu0 }
 0x9d5   : > { %5671 = vpow2.f32 %v4172_v38  ;;  %v4016_v14 = vadd.f32 %v4583_v27, %v3921_v2  ;;  %v4011_v53 = vadd.f32 %v4010_v29, %v3916_v20 }
 0x9d7   : > { %v4175_v6 = vmul.f32 -1.442695, %v4016_v14  ;;  %v4174_v51 = vmul.f32 -1.442695, %v4011_v53 }
 0x9d9   : > { %5673 = vpow2.f32 %v4175_v6 }
 0x9da   : > { %v5666_v48 = vpop.eup %5665  ;;  %5675 = vpow2.f32 %v4174_v51 }
 0x9db   : > { %v5668_v35 = vpop.eup %5667  ;;  %v4038_v24 = vadd.f32 1.0, %v5666_v48 }
 0x9dc   : > { %v4037_v9 = vadd.f32 1.0, %v5668_v35 }
 0x9dd   : > { %5677 = vrcp.f32 %v4038_v24 }
 0x9de   : > { %v5670_v39 = vpop.eup %5669  ;;  %5679 = vrcp.f32 %v4037_v9 }
 0x9df   : > { %v5672_v36 = vpop.eup %5671  ;;  %v4040_v28 = vadd.f32 1.0, %v5670_v39 }
 0x9e0   : > { %v4039_v54 = vadd.f32 1.0, %v5672_v36 }
 0x9e1   : > { %5681 = vrcp.f32 %v4040_v28 }
 0x9e2   : > { %5683 = vrcp.f32 %v4039_v54 }
 0x9e3   : > { %v5674_v52 = vpop.eup %5673 }
 0x9e4   : > { %v5676_v34 = vpop.eup %5675  ;;  %v4042_v19 = vadd.f32 1.0, %v5674_v52 }
 0x9e5   : > { %v4041_v37 = vadd.f32 1.0, %v5676_v34 }
 0x9e6   : > { %5685 = vrcp.f32 %v4042_v19 }
 0x9e7   : > { %v5678_v43 = vpop.eup %5677  ;;  %5687 = vrcp.f32 %v4041_v37 }
 0x9e8   : > { %v5680_v44 = vpop.eup %5679  ;;  %4056 = vst [vmem:[%s413_s13 + $0x8] sm:$0xff] %v5678_v43 }
 0x9e9   : > { %4055 = vst [vmem:[%s413_s13] sm:$0xff] %v5680_v44 }
 0x9eb   : > { %v5682_v26 = vpop.eup %5681 }
 0x9ec   : > { %v5684_v33 = vpop.eup %5683  ;;  %4058 = vst [vmem:[%s413_s13 + $0x18] sm:$0xff] %v5682_v26 }
 0x9ed   : > { %4057 = vst [vmem:[%s413_s13 + $0x10] sm:$0xff] %v5684_v33 }
 0x9f0   : > { %v5686_v23 = vpop.eup %5685 }
 0x9f1   : > { %v5688_v49 = vpop.eup %5687  ;;  %4060 = vst [vmem:[%s413_s13 + $0x28] sm:$0xff] %v5686_v23 }
 0x9f2   : > { %4059 = vst [vmem:[%s413_s13 + $0x20] sm:$0xff] %v5688_v49 }
 0x9f3 PF: > { %s22_s21 = sadd.s32 1, %s5697_s21  }
 0x9f4   : > { %p19_p4 = scmp.ge.s32.totalorder %s22_s21, 4  }
 0x9f6   :  { %21 = sbr.rel (!%p19_p4) target bundleno = 1 (0x1), region = 102 }

</bundles_post_ra>
